<compile_context>
chip_gen: v7x
topology: tpu7x:2x2x1
jax: 0.10.0
libtpu: 0.0.40
codegen_flags: <defaults>
</compile_context>

<pallas_src>
import functools

import numpy as np
import jax
import jax.numpy as jnp
from jax.experimental import pallas as pl
from jax.experimental.pallas import tpu as pltpu

# ----------------------------- config ---------------------------------------
LATENT_DIM   = 8
DIM          = LATENT_DIM * 4          # 32
LATENT_SIZE  = (4, 4)
SEQ          = LATENT_SIZE[0] * LATENT_SIZE[1]   # 16 tokens
N_CLUSTERS   = 10
NHEADS       = 4
HEAD_DIM     = DIM // NHEADS           # 8
N_DITBLOCKS  = 2
NOISE_STEPS  = 100
BETA_START   = 1e-4
BETA_END     = 2e-2
BATCH        = 2

SLAB_W       = 128                     # lane width of the packed parameter slab


# --------------------------- host-side slab packer ---------------------------
class _SlabPacker:
    """Packs f32 blocks into one (rows, 128) slab with explicit 2-D placement.

    A "strip" is an 8-row-aligned band; several blocks may share a strip
    side-by-side in lanes, and 1-row biases can be ganged row-by-row inside a
    single strip.  All offsets are static -> the kernel reads weights with
    static ref slices."""

    def __init__(self, width=SLAB_W):
        self.width = width
        self.rows = 0
        self._items = []                         # (row, lane, np.ndarray)

    def strip(self, placements):
        """placements: [(arr, lane), ...] sharing one strip. Returns (row, lane)s."""
        base, offs, height = self.rows, [], 0
        for arr, lane in placements:
            arr = np.atleast_2d(np.asarray(arr, np.float32))
            assert lane + arr.shape[1] <= self.width, (lane, arr.shape)
            self._items.append((base, lane, arr))
            offs.append((base, lane))
            height = max(height, arr.shape[0])
        self.rows = base + ((height + 7) // 8) * 8
        return offs

    def add(self, arr, lane=0):
        return self.strip([(arr, lane)])[0]

    def row_gang(self, arrs):
        """Pack 1-row arrays into consecutive rows (lane 0) of one strip."""
        base, offs = self.rows, []
        for i, arr in enumerate(arrs):
            arr = np.atleast_2d(np.asarray(arr, np.float32))
            assert arr.shape[0] == 1
            self._items.append((base + i, 0, arr))
            offs.append((base + i, 0))
        self.rows = base + ((len(arrs) + 7) // 8) * 8
        return offs

    def finalize(self):
        slab = np.zeros((max(self.rows, 8), self.width), np.float32)
        for r, l, a in self._items:
            slab[r:r + a.shape[0], l:l + a.shape[1]] = a
        return slab


# --------------------------- parameter init ----------------------------------
def init_raw_params(key):
    def dense(k, fi, fo):
        kw, kb = jax.random.split(k)
        w = jax.random.normal(kw, (fi, fo), jnp.float32) / jnp.sqrt(jnp.float32(fi))
        b = 0.01 * jax.random.normal(kb, (1, fo), jnp.float32)
        return np.asarray(w), np.asarray(b)

    n_dense = 2 + 5 * N_DITBLOCKS + 2
    keys = jax.random.split(key, n_dense)
    ki = iter(keys)

    params = {
        "embx": dense(next(ki), LATENT_DIM, DIM),
        "embc": dense(next(ki), N_CLUSTERS, DIM),
        "blocks": [],
    }
    for _ in range(N_DITBLOCKS):
        params["blocks"].append({
            "adaln": dense(next(ki), DIM, 6 * DIM),   # adaLN-Zero modulation
            "qkv":   dense(next(ki), DIM, 3 * DIM),
            "proj":  dense(next(ki), DIM, DIM),
            "fc1":   dense(next(ki), DIM, 4 * DIM),
            "fc2":   dense(next(ki), 4 * DIM, DIM),
        })
    params["f_adaln"] = dense(next(ki), DIM, 2 * DIM)
    params["f_lin"]   = dense(next(ki), DIM, LATENT_DIM)
    return params


def pack_params(params):
    """Pack all weights + static tables into one f32 slab.

    Returns (slab, layout); layout maps names -> static (row, lane) offsets.
    Host-side algebraic folds (semantics-preserving):
      * rotate_half folded into a second copy of emb_x (signed permutation),
      * 1/sqrt(head_dim) attention scale folded into the Q weight/bias,
      * the '+1' of adaLN's (1 + scale) folded into the scale-chunk biases.
    """
    D, Hd = DIM, HEAD_DIM
    P = _SlabPacker()
    lay = {}

    # rotate_half (interleaved pairs: (x0,x1,..) -> (-x1,x0,..)) as a signed
    # permutation matrix, folded into a second copy of emb_x.
    rot = np.zeros((D, D), np.float32)
    for i in range(D // 2):
        rot[2 * i, 2 * i + 1] = 1.0
        rot[2 * i + 1, 2 * i] = -1.0

    wx, bx = params["embx"]
    wc, bc = params["embc"]
    fw, fb = params["f_adaln"]
    lw, lb = params["f_lin"]

    # emb_x and its rotated copy share one 8-row strip.
    lay["embx_w"], lay["embx_wr"] = P.strip([(wx, 0), (wx @ rot, D)])

    # rotary cos/sin tables (interleaved repeat, theta=10000) + emb_c weight
    # share one 16-row strip.
    pos = np.arange(SEQ, dtype=np.float32)
    inv_freq = 1.0 / (10000.0 ** (np.arange(0, D, 2, dtype=np.float32) / D))
    freqs = np.repeat(pos[:, None] * inv_freq[None, :], 2, axis=-1)      # (S, D)
    lay["rot_cos"], lay["rot_sin"], lay["embc_w"] = P.strip(
        [(np.cos(freqs), 0), (np.sin(freqs), D), (wc, 2 * D)])

    # timestep pos-encoding: pe = sin(t*invf + phase); phase=pi/2 on the cos half
    pe_invf = np.concatenate([inv_freq, inv_freq])[None, :]
    pe_phase = np.concatenate(
        [np.zeros(D // 2), np.full(D // 2, np.pi / 2)]).astype(np.float32)[None, :]

    # FinalLayer adaLN bias: fold '+1' into the scale chunk (cols D:2D).
    fb_mod = fb.copy()
    fb_mod[:, D:2 * D] += 1.0

    # all global 1-row vectors ganged into one 8-row strip
    (lay["embx_b"], lay["embx_br"], lay["embc_b"], lay["pe_invf"],
     lay["pe_phase"], lay["fadaln_b"], lay["flin_b"]) = P.row_gang(
        [bx, bx @ rot, bc, pe_invf, pe_phase, fb_mod, lb])

    # all blocks' fc2 weights (4D x D, only 32 lanes each) lane-packed together
    fc2_offs = []
    per_strip = SLAB_W // D
    for i0 in range(0, len(params["blocks"]), per_strip):
        grp = params["blocks"][i0:i0 + per_strip]
        fc2_offs += P.strip([(b["fc2"][0], j * D) for j, b in enumerate(grp)])

    q_scale = np.float32(1.0 / np.sqrt(Hd))

    lay["blocks"] = []
    for i, blk in enumerate(params["blocks"]):
        bl = {}
        aw, ab = blk["adaln"]
        qkv_w, qkv_b = blk["qkv"]
        pw, pb = blk["proj"]

        # adaLN bias: fold '+1' into scale_msa (cols D:2D) and scale_mlp (4D:5D).
        ab_mod = ab.copy()
        ab_mod[:, D:2 * D] += 1.0
        ab_mod[:, 4 * D:5 * D] += 1.0

        # fused adaLN weights: chunk-a = [shift_msa|scale_msa|gate_msa|shift_mlp]
        # (D x 4D); chunk-b = [scale_mlp|gate_mlp] (D x 2D), beside the proj weight.
        bl["adaln_a"] = P.add(aw[:, :4 * D])
        bl["adaln_b"], bl["proj_w"] = P.strip([(aw[:, 4 * D:], 0), (pw, 2 * D)])

        # fused QKV weight (D x 3D); attention scale folded into the Q columns.
        qkv_w_mod = qkv_w.copy(); qkv_w_mod[:, :D] *= q_scale
        qkv_b_mod = qkv_b.copy(); qkv_b_mod[:, :D] *= q_scale
        bl["qkv_w"] = P.add(qkv_w_mod)

        bl["fc1_w"] = P.add(blk["fc1"][0])
        bl["fc2_w"] = fc2_offs[i]

        # all 1-row biases of this block ganged into one 8-row strip
        (bl["adaln_ba"], bl["adaln_bb"], bl["qkv_b"], bl["proj_b"],
         bl["fc1_b"], bl["fc2_b"]) = P.row_gang(
            [ab_mod[:, :4 * D], ab_mod[:, 4 * D:], qkv_b_mod, pb,
             blk["fc1"][1], blk["fc2"][1]])
        lay["blocks"].append(bl)

    # FinalLayer fused adaLN weight (D x 2D) beside the final linear (D x Ld).
    lay["fadaln_w"], lay["flin_w"] = P.strip([(fw, 0), (lw, 2 * D)])

    return jnp.asarray(P.finalize()), lay


# --------------------------- in-kernel helpers --------------------------------
def _layernorm(x, eps=1e-6):
    mu = jnp.mean(x, axis=-1, keepdims=True)
    var = jnp.mean((x - mu) ** 2, axis=-1, keepdims=True)
    return (x - mu) * jax.lax.rsqrt(var + eps)


# ------------------------------ fused kernel ----------------------------------
def diffusion_kernel(lay, x_ref, t_ref, c_ref, slab_ref, out_ref):
    B, S, Ld = x_ref.shape
    D, H, Hd = DIM, NHEADS, HEAD_DIM

    def W(off, rows, cols):                       # static (row, lane) slab slice
        r, l = off
        return slab_ref[r:r + rows, l:l + cols]

    def matmul(a, w_off, rows, cols, b_off):
        return (jnp.dot(a, W(w_off, rows, cols), preferred_element_type=jnp.float32)
                + W(b_off, 1, cols))

    x2d = x_ref[...].reshape(B * S, Ld)

    # ---- emb_x + rotary (rotate_half folded into second matmul host-side) ----
    h   = matmul(x2d, lay["embx_w"],  Ld, D, lay["embx_b"]).reshape(B, S, D)
    h_r = matmul(x2d, lay["embx_wr"], Ld, D, lay["embx_br"]).reshape(B, S, D)
    cos = W(lay["rot_cos"], S, D)[None, :, :]
    sin = W(lay["rot_sin"], S, D)[None, :, :]
    h = h * cos + h_r * sin

    # ---- conditioning: emb_c(c) + pos_encoding(t) -----------------------------
    t_pe = jnp.sin(t_ref[...] * W(lay["pe_invf"], 1, D) + W(lay["pe_phase"], 1, D))
    cond = matmul(c_ref[...], lay["embc_w"], N_CLUSTERS, D, lay["embc_b"]) + t_pe
    silu_c = jax.nn.silu(cond)                    # shared by every adaLN below

    # ---- DiT blocks (adaLN-Zero) ----------------------------------------------
    for bl in lay["blocks"]:
        # fused modulation: 2 matmuls -> 6 static lane-sliced chunks
        # ('+1' of (1+scale) pre-folded into the scale-chunk biases).
        mods_a = matmul(silu_c, bl["adaln_a"], D, 4 * D, bl["adaln_ba"])   # (B,4D)
        mods_b = matmul(silu_c, bl["adaln_b"], D, 2 * D, bl["adaln_bb"])   # (B,2D)
        shift_msa = mods_a[:, 0 * D:1 * D][:, None, :]
        scale_msa = mods_a[:, 1 * D:2 * D][:, None, :]
        gate_msa  = mods_a[:, 2 * D:3 * D][:, None, :]
        shift_mlp = mods_a[:, 3 * D:4 * D][:, None, :]
        scale_mlp = mods_b[:, 0 * D:1 * D][:, None, :]
        gate_mlp  = mods_b[:, 1 * D:2 * D][:, None, :]

        # -- attention branch: ONE fused QKV matmul, per-head static lane slices,
        #    heads lane-concatenated into ONE output-projection matmul --
        xn2d = (_layernorm(h) * scale_msa + shift_msa).reshape(B * S, D)
        qkv = matmul(xn2d, bl["qkv_w"], D, 3 * D, bl["qkv_b"])             # (B*S,3D)
        o_heads = []
        for hh in range(H):
            # 1/sqrt(Hd) is pre-folded into the Q weight columns.
            q = qkv[:, hh * Hd:(hh + 1) * Hd].reshape(B, S, Hd)
            k = qkv[:, D + hh * Hd:D + (hh + 1) * Hd].reshape(B, S, Hd)
            v = qkv[:, 2 * D + hh * Hd:2 * D + (hh + 1) * Hd].reshape(B, S, Hd)
            s = jnp.einsum("bqd,bkd->bqk", q, k,
                           preferred_element_type=jnp.float32)
            s = s - jnp.max(s, axis=-1, keepdims=True)      # torch.softmax parity
            p = jnp.exp(s)
            p = p * pl.reciprocal(jnp.sum(p, axis=-1, keepdims=True), approx=True)
            o = jnp.einsum("bqk,bkd->bqd", p, v,
                           preferred_element_type=jnp.float32)             # (B,S,Hd)
            o_heads.append(o.reshape(B * S, Hd))
        o_cat = jnp.concatenate(o_heads, axis=-1)                          # (B*S,D)
        attn = matmul(o_cat, bl["proj_w"], D, D, bl["proj_b"])
        h = h + gate_msa * attn.reshape(B, S, D)

        # -- MLP branch --
        xn2 = (_layernorm(h) * scale_mlp + shift_mlp).reshape(B * S, D)
        m = matmul(xn2, bl["fc1_w"], D, 4 * D, bl["fc1_b"])
        m = jax.nn.gelu(m, approximate=True)
        m = matmul(m, bl["fc2_w"], 4 * D, D, bl["fc2_b"])
        h = h + gate_mlp * m.reshape(B, S, D)

    # ---- FinalLayer ------------------------------------------------------------
    fmods = matmul(silu_c, lay["fadaln_w"], D, 2 * D, lay["fadaln_b"])     # (B,2D)
    f_shift = fmods[:, 0:D][:, None, :]
    f_scale = fmods[:, D:2 * D][:, None, :]       # '+1' pre-folded into bias
    xn = (_layernorm(h) * f_scale + f_shift).reshape(B * S, D)
    out = matmul(xn, lay["flin_w"], D, Ld, lay["flin_b"])
    out_ref[...] = out.reshape(B, S, Ld)


# ------------------------------ wrapper ---------------------------------------
def make_forward(layout):
    kernel = functools.partial(diffusion_kernel, layout)

    @jax.jit
    def forward(x, t, c, slab):
        B = x.shape[0]
        t_f = t.astype(jnp.float32).reshape(B, 1)
        return pl.pallas_call(
            kernel,
            out_shape=jax.ShapeDtypeStruct((B, SEQ, LATENT_DIM), jnp.float32),
            in_specs=[pl.BlockSpec(memory_space=pltpu.MemorySpace.VMEM)] * 4,
            out_specs=pl.BlockSpec(memory_space=pltpu.MemorySpace.VMEM),
        )(x, t_f, c, slab)

    return forward


# -------------------------------------------------------------------------------
if __name__ == "__main__":
    # diffusion schedule buffers (not used by forward(); kept for completeness)
    beta = jnp.linspace(BETA_START, BETA_END, NOISE_STEPS)
    alpha = 1.0 - beta
    alpha_hat = jnp.cumprod(alpha)
    # TODO(synk): sample()/train_step() (host-side denoising loop, torch RNG)
    # are not kernelized; only forward() is implemented in Pallas.

    key = jax.random.PRNGKey(0)
    kx, kt, kc, kp = jax.random.split(key, 4)
    x = jax.random.normal(kx, (BATCH, SEQ, LATENT_DIM), jnp.float32)
    t = jax.random.randint(kt, (BATCH,), 1, NOISE_STEPS)
    c = jax.random.normal(kc, (BATCH, N_CLUSTERS), jnp.float32)

    raw_params = init_raw_params(kp)
    slab, layout = pack_params(raw_params)
    forward = make_forward(layout)

    out = jax.block_until_ready(forward(x, t, c, slab))

    assert out.shape == (BATCH, SEQ, LATENT_DIM), out.shape
    assert bool(jnp.all(jnp.isfinite(out)))
    print("KERNEL_OK")
</pallas_src>

<mosaic_0001>
module attributes {stable_mosaic.version = 11 : i64} {
  func.func @diffusion_kernel(%arg0: memref<2x16x8xf32, #tpu.memory_space<vmem>>, %arg1: memref<2x1xf32, #tpu.memory_space<vmem>>, %arg2: memref<2x10xf32, #tpu.memory_space<vmem>>, %arg3: memref<464x128xf32, #tpu.memory_space<vmem>>, %arg4: memref<2x16x8xf32, #tpu.memory_space<vmem>>) attributes {dimension_semantics = [], scalar_prefetch = 0 : i64, scratch_operands = 0 : i64, tpu.core_type = #tpu.core_type<tc>} {
    %c0 = arith.constant 0 : index
    %c0_0 = arith.constant 0 : index
    %c0_1 = arith.constant 0 : index
    %0 = vector.load %arg0[%c0, %c0_0, %c0_1] : memref<2x16x8xf32, #tpu.memory_space<vmem>>, vector<2x16x8xf32>
    %1 = vector.shape_cast %0 : vector<2x16x8xf32> to vector<32x8xf32>
    %c0_2 = arith.constant 0 : index
    %c0_3 = arith.constant 0 : index
    %2 = vector.load %arg3[%c0_2, %c0_3] : memref<464x128xf32, #tpu.memory_space<vmem>>, vector<8x32xf32>
    %cst = arith.constant dense<0.000000e+00> : vector<32x32xf32>
    %3 = tpu.matmul %1, %2, %cst {dimension_numbers = #tpu.dot_dimension_numbers<[1], [0], [0], [1], [0, 0, 1, 1], [], []>} : vector<32x8xf32>, vector<8x32xf32>, vector<32x32xf32> -> vector<32x32xf32>
    %c24 = arith.constant 24 : index
    %c0_4 = arith.constant 0 : index
    %4 = vector.load %arg3[%c24, %c0_4] : memref<464x128xf32, #tpu.memory_space<vmem>>, vector<1x32xf32>
    %5 = vector.broadcast %4 : vector<1x32xf32> to vector<32x32xf32>
    %6 = arith.addf %3, %5 : vector<32x32xf32>
    %7 = vector.shape_cast %6 : vector<32x32xf32> to vector<2x16x32xf32>
    %c0_5 = arith.constant 0 : index
    %c32 = arith.constant 32 : index
    %8 = vector.load %arg3[%c0_5, %c32] : memref<464x128xf32, #tpu.memory_space<vmem>>, vector<8x32xf32>
    %cst_6 = arith.constant dense<0.000000e+00> : vector<32x32xf32>
    %9 = tpu.matmul %1, %8, %cst_6 {dimension_numbers = #tpu.dot_dimension_numbers<[1], [0], [0], [1], [0, 0, 1, 1], [], []>} : vector<32x8xf32>, vector<8x32xf32>, vector<32x32xf32> -> vector<32x32xf32>
    %c25 = arith.constant 25 : index
    %c0_7 = arith.constant 0 : index
    %10 = vector.load %arg3[%c25, %c0_7] : memref<464x128xf32, #tpu.memory_space<vmem>>, vector<1x32xf32>
    %11 = vector.broadcast %10 : vector<1x32xf32> to vector<32x32xf32>
    %12 = arith.addf %9, %11 : vector<32x32xf32>
    %13 = vector.shape_cast %12 : vector<32x32xf32> to vector<2x16x32xf32>
    %c8 = arith.constant 8 : index
    %c0_8 = arith.constant 0 : index
    %14 = vector.load %arg3[%c8, %c0_8] : memref<464x128xf32, #tpu.memory_space<vmem>>, vector<16x32xf32>
    %15 = vector.shape_cast %14 : vector<16x32xf32> to vector<1x16x32xf32>
    %c8_9 = arith.constant 8 : index
    %c32_10 = arith.constant 32 : index
    %16 = vector.load %arg3[%c8_9, %c32_10] : memref<464x128xf32, #tpu.memory_space<vmem>>, vector<16x32xf32>
    %17 = vector.shape_cast %16 : vector<16x32xf32> to vector<1x16x32xf32>
    %18 = vector.broadcast %15 : vector<1x16x32xf32> to vector<2x16x32xf32>
    %19 = arith.mulf %7, %18 : vector<2x16x32xf32>
    %20 = vector.broadcast %17 : vector<1x16x32xf32> to vector<2x16x32xf32>
    %21 = arith.mulf %13, %20 : vector<2x16x32xf32>
    %22 = arith.addf %19, %21 : vector<2x16x32xf32>
    %c0_11 = arith.constant 0 : index
    %c0_12 = arith.constant 0 : index
    %23 = vector.load %arg1[%c0_11, %c0_12] : memref<2x1xf32, #tpu.memory_space<vmem>>, vector<2x1xf32>
    %c27 = arith.constant 27 : index
    %c0_13 = arith.constant 0 : index
    %24 = vector.load %arg3[%c27, %c0_13] : memref<464x128xf32, #tpu.memory_space<vmem>>, vector<1x32xf32>
    %25 = vector.broadcast %23 : vector<2x1xf32> to vector<2x32xf32>
    %26 = vector.broadcast %24 : vector<1x32xf32> to vector<2x32xf32>
    %27 = arith.mulf %25, %26 : vector<2x32xf32>
    %c28 = arith.constant 28 : index
    %c0_14 = arith.constant 0 : index
    %28 = vector.load %arg3[%c28, %c0_14] : memref<464x128xf32, #tpu.memory_space<vmem>>, vector<1x32xf32>
    %29 = vector.broadcast %28 : vector<1x32xf32> to vector<2x32xf32>
    %30 = arith.addf %27, %29 : vector<2x32xf32>
    %31 = math.sin %30 : vector<2x32xf32>
    %c0_15 = arith.constant 0 : index
    %c0_16 = arith.constant 0 : index
    %32 = vector.load %arg2[%c0_15, %c0_16] : memref<2x10xf32, #tpu.memory_space<vmem>>, vector<2x10xf32>
    %c8_17 = arith.constant 8 : index
    %c64 = arith.constant 64 : index
    %33 = vector.load %arg3[%c8_17, %c64] : memref<464x128xf32, #tpu.memory_space<vmem>>, vector<10x32xf32>
    %cst_18 = arith.constant dense<0.000000e+00> : vector<2x32xf32>
    %34 = tpu.matmul %32, %33, %cst_18 {dimension_numbers = #tpu.dot_dimension_numbers<[1], [0], [0], [1], [0, 0, 1, 1], [], []>} : vector<2x10xf32>, vector<10x32xf32>, vector<2x32xf32> -> vector<2x32xf32>
    %c26 = arith.constant 26 : index
    %c0_19 = arith.constant 0 : index
    %35 = vector.load %arg3[%c26, %c0_19] : memref<464x128xf32, #tpu.memory_space<vmem>>, vector<1x32xf32>
    %36 = vector.broadcast %35 : vector<1x32xf32> to vector<2x32xf32>
    %37 = arith.addf %34, %36 : vector<2x32xf32>
    %38 = arith.addf %37, %31 : vector<2x32xf32>
    %39 = arith.negf %38 : vector<2x32xf32>
    %40 = math.exp %39 : vector<2x32xf32>
    %cst_20 = arith.constant 1.000000e+00 : f32
    %41 = vector.broadcast %cst_20 : f32 to vector<2x32xf32>
    %42 = arith.addf %41, %40 : vector<2x32xf32>
    %43 = arith.divf %41, %42 : vector<2x32xf32>
    %44 = arith.mulf %38, %43 : vector<2x32xf32>
    %c160 = arith.constant 160 : index
    %c0_21 = arith.constant 0 : index
    %45 = vector.load %arg3[%c160, %c0_21] : memref<464x128xf32, #tpu.memory_space<vmem>>, vector<32x128xf32>
    %cst_22 = arith.constant dense<0.000000e+00> : vector<2x128xf32>
    %46 = tpu.matmul %44, %45, %cst_22 {dimension_numbers = #tpu.dot_dimension_numbers<[1], [0], [0], [1], [0, 0, 1, 1], [], []>} : vector<2x32xf32>, vector<32x128xf32>, vector<2x128xf32> -> vector<2x128xf32>
    %c288 = arith.constant 288 : index
    %c0_23 = arith.constant 0 : index
    %47 = vector.load %arg3[%c288, %c0_23] : memref<464x128xf32, #tpu.memory_space<vmem>>, vector<1x128xf32>
    %48 = vector.broadcast %47 : vector<1x128xf32> to vector<2x128xf32>
    %49 = arith.addf %46, %48 : vector<2x128xf32>
    %c192 = arith.constant 192 : index
    %c0_24 = arith.constant 0 : index
    %50 = vector.load %arg3[%c192, %c0_24] : memref<464x128xf32, #tpu.memory_space<vmem>>, vector<32x64xf32>
    %cst_25 = arith.constant dense<0.000000e+00> : vector<2x64xf32>
    %51 = tpu.matmul %44, %50, %cst_25 {dimension_numbers = #tpu.dot_dimension_numbers<[1], [0], [0], [1], [0, 0, 1, 1], [], []>} : vector<2x32xf32>, vector<32x64xf32>, vector<2x64xf32> -> vector<2x64xf32>
    %c289 = arith.constant 289 : index
    %c0_26 = arith.constant 0 : index
    %52 = vector.load %arg3[%c289, %c0_26] : memref<464x128xf32, #tpu.memory_space<vmem>>, vector<1x64xf32>
    %53 = vector.broadcast %52 : vector<1x64xf32> to vector<2x64xf32>
    %54 = arith.addf %51, %53 : vector<2x64xf32>
    %55 = vector.extract_strided_slice %49 {offsets = [0, 0], sizes = [2, 32], strides = [1, 1]} : vector<2x128xf32> to vector<2x32xf32>
    %56 = vector.shape_cast %55 : vector<2x32xf32> to vector<2x1x32xf32>
    %57 = vector.extract_strided_slice %49 {offsets = [0, 32], sizes = [2, 32], strides = [1, 1]} : vector<2x128xf32> to vector<2x32xf32>
    %58 = vector.shape_cast %57 : vector<2x32xf32> to vector<2x1x32xf32>
    %59 = vector.extract_strided_slice %49 {offsets = [0, 64], sizes = [2, 32], strides = [1, 1]} : vector<2x128xf32> to vector<2x32xf32>
    %60 = vector.shape_cast %59 : vector<2x32xf32> to vector<2x1x32xf32>
    %61 = vector.extract_strided_slice %49 {offsets = [0, 96], sizes = [2, 32], strides = [1, 1]} : vector<2x128xf32> to vector<2x32xf32>
    %62 = vector.shape_cast %61 : vector<2x32xf32> to vector<2x1x32xf32>
    %63 = vector.extract_strided_slice %54 {offsets = [0, 0], sizes = [2, 32], strides = [1, 1]} : vector<2x64xf32> to vector<2x32xf32>
    %64 = vector.shape_cast %63 : vector<2x32xf32> to vector<2x1x32xf32>
    %65 = vector.extract_strided_slice %54 {offsets = [0, 32], sizes = [2, 32], strides = [1, 1]} : vector<2x64xf32> to vector<2x32xf32>
    %66 = vector.shape_cast %65 : vector<2x32xf32> to vector<2x1x32xf32>
    %cst_27 = arith.constant dense<0.000000e+00> : vector<2x16xf32>
    %67 = vector.multi_reduction <add>, %22, %cst_27 [2] : vector<2x16x32xf32> to vector<2x16xf32>
    %68 = vector.shape_cast %67 : vector<2x16xf32> to vector<2x16x1xf32>
    %cst_28 = arith.constant 3.200000e+01 : f32
    %69 = vector.broadcast %cst_28 : f32 to vector<2x16x1xf32>
    %70 = arith.divf %68, %69 : vector<2x16x1xf32>
    %71 = vector.broadcast %70 : vector<2x16x1xf32> to vector<2x16x32xf32>
    %72 = arith.subf %22, %71 : vector<2x16x32xf32>
    %73 = arith.mulf %72, %72 : vector<2x16x32xf32>
    %cst_29 = arith.constant dense<0.000000e+00> : vector<2x16xf32>
    %74 = vector.multi_reduction <add>, %73, %cst_29 [2] : vector<2x16x32xf32> to vector<2x16xf32>
    %75 = vector.shape_cast %74 : vector<2x16xf32> to vector<2x16x1xf32>
    %cst_30 = arith.constant 3.200000e+01 : f32
    %76 = vector.broadcast %cst_30 : f32 to vector<2x16x1xf32>
    %77 = arith.divf %75, %76 : vector<2x16x1xf32>
    %78 = vector.broadcast %70 : vector<2x16x1xf32> to vector<2x16x32xf32>
    %79 = arith.subf %22, %78 : vector<2x16x32xf32>
    %cst_31 = arith.constant 9.99999997E-7 : f32
    %80 = vector.broadcast %cst_31 : f32 to vector<2x16x1xf32>
    %81 = arith.addf %77, %80 : vector<2x16x1xf32>
    %82 = math.rsqrt %81 : vector<2x16x1xf32>
    %83 = vector.broadcast %82 : vector<2x16x1xf32> to vector<2x16x32xf32>
    %84 = arith.mulf %79, %83 : vector<2x16x32xf32>
    %85 = vector.broadcast %58 : vector<2x1x32xf32> to vector<2x16x32xf32>
    %86 = arith.mulf %84, %85 : vector<2x16x32xf32>
    %87 = vector.broadcast %56 : vector<2x1x32xf32> to vector<2x16x32xf32>
    %88 = arith.addf %86, %87 : vector<2x16x32xf32>
    %89 = vector.shape_cast %88 : vector<2x16x32xf32> to vector<32x32xf32>
    %c224 = arith.constant 224 : index
    %c0_32 = arith.constant 0 : index
    %90 = vector.load %arg3[%c224, %c0_32] : memref<464x128xf32, #tpu.memory_space<vmem>>, vector<32x96xf32>
    %cst_33 = arith.constant dense<0.000000e+00> : vector<32x96xf32>
    %91 = tpu.matmul %89, %90, %cst_33 {dimension_numbers = #tpu.dot_dimension_numbers<[1], [0], [0], [1], [0, 0, 1, 1], [], []>} : vector<32x32xf32>, vector<32x96xf32>, vector<32x96xf32> -> vector<32x96xf32>
    %c290 = arith.constant 290 : index
    %c0_34 = arith.constant 0 : index
    %92 = vector.load %arg3[%c290, %c0_34] : memref<464x128xf32, #tpu.memory_space<vmem>>, vector<1x96xf32>
    %93 = vector.broadcast %92 : vector<1x96xf32> to vector<32x96xf32>
    %94 = arith.addf %91, %93 : vector<32x96xf32>
    %95 = vector.extract_strided_slice %94 {offsets = [0, 0], sizes = [32, 8], strides = [1, 1]} : vector<32x96xf32> to vector<32x8xf32>
    %96 = vector.shape_cast %95 : vector<32x8xf32> to vector<2x16x8xf32>
    %97 = vector.extract_strided_slice %94 {offsets = [0, 32], sizes = [32, 8], strides = [1, 1]} : vector<32x96xf32> to vector<32x8xf32>
    %98 = vector.shape_cast %97 : vector<32x8xf32> to vector<2x16x8xf32>
    %99 = vector.extract_strided_slice %94 {offsets = [0, 64], sizes = [32, 8], strides = [1, 1]} : vector<32x96xf32> to vector<32x8xf32>
    %100 = vector.shape_cast %99 : vector<32x8xf32> to vector<2x16x8xf32>
    "tpu.trace_start"() <{level = 10 : i32, message = "bqd,bkd->bqk"}> : () -> ()
    %cst_35 = arith.constant dense<0.000000e+00> : vector<2x16x16xf32>
    %101 = tpu.matmul %96, %98, %cst_35 {dimension_numbers = #tpu.dot_dimension_numbers<[2], [2], [1], [1], [0, 0, 0, 1, 1, 1], [0], [0]>} : vector<2x16x8xf32>, vector<2x16x8xf32>, vector<2x16x16xf32> -> vector<2x16x16xf32>
    "tpu.trace_stop"() : () -> ()
    %cst_36 = arith.constant dense<0xFF800000> : vector<2x16xf32>
    %102 = vector.multi_reduction <maximumf>, %101, %cst_36 [2] : vector<2x16x16xf32> to vector<2x16xf32>
    %103 = vector.shape_cast %102 : vector<2x16xf32> to vector<2x16x1xf32>
    %104 = vector.broadcast %103 : vector<2x16x1xf32> to vector<2x16x16xf32>
    %105 = arith.subf %101, %104 : vector<2x16x16xf32>
    %106 = math.exp %105 : vector<2x16x16xf32>
    %cst_37 = arith.constant dense<0.000000e+00> : vector<2x16xf32>
    %107 = vector.multi_reduction <add>, %106, %cst_37 [2] : vector<2x16x16xf32> to vector<2x16xf32>
    %108 = vector.shape_cast %107 : vector<2x16xf32> to vector<2x16x1xf32>
    %109 = tpu.reciprocal %108 {approx = true} : vector<2x16x1xf32> -> vector<2x16x1xf32>
    %110 = vector.broadcast %109 : vector<2x16x1xf32> to vector<2x16x16xf32>
    %111 = arith.mulf %106, %110 : vector<2x16x16xf32>
    "tpu.trace_start"() <{level = 10 : i32, message = "bqk,bkd->bqd"}> : () -> ()
    %cst_38 = arith.constant dense<0.000000e+00> : vector<2x16x8xf32>
    %112 = tpu.matmul %111, %100, %cst_38 {dimension_numbers = #tpu.dot_dimension_numbers<[2], [1], [1], [2], [0, 0, 0, 1, 1, 2], [0], [0]>} : vector<2x16x16xf32>, vector<2x16x8xf32>, vector<2x16x8xf32> -> vector<2x16x8xf32>
    "tpu.trace_stop"() : () -> ()
    %113 = vector.shape_cast %112 : vector<2x16x8xf32> to vector<32x8xf32>
    %114 = vector.extract_strided_slice %94 {offsets = [0, 8], sizes = [32, 8], strides = [1, 1]} : vector<32x96xf32> to vector<32x8xf32>
    %115 = vector.shape_cast %114 : vector<32x8xf32> to vector<2x16x8xf32>
    %116 = vector.extract_strided_slice %94 {offsets = [0, 40], sizes = [32, 8], strides = [1, 1]} : vector<32x96xf32> to vector<32x8xf32>
    %117 = vector.shape_cast %116 : vector<32x8xf32> to vector<2x16x8xf32>
    %118 = vector.extract_strided_slice %94 {offsets = [0, 72], sizes = [32, 8], strides = [1, 1]} : vector<32x96xf32> to vector<32x8xf32>
    %119 = vector.shape_cast %118 : vector<32x8xf32> to vector<2x16x8xf32>
    "tpu.trace_start"() <{level = 10 : i32, message = "bqd,bkd->bqk"}> : () -> ()
    %cst_39 = arith.constant dense<0.000000e+00> : vector<2x16x16xf32>
    %120 = tpu.matmul %115, %117, %cst_39 {dimension_numbers = #tpu.dot_dimension_numbers<[2], [2], [1], [1], [0, 0, 0, 1, 1, 1], [0], [0]>} : vector<2x16x8xf32>, vector<2x16x8xf32>, vector<2x16x16xf32> -> vector<2x16x16xf32>
    "tpu.trace_stop"() : () -> ()
    %cst_40 = arith.constant dense<0xFF800000> : vector<2x16xf32>
    %121 = vector.multi_reduction <maximumf>, %120, %cst_40 [2] : vector<2x16x16xf32> to vector<2x16xf32>
    %122 = vector.shape_cast %121 : vector<2x16xf32> to vector<2x16x1xf32>
    %123 = vector.broadcast %122 : vector<2x16x1xf32> to vector<2x16x16xf32>
    %124 = arith.subf %120, %123 : vector<2x16x16xf32>
    %125 = math.exp %124 : vector<2x16x16xf32>
    %cst_41 = arith.constant dense<0.000000e+00> : vector<2x16xf32>
    %126 = vector.multi_reduction <add>, %125, %cst_41 [2] : vector<2x16x16xf32> to vector<2x16xf32>
    %127 = vector.shape_cast %126 : vector<2x16xf32> to vector<2x16x1xf32>
    %128 = tpu.reciprocal %127 {approx = true} : vector<2x16x1xf32> -> vector<2x16x1xf32>
    %129 = vector.broadcast %128 : vector<2x16x1xf32> to vector<2x16x16xf32>
    %130 = arith.mulf %125, %129 : vector<2x16x16xf32>
    "tpu.trace_start"() <{level = 10 : i32, message = "bqk,bkd->bqd"}> : () -> ()
    %cst_42 = arith.constant dense<0.000000e+00> : vector<2x16x8xf32>
    %131 = tpu.matmul %130, %119, %cst_42 {dimension_numbers = #tpu.dot_dimension_numbers<[2], [1], [1], [2], [0, 0, 0, 1, 1, 2], [0], [0]>} : vector<2x16x16xf32>, vector<2x16x8xf32>, vector<2x16x8xf32> -> vector<2x16x8xf32>
    "tpu.trace_stop"() : () -> ()
    %132 = vector.shape_cast %131 : vector<2x16x8xf32> to vector<32x8xf32>
    %133 = vector.extract_strided_slice %94 {offsets = [0, 16], sizes = [32, 8], strides = [1, 1]} : vector<32x96xf32> to vector<32x8xf32>
    %134 = vector.shape_cast %133 : vector<32x8xf32> to vector<2x16x8xf32>
    %135 = vector.extract_strided_slice %94 {offsets = [0, 48], sizes = [32, 8], strides = [1, 1]} : vector<32x96xf32> to vector<32x8xf32>
    %136 = vector.shape_cast %135 : vector<32x8xf32> to vector<2x16x8xf32>
    %137 = vector.extract_strided_slice %94 {offsets = [0, 80], sizes = [32, 8], strides = [1, 1]} : vector<32x96xf32> to vector<32x8xf32>
    %138 = vector.shape_cast %137 : vector<32x8xf32> to vector<2x16x8xf32>
    "tpu.trace_start"() <{level = 10 : i32, message = "bqd,bkd->bqk"}> : () -> ()
    %cst_43 = arith.constant dense<0.000000e+00> : vector<2x16x16xf32>
    %139 = tpu.matmul %134, %136, %cst_43 {dimension_numbers = #tpu.dot_dimension_numbers<[2], [2], [1], [1], [0, 0, 0, 1, 1, 1], [0], [0]>} : vector<2x16x8xf32>, vector<2x16x8xf32>, vector<2x16x16xf32> -> vector<2x16x16xf32>
    "tpu.trace_stop"() : () -> ()
    %cst_44 = arith.constant dense<0xFF800000> : vector<2x16xf32>
    %140 = vector.multi_reduction <maximumf>, %139, %cst_44 [2] : vector<2x16x16xf32> to vector<2x16xf32>
    %141 = vector.shape_cast %140 : vector<2x16xf32> to vector<2x16x1xf32>
    %142 = vector.broadcast %141 : vector<2x16x1xf32> to vector<2x16x16xf32>
    %143 = arith.subf %139, %142 : vector<2x16x16xf32>
    %144 = math.exp %143 : vector<2x16x16xf32>
    %cst_45 = arith.constant dense<0.000000e+00> : vector<2x16xf32>
    %145 = vector.multi_reduction <add>, %144, %cst_45 [2] : vector<2x16x16xf32> to vector<2x16xf32>
    %146 = vector.shape_cast %145 : vector<2x16xf32> to vector<2x16x1xf32>
    %147 = tpu.reciprocal %146 {approx = true} : vector<2x16x1xf32> -> vector<2x16x1xf32>
    %148 = vector.broadcast %147 : vector<2x16x1xf32> to vector<2x16x16xf32>
    %149 = arith.mulf %144, %148 : vector<2x16x16xf32>
    "tpu.trace_start"() <{level = 10 : i32, message = "bqk,bkd->bqd"}> : () -> ()
    %cst_46 = arith.constant dense<0.000000e+00> : vector<2x16x8xf32>
    %150 = tpu.matmul %149, %138, %cst_46 {dimension_numbers = #tpu.dot_dimension_numbers<[2], [1], [1], [2], [0, 0, 0, 1, 1, 2], [0], [0]>} : vector<2x16x16xf32>, vector<2x16x8xf32>, vector<2x16x8xf32> -> vector<2x16x8xf32>
    "tpu.trace_stop"() : () -> ()
    %151 = vector.shape_cast %150 : vector<2x16x8xf32> to vector<32x8xf32>
    %152 = vector.extract_strided_slice %94 {offsets = [0, 24], sizes = [32, 8], strides = [1, 1]} : vector<32x96xf32> to vector<32x8xf32>
    %153 = vector.shape_cast %152 : vector<32x8xf32> to vector<2x16x8xf32>
    %154 = vector.extract_strided_slice %94 {offsets = [0, 56], sizes = [32, 8], strides = [1, 1]} : vector<32x96xf32> to vector<32x8xf32>
    %155 = vector.shape_cast %154 : vector<32x8xf32> to vector<2x16x8xf32>
    %156 = vector.extract_strided_slice %94 {offsets = [0, 88], sizes = [32, 8], strides = [1, 1]} : vector<32x96xf32> to vector<32x8xf32>
    %157 = vector.shape_cast %156 : vector<32x8xf32> to vector<2x16x8xf32>
    "tpu.trace_start"() <{level = 10 : i32, message = "bqd,bkd->bqk"}> : () -> ()
    %cst_47 = arith.constant dense<0.000000e+00> : vector<2x16x16xf32>
    %158 = tpu.matmul %153, %155, %cst_47 {dimension_numbers = #tpu.dot_dimension_numbers<[2], [2], [1], [1], [0, 0, 0, 1, 1, 1], [0], [0]>} : vector<2x16x8xf32>, vector<2x16x8xf32>, vector<2x16x16xf32> -> vector<2x16x16xf32>
    "tpu.trace_stop"() : () -> ()
    %cst_48 = arith.constant dense<0xFF800000> : vector<2x16xf32>
    %159 = vector.multi_reduction <maximumf>, %158, %cst_48 [2] : vector<2x16x16xf32> to vector<2x16xf32>
    %160 = vector.shape_cast %159 : vector<2x16xf32> to vector<2x16x1xf32>
    %161 = vector.broadcast %160 : vector<2x16x1xf32> to vector<2x16x16xf32>
    %162 = arith.subf %158, %161 : vector<2x16x16xf32>
    %163 = math.exp %162 : vector<2x16x16xf32>
    %cst_49 = arith.constant dense<0.000000e+00> : vector<2x16xf32>
    %164 = vector.multi_reduction <add>, %163, %cst_49 [2] : vector<2x16x16xf32> to vector<2x16xf32>
    %165 = vector.shape_cast %164 : vector<2x16xf32> to vector<2x16x1xf32>
    %166 = tpu.reciprocal %165 {approx = true} : vector<2x16x1xf32> -> vector<2x16x1xf32>
    %167 = vector.broadcast %166 : vector<2x16x1xf32> to vector<2x16x16xf32>
    %168 = arith.mulf %163, %167 : vector<2x16x16xf32>
    "tpu.trace_start"() <{level = 10 : i32, message = "bqk,bkd->bqd"}> : () -> ()
    %cst_50 = arith.constant dense<0.000000e+00> : vector<2x16x8xf32>
    %169 = tpu.matmul %168, %157, %cst_50 {dimension_numbers = #tpu.dot_dimension_numbers<[2], [1], [1], [2], [0, 0, 0, 1, 1, 2], [0], [0]>} : vector<2x16x16xf32>, vector<2x16x8xf32>, vector<2x16x8xf32> -> vector<2x16x8xf32>
    "tpu.trace_stop"() : () -> ()
    %170 = vector.shape_cast %169 : vector<2x16x8xf32> to vector<32x8xf32>
    %171 = tpu.concatenate %113, %132, %151, %170 in 1 : vector<32x8xf32>, vector<32x8xf32>, vector<32x8xf32>, vector<32x8xf32> -> vector<32x32xf32>
    %c192_51 = arith.constant 192 : index
    %c64_52 = arith.constant 64 : index
    %172 = vector.load %arg3[%c192_51, %c64_52] : memref<464x128xf32, #tpu.memory_space<vmem>>, vector<32x32xf32>
    %cst_53 = arith.constant dense<0.000000e+00> : vector<32x32xf32>
    %173 = tpu.matmul %171, %172, %cst_53 {dimension_numbers = #tpu.dot_dimension_numbers<[1], [0], [0], [1], [0, 0, 1, 1], [], []>} : vector<32x32xf32>, vector<32x32xf32>, vector<32x32xf32> -> vector<32x32xf32>
    %c291 = arith.constant 291 : index
    %c0_54 = arith.constant 0 : index
    %174 = vector.load %arg3[%c291, %c0_54] : memref<464x128xf32, #tpu.memory_space<vmem>>, vector<1x32xf32>
    %175 = vector.broadcast %174 : vector<1x32xf32> to vector<32x32xf32>
    %176 = arith.addf %173, %175 : vector<32x32xf32>
    %177 = vector.shape_cast %176 : vector<32x32xf32> to vector<2x16x32xf32>
    %178 = vector.broadcast %60 : vector<2x1x32xf32> to vector<2x16x32xf32>
    %179 = arith.mulf %178, %177 : vector<2x16x32xf32>
    %180 = arith.addf %22, %179 : vector<2x16x32xf32>
    %cst_55 = arith.constant dense<0.000000e+00> : vector<2x16xf32>
    %181 = vector.multi_reduction <add>, %180, %cst_55 [2] : vector<2x16x32xf32> to vector<2x16xf32>
    %182 = vector.shape_cast %181 : vector<2x16xf32> to vector<2x16x1xf32>
    %cst_56 = arith.constant 3.200000e+01 : f32
    %183 = vector.broadcast %cst_56 : f32 to vector<2x16x1xf32>
    %184 = arith.divf %182, %183 : vector<2x16x1xf32>
    %185 = vector.broadcast %184 : vector<2x16x1xf32> to vector<2x16x32xf32>
    %186 = arith.subf %180, %185 : vector<2x16x32xf32>
    %187 = arith.mulf %186, %186 : vector<2x16x32xf32>
    %cst_57 = arith.constant dense<0.000000e+00> : vector<2x16xf32>
    %188 = vector.multi_reduction <add>, %187, %cst_57 [2] : vector<2x16x32xf32> to vector<2x16xf32>
    %189 = vector.shape_cast %188 : vector<2x16xf32> to vector<2x16x1xf32>
    %cst_58 = arith.constant 3.200000e+01 : f32
    %190 = vector.broadcast %cst_58 : f32 to vector<2x16x1xf32>
    %191 = arith.divf %189, %190 : vector<2x16x1xf32>
    %192 = vector.broadcast %184 : vector<2x16x1xf32> to vector<2x16x32xf32>
    %193 = arith.subf %180, %192 : vector<2x16x32xf32>
    %cst_59 = arith.constant 9.99999997E-7 : f32
    %194 = vector.broadcast %cst_59 : f32 to vector<2x16x1xf32>
    %195 = arith.addf %191, %194 : vector<2x16x1xf32>
    %196 = math.rsqrt %195 : vector<2x16x1xf32>
    %197 = vector.broadcast %196 : vector<2x16x1xf32> to vector<2x16x32xf32>
    %198 = arith.mulf %193, %197 : vector<2x16x32xf32>
    %199 = vector.broadcast %64 : vector<2x1x32xf32> to vector<2x16x32xf32>
    %200 = arith.mulf %198, %199 : vector<2x16x32xf32>
    %201 = vector.broadcast %62 : vector<2x1x32xf32> to vector<2x16x32xf32>
    %202 = arith.addf %200, %201 : vector<2x16x32xf32>
    %203 = vector.shape_cast %202 : vector<2x16x32xf32> to vector<32x32xf32>
    %c256 = arith.constant 256 : index
    %c0_60 = arith.constant 0 : index
    %204 = vector.load %arg3[%c256, %c0_60] : memref<464x128xf32, #tpu.memory_space<vmem>>, vector<32x128xf32>
    %cst_61 = arith.constant dense<0.000000e+00> : vector<32x128xf32>
    %205 = tpu.matmul %203, %204, %cst_61 {dimension_numbers = #tpu.dot_dimension_numbers<[1], [0], [0], [1], [0, 0, 1, 1], [], []>} : vector<32x32xf32>, vector<32x128xf32>, vector<32x128xf32> -> vector<32x128xf32>
    %c292 = arith.constant 292 : index
    %c0_62 = arith.constant 0 : index
    %206 = vector.load %arg3[%c292, %c0_62] : memref<464x128xf32, #tpu.memory_space<vmem>>, vector<1x128xf32>
    %207 = vector.broadcast %206 : vector<1x128xf32> to vector<32x128xf32>
    %208 = arith.addf %205, %207 : vector<32x128xf32>
    %209 = arith.mulf %208, %208 : vector<32x128xf32>
    %210 = arith.mulf %208, %209 : vector<32x128xf32>
    %cst_63 = arith.constant 4.471500e-02 : f32
    %211 = vector.broadcast %cst_63 : f32 to vector<32x128xf32>
    %212 = arith.mulf %211, %210 : vector<32x128xf32>
    %213 = arith.addf %208, %212 : vector<32x128xf32>
    %cst_64 = arith.constant 0.797884583 : f32
    %214 = vector.broadcast %cst_64 : f32 to vector<32x128xf32>
    %215 = arith.mulf %214, %213 : vector<32x128xf32>
    %216 = math.tanh %215 : vector<32x128xf32>
    %cst_65 = arith.constant 1.000000e+00 : f32
    %217 = vector.broadcast %cst_65 : f32 to vector<32x128xf32>
    %218 = arith.addf %217, %216 : vector<32x128xf32>
    %cst_66 = arith.constant 5.000000e-01 : f32
    %219 = vector.broadcast %cst_66 : f32 to vector<32x128xf32>
    %220 = arith.mulf %219, %218 : vector<32x128xf32>
    %221 = arith.mulf %208, %220 : vector<32x128xf32>
    %c32_67 = arith.constant 32 : index
    %c0_68 = arith.constant 0 : index
    %222 = vector.load %arg3[%c32_67, %c0_68] : memref<464x128xf32, #tpu.memory_space<vmem>>, vector<128x32xf32>
    %cst_69 = arith.constant dense<0.000000e+00> : vector<32x32xf32>
    %223 = tpu.matmul %221, %222, %cst_69 {dimension_numbers = #tpu.dot_dimension_numbers<[1], [0], [0], [1], [0, 0, 1, 1], [], []>} : vector<32x128xf32>, vector<128x32xf32>, vector<32x32xf32> -> vector<32x32xf32>
    %c293 = arith.constant 293 : index
    %c0_70 = arith.constant 0 : index
    %224 = vector.load %arg3[%c293, %c0_70] : memref<464x128xf32, #tpu.memory_space<vmem>>, vector<1x32xf32>
    %225 = vector.broadcast %224 : vector<1x32xf32> to vector<32x32xf32>
    %226 = arith.addf %223, %225 : vector<32x32xf32>
    %227 = vector.shape_cast %226 : vector<32x32xf32> to vector<2x16x32xf32>
    %228 = vector.broadcast %66 : vector<2x1x32xf32> to vector<2x16x32xf32>
    %229 = arith.mulf %228, %227 : vector<2x16x32xf32>
    %230 = arith.addf %180, %229 : vector<2x16x32xf32>
    %c296 = arith.constant 296 : index
    %c0_71 = arith.constant 0 : index
    %231 = vector.load %arg3[%c296, %c0_71] : memref<464x128xf32, #tpu.memory_space<vmem>>, vector<32x128xf32>
    %cst_72 = arith.constant dense<0.000000e+00> : vector<2x128xf32>
    %232 = tpu.matmul %44, %231, %cst_72 {dimension_numbers = #tpu.dot_dimension_numbers<[1], [0], [0], [1], [0, 0, 1, 1], [], []>} : vector<2x32xf32>, vector<32x128xf32>, vector<2x128xf32> -> vector<2x128xf32>
    %c424 = arith.constant 424 : index
    %c0_73 = arith.constant 0 : index
    %233 = vector.load %arg3[%c424, %c0_73] : memref<464x128xf32, #tpu.memory_space<vmem>>, vector<1x128xf32>
    %234 = vector.broadcast %233 : vector<1x128xf32> to vector<2x128xf32>
    %235 = arith.addf %232, %234 : vector<2x128xf32>
    %c328 = arith.constant 328 : index
    %c0_74 = arith.constant 0 : index
    %236 = vector.load %arg3[%c328, %c0_74] : memref<464x128xf32, #tpu.memory_space<vmem>>, vector<32x64xf32>
    %cst_75 = arith.constant dense<0.000000e+00> : vector<2x64xf32>
    %237 = tpu.matmul %44, %236, %cst_75 {dimension_numbers = #tpu.dot_dimension_numbers<[1], [0], [0], [1], [0, 0, 1, 1], [], []>} : vector<2x32xf32>, vector<32x64xf32>, vector<2x64xf32> -> vector<2x64xf32>
    %c425 = arith.constant 425 : index
    %c0_76 = arith.constant 0 : index
    %238 = vector.load %arg3[%c425, %c0_76] : memref<464x128xf32, #tpu.memory_space<vmem>>, vector<1x64xf32>
    %239 = vector.broadcast %238 : vector<1x64xf32> to vector<2x64xf32>
    %240 = arith.addf %237, %239 : vector<2x64xf32>
    %241 = vector.extract_strided_slice %235 {offsets = [0, 0], sizes = [2, 32], strides = [1, 1]} : vector<2x128xf32> to vector<2x32xf32>
    %242 = vector.shape_cast %241 : vector<2x32xf32> to vector<2x1x32xf32>
    %243 = vector.extract_strided_slice %235 {offsets = [0, 32], sizes = [2, 32], strides = [1, 1]} : vector<2x128xf32> to vector<2x32xf32>
    %244 = vector.shape_cast %243 : vector<2x32xf32> to vector<2x1x32xf32>
    %245 = vector.extract_strided_slice %235 {offsets = [0, 64], sizes = [2, 32], strides = [1, 1]} : vector<2x128xf32> to vector<2x32xf32>
    %246 = vector.shape_cast %245 : vector<2x32xf32> to vector<2x1x32xf32>
    %247 = vector.extract_strided_slice %235 {offsets = [0, 96], sizes = [2, 32], strides = [1, 1]} : vector<2x128xf32> to vector<2x32xf32>
    %248 = vector.shape_cast %247 : vector<2x32xf32> to vector<2x1x32xf32>
    %249 = vector.extract_strided_slice %240 {offsets = [0, 0], sizes = [2, 32], strides = [1, 1]} : vector<2x64xf32> to vector<2x32xf32>
    %250 = vector.shape_cast %249 : vector<2x32xf32> to vector<2x1x32xf32>
    %251 = vector.extract_strided_slice %240 {offsets = [0, 32], sizes = [2, 32], strides = [1, 1]} : vector<2x64xf32> to vector<2x32xf32>
    %252 = vector.shape_cast %251 : vector<2x32xf32> to vector<2x1x32xf32>
    %cst_77 = arith.constant dense<0.000000e+00> : vector<2x16xf32>
    %253 = vector.multi_reduction <add>, %230, %cst_77 [2] : vector<2x16x32xf32> to vector<2x16xf32>
    %254 = vector.shape_cast %253 : vector<2x16xf32> to vector<2x16x1xf32>
    %cst_78 = arith.constant 3.200000e+01 : f32
    %255 = vector.broadcast %cst_78 : f32 to vector<2x16x1xf32>
    %256 = arith.divf %254, %255 : vector<2x16x1xf32>
    %257 = vector.broadcast %256 : vector<2x16x1xf32> to vector<2x16x32xf32>
    %258 = arith.subf %230, %257 : vector<2x16x32xf32>
    %259 = arith.mulf %258, %258 : vector<2x16x32xf32>
    %cst_79 = arith.constant dense<0.000000e+00> : vector<2x16xf32>
    %260 = vector.multi_reduction <add>, %259, %cst_79 [2] : vector<2x16x32xf32> to vector<2x16xf32>
    %261 = vector.shape_cast %260 : vector<2x16xf32> to vector<2x16x1xf32>
    %cst_80 = arith.constant 3.200000e+01 : f32
    %262 = vector.broadcast %cst_80 : f32 to vector<2x16x1xf32>
    %263 = arith.divf %261, %262 : vector<2x16x1xf32>
    %264 = vector.broadcast %256 : vector<2x16x1xf32> to vector<2x16x32xf32>
    %265 = arith.subf %230, %264 : vector<2x16x32xf32>
    %cst_81 = arith.constant 9.99999997E-7 : f32
    %266 = vector.broadcast %cst_81 : f32 to vector<2x16x1xf32>
    %267 = arith.addf %263, %266 : vector<2x16x1xf32>
    %268 = math.rsqrt %267 : vector<2x16x1xf32>
    %269 = vector.broadcast %268 : vector<2x16x1xf32> to vector<2x16x32xf32>
    %270 = arith.mulf %265, %269 : vector<2x16x32xf32>
    %271 = vector.broadcast %244 : vector<2x1x32xf32> to vector<2x16x32xf32>
    %272 = arith.mulf %270, %271 : vector<2x16x32xf32>
    %273 = vector.broadcast %242 : vector<2x1x32xf32> to vector<2x16x32xf32>
    %274 = arith.addf %272, %273 : vector<2x16x32xf32>
    %275 = vector.shape_cast %274 : vector<2x16x32xf32> to vector<32x32xf32>
    %c360 = arith.constant 360 : index
    %c0_82 = arith.constant 0 : index
    %276 = vector.load %arg3[%c360, %c0_82] : memref<464x128xf32, #tpu.memory_space<vmem>>, vector<32x96xf32>
    %cst_83 = arith.constant dense<0.000000e+00> : vector<32x96xf32>
    %277 = tpu.matmul %275, %276, %cst_83 {dimension_numbers = #tpu.dot_dimension_numbers<[1], [0], [0], [1], [0, 0, 1, 1], [], []>} : vector<32x32xf32>, vector<32x96xf32>, vector<32x96xf32> -> vector<32x96xf32>
    %c426 = arith.constant 426 : index
    %c0_84 = arith.constant 0 : index
    %278 = vector.load %arg3[%c426, %c0_84] : memref<464x128xf32, #tpu.memory_space<vmem>>, vector<1x96xf32>
    %279 = vector.broadcast %278 : vector<1x96xf32> to vector<32x96xf32>
    %280 = arith.addf %277, %279 : vector<32x96xf32>
    %281 = vector.extract_strided_slice %280 {offsets = [0, 0], sizes = [32, 8], strides = [1, 1]} : vector<32x96xf32> to vector<32x8xf32>
    %282 = vector.shape_cast %281 : vector<32x8xf32> to vector<2x16x8xf32>
    %283 = vector.extract_strided_slice %280 {offsets = [0, 32], sizes = [32, 8], strides = [1, 1]} : vector<32x96xf32> to vector<32x8xf32>
    %284 = vector.shape_cast %283 : vector<32x8xf32> to vector<2x16x8xf32>
    %285 = vector.extract_strided_slice %280 {offsets = [0, 64], sizes = [32, 8], strides = [1, 1]} : vector<32x96xf32> to vector<32x8xf32>
    %286 = vector.shape_cast %285 : vector<32x8xf32> to vector<2x16x8xf32>
    "tpu.trace_start"() <{level = 10 : i32, message = "bqd,bkd->bqk"}> : () -> ()
    %cst_85 = arith.constant dense<0.000000e+00> : vector<2x16x16xf32>
    %287 = tpu.matmul %282, %284, %cst_85 {dimension_numbers = #tpu.dot_dimension_numbers<[2], [2], [1], [1], [0, 0, 0, 1, 1, 1], [0], [0]>} : vector<2x16x8xf32>, vector<2x16x8xf32>, vector<2x16x16xf32> -> vector<2x16x16xf32>
    "tpu.trace_stop"() : () -> ()
    %cst_86 = arith.constant dense<0xFF800000> : vector<2x16xf32>
    %288 = vector.multi_reduction <maximumf>, %287, %cst_86 [2] : vector<2x16x16xf32> to vector<2x16xf32>
    %289 = vector.shape_cast %288 : vector<2x16xf32> to vector<2x16x1xf32>
    %290 = vector.broadcast %289 : vector<2x16x1xf32> to vector<2x16x16xf32>
    %291 = arith.subf %287, %290 : vector<2x16x16xf32>
    %292 = math.exp %291 : vector<2x16x16xf32>
    %cst_87 = arith.constant dense<0.000000e+00> : vector<2x16xf32>
    %293 = vector.multi_reduction <add>, %292, %cst_87 [2] : vector<2x16x16xf32> to vector<2x16xf32>
    %294 = vector.shape_cast %293 : vector<2x16xf32> to vector<2x16x1xf32>
    %295 = tpu.reciprocal %294 {approx = true} : vector<2x16x1xf32> -> vector<2x16x1xf32>
    %296 = vector.broadcast %295 : vector<2x16x1xf32> to vector<2x16x16xf32>
    %297 = arith.mulf %292, %296 : vector<2x16x16xf32>
    "tpu.trace_start"() <{level = 10 : i32, message = "bqk,bkd->bqd"}> : () -> ()
    %cst_88 = arith.constant dense<0.000000e+00> : vector<2x16x8xf32>
    %298 = tpu.matmul %297, %286, %cst_88 {dimension_numbers = #tpu.dot_dimension_numbers<[2], [1], [1], [2], [0, 0, 0, 1, 1, 2], [0], [0]>} : vector<2x16x16xf32>, vector<2x16x8xf32>, vector<2x16x8xf32> -> vector<2x16x8xf32>
    "tpu.trace_stop"() : () -> ()
    %299 = vector.shape_cast %298 : vector<2x16x8xf32> to vector<32x8xf32>
    %300 = vector.extract_strided_slice %280 {offsets = [0, 8], sizes = [32, 8], strides = [1, 1]} : vector<32x96xf32> to vector<32x8xf32>
    %301 = vector.shape_cast %300 : vector<32x8xf32> to vector<2x16x8xf32>
    %302 = vector.extract_strided_slice %280 {offsets = [0, 40], sizes = [32, 8], strides = [1, 1]} : vector<32x96xf32> to vector<32x8xf32>
    %303 = vector.shape_cast %302 : vector<32x8xf32> to vector<2x16x8xf32>
    %304 = vector.extract_strided_slice %280 {offsets = [0, 72], sizes = [32, 8], strides = [1, 1]} : vector<32x96xf32> to vector<32x8xf32>
    %305 = vector.shape_cast %304 : vector<32x8xf32> to vector<2x16x8xf32>
    "tpu.trace_start"() <{level = 10 : i32, message = "bqd,bkd->bqk"}> : () -> ()
    %cst_89 = arith.constant dense<0.000000e+00> : vector<2x16x16xf32>
    %306 = tpu.matmul %301, %303, %cst_89 {dimension_numbers = #tpu.dot_dimension_numbers<[2], [2], [1], [1], [0, 0, 0, 1, 1, 1], [0], [0]>} : vector<2x16x8xf32>, vector<2x16x8xf32>, vector<2x16x16xf32> -> vector<2x16x16xf32>
    "tpu.trace_stop"() : () -> ()
    %cst_90 = arith.constant dense<0xFF800000> : vector<2x16xf32>
    %307 = vector.multi_reduction <maximumf>, %306, %cst_90 [2] : vector<2x16x16xf32> to vector<2x16xf32>
    %308 = vector.shape_cast %307 : vector<2x16xf32> to vector<2x16x1xf32>
    %309 = vector.broadcast %308 : vector<2x16x1xf32> to vector<2x16x16xf32>
    %310 = arith.subf %306, %309 : vector<2x16x16xf32>
    %311 = math.exp %310 : vector<2x16x16xf32>
    %cst_91 = arith.constant dense<0.000000e+00> : vector<2x16xf32>
    %312 = vector.multi_reduction <add>, %311, %cst_91 [2] : vector<2x16x16xf32> to vector<2x16xf32>
    %313 = vector.shape_cast %312 : vector<2x16xf32> to vector<2x16x1xf32>
    %314 = tpu.reciprocal %313 {approx = true} : vector<2x16x1xf32> -> vector<2x16x1xf32>
    %315 = vector.broadcast %314 : vector<2x16x1xf32> to vector<2x16x16xf32>
    %316 = arith.mulf %311, %315 : vector<2x16x16xf32>
    "tpu.trace_start"() <{level = 10 : i32, message = "bqk,bkd->bqd"}> : () -> ()
    %cst_92 = arith.constant dense<0.000000e+00> : vector<2x16x8xf32>
    %317 = tpu.matmul %316, %305, %cst_92 {dimension_numbers = #tpu.dot_dimension_numbers<[2], [1], [1], [2], [0, 0, 0, 1, 1, 2], [0], [0]>} : vector<2x16x16xf32>, vector<2x16x8xf32>, vector<2x16x8xf32> -> vector<2x16x8xf32>
    "tpu.trace_stop"() : () -> ()
    %318 = vector.shape_cast %317 : vector<2x16x8xf32> to vector<32x8xf32>
    %319 = vector.extract_strided_slice %280 {offsets = [0, 16], sizes = [32, 8], strides = [1, 1]} : vector<32x96xf32> to vector<32x8xf32>
    %320 = vector.shape_cast %319 : vector<32x8xf32> to vector<2x16x8xf32>
    %321 = vector.extract_strided_slice %280 {offsets = [0, 48], sizes = [32, 8], strides = [1, 1]} : vector<32x96xf32> to vector<32x8xf32>
    %322 = vector.shape_cast %321 : vector<32x8xf32> to vector<2x16x8xf32>
    %323 = vector.extract_strided_slice %280 {offsets = [0, 80], sizes = [32, 8], strides = [1, 1]} : vector<32x96xf32> to vector<32x8xf32>
    %324 = vector.shape_cast %323 : vector<32x8xf32> to vector<2x16x8xf32>
    "tpu.trace_start"() <{level = 10 : i32, message = "bqd,bkd->bqk"}> : () -> ()
    %cst_93 = arith.constant dense<0.000000e+00> : vector<2x16x16xf32>
    %325 = tpu.matmul %320, %322, %cst_93 {dimension_numbers = #tpu.dot_dimension_numbers<[2], [2], [1], [1], [0, 0, 0, 1, 1, 1], [0], [0]>} : vector<2x16x8xf32>, vector<2x16x8xf32>, vector<2x16x16xf32> -> vector<2x16x16xf32>
    "tpu.trace_stop"() : () -> ()
    %cst_94 = arith.constant dense<0xFF800000> : vector<2x16xf32>
    %326 = vector.multi_reduction <maximumf>, %325, %cst_94 [2] : vector<2x16x16xf32> to vector<2x16xf32>
    %327 = vector.shape_cast %326 : vector<2x16xf32> to vector<2x16x1xf32>
    %328 = vector.broadcast %327 : vector<2x16x1xf32> to vector<2x16x16xf32>
    %329 = arith.subf %325, %328 : vector<2x16x16xf32>
    %330 = math.exp %329 : vector<2x16x16xf32>
    %cst_95 = arith.constant dense<0.000000e+00> : vector<2x16xf32>
    %331 = vector.multi_reduction <add>, %330, %cst_95 [2] : vector<2x16x16xf32> to vector<2x16xf32>
    %332 = vector.shape_cast %331 : vector<2x16xf32> to vector<2x16x1xf32>
    %333 = tpu.reciprocal %332 {approx = true} : vector<2x16x1xf32> -> vector<2x16x1xf32>
    %334 = vector.broadcast %333 : vector<2x16x1xf32> to vector<2x16x16xf32>
    %335 = arith.mulf %330, %334 : vector<2x16x16xf32>
    "tpu.trace_start"() <{level = 10 : i32, message = "bqk,bkd->bqd"}> : () -> ()
    %cst_96 = arith.constant dense<0.000000e+00> : vector<2x16x8xf32>
    %336 = tpu.matmul %335, %324, %cst_96 {dimension_numbers = #tpu.dot_dimension_numbers<[2], [1], [1], [2], [0, 0, 0, 1, 1, 2], [0], [0]>} : vector<2x16x16xf32>, vector<2x16x8xf32>, vector<2x16x8xf32> -> vector<2x16x8xf32>
    "tpu.trace_stop"() : () -> ()
    %337 = vector.shape_cast %336 : vector<2x16x8xf32> to vector<32x8xf32>
    %338 = vector.extract_strided_slice %280 {offsets = [0, 24], sizes = [32, 8], strides = [1, 1]} : vector<32x96xf32> to vector<32x8xf32>
    %339 = vector.shape_cast %338 : vector<32x8xf32> to vector<2x16x8xf32>
    %340 = vector.extract_strided_slice %280 {offsets = [0, 56], sizes = [32, 8], strides = [1, 1]} : vector<32x96xf32> to vector<32x8xf32>
    %341 = vector.shape_cast %340 : vector<32x8xf32> to vector<2x16x8xf32>
    %342 = vector.extract_strided_slice %280 {offsets = [0, 88], sizes = [32, 8], strides = [1, 1]} : vector<32x96xf32> to vector<32x8xf32>
    %343 = vector.shape_cast %342 : vector<32x8xf32> to vector<2x16x8xf32>
    "tpu.trace_start"() <{level = 10 : i32, message = "bqd,bkd->bqk"}> : () -> ()
    %cst_97 = arith.constant dense<0.000000e+00> : vector<2x16x16xf32>
    %344 = tpu.matmul %339, %341, %cst_97 {dimension_numbers = #tpu.dot_dimension_numbers<[2], [2], [1], [1], [0, 0, 0, 1, 1, 1], [0], [0]>} : vector<2x16x8xf32>, vector<2x16x8xf32>, vector<2x16x16xf32> -> vector<2x16x16xf32>
    "tpu.trace_stop"() : () -> ()
    %cst_98 = arith.constant dense<0xFF800000> : vector<2x16xf32>
    %345 = vector.multi_reduction <maximumf>, %344, %cst_98 [2] : vector<2x16x16xf32> to vector<2x16xf32>
    %346 = vector.shape_cast %345 : vector<2x16xf32> to vector<2x16x1xf32>
    %347 = vector.broadcast %346 : vector<2x16x1xf32> to vector<2x16x16xf32>
    %348 = arith.subf %344, %347 : vector<2x16x16xf32>
    %349 = math.exp %348 : vector<2x16x16xf32>
    %cst_99 = arith.constant dense<0.000000e+00> : vector<2x16xf32>
    %350 = vector.multi_reduction <add>, %349, %cst_99 [2] : vector<2x16x16xf32> to vector<2x16xf32>
    %351 = vector.shape_cast %350 : vector<2x16xf32> to vector<2x16x1xf32>
    %352 = tpu.reciprocal %351 {approx = true} : vector<2x16x1xf32> -> vector<2x16x1xf32>
    %353 = vector.broadcast %352 : vector<2x16x1xf32> to vector<2x16x16xf32>
    %354 = arith.mulf %349, %353 : vector<2x16x16xf32>
    "tpu.trace_start"() <{level = 10 : i32, message = "bqk,bkd->bqd"}> : () -> ()
    %cst_100 = arith.constant dense<0.000000e+00> : vector<2x16x8xf32>
    %355 = tpu.matmul %354, %343, %cst_100 {dimension_numbers = #tpu.dot_dimension_numbers<[2], [1], [1], [2], [0, 0, 0, 1, 1, 2], [0], [0]>} : vector<2x16x16xf32>, vector<2x16x8xf32>, vector<2x16x8xf32> -> vector<2x16x8xf32>
    "tpu.trace_stop"() : () -> ()
    %356 = vector.shape_cast %355 : vector<2x16x8xf32> to vector<32x8xf32>
    %357 = tpu.concatenate %299, %318, %337, %356 in 1 : vector<32x8xf32>, vector<32x8xf32>, vector<32x8xf32>, vector<32x8xf32> -> vector<32x32xf32>
    %c328_101 = arith.constant 328 : index
    %c64_102 = arith.constant 64 : index
    %358 = vector.load %arg3[%c328_101, %c64_102] : memref<464x128xf32, #tpu.memory_space<vmem>>, vector<32x32xf32>
    %cst_103 = arith.constant dense<0.000000e+00> : vector<32x32xf32>
    %359 = tpu.matmul %357, %358, %cst_103 {dimension_numbers = #tpu.dot_dimension_numbers<[1], [0], [0], [1], [0, 0, 1, 1], [], []>} : vector<32x32xf32>, vector<32x32xf32>, vector<32x32xf32> -> vector<32x32xf32>
    %c427 = arith.constant 427 : index
    %c0_104 = arith.constant 0 : index
    %360 = vector.load %arg3[%c427, %c0_104] : memref<464x128xf32, #tpu.memory_space<vmem>>, vector<1x32xf32>
    %361 = vector.broadcast %360 : vector<1x32xf32> to vector<32x32xf32>
    %362 = arith.addf %359, %361 : vector<32x32xf32>
    %363 = vector.shape_cast %362 : vector<32x32xf32> to vector<2x16x32xf32>
    %364 = vector.broadcast %246 : vector<2x1x32xf32> to vector<2x16x32xf32>
    %365 = arith.mulf %364, %363 : vector<2x16x32xf32>
    %366 = arith.addf %230, %365 : vector<2x16x32xf32>
    %cst_105 = arith.constant dense<0.000000e+00> : vector<2x16xf32>
    %367 = vector.multi_reduction <add>, %366, %cst_105 [2] : vector<2x16x32xf32> to vector<2x16xf32>
    %368 = vector.shape_cast %367 : vector<2x16xf32> to vector<2x16x1xf32>
    %cst_106 = arith.constant 3.200000e+01 : f32
    %369 = vector.broadcast %cst_106 : f32 to vector<2x16x1xf32>
    %370 = arith.divf %368, %369 : vector<2x16x1xf32>
    %371 = vector.broadcast %370 : vector<2x16x1xf32> to vector<2x16x32xf32>
    %372 = arith.subf %366, %371 : vector<2x16x32xf32>
    %373 = arith.mulf %372, %372 : vector<2x16x32xf32>
    %cst_107 = arith.constant dense<0.000000e+00> : vector<2x16xf32>
    %374 = vector.multi_reduction <add>, %373, %cst_107 [2] : vector<2x16x32xf32> to vector<2x16xf32>
    %375 = vector.shape_cast %374 : vector<2x16xf32> to vector<2x16x1xf32>
    %cst_108 = arith.constant 3.200000e+01 : f32
    %376 = vector.broadcast %cst_108 : f32 to vector<2x16x1xf32>
    %377 = arith.divf %375, %376 : vector<2x16x1xf32>
    %378 = vector.broadcast %370 : vector<2x16x1xf32> to vector<2x16x32xf32>
    %379 = arith.subf %366, %378 : vector<2x16x32xf32>
    %cst_109 = arith.constant 9.99999997E-7 : f32
    %380 = vector.broadcast %cst_109 : f32 to vector<2x16x1xf32>
    %381 = arith.addf %377, %380 : vector<2x16x1xf32>
    %382 = math.rsqrt %381 : vector<2x16x1xf32>
    %383 = vector.broadcast %382 : vector<2x16x1xf32> to vector<2x16x32xf32>
    %384 = arith.mulf %379, %383 : vector<2x16x32xf32>
    %385 = vector.broadcast %250 : vector<2x1x32xf32> to vector<2x16x32xf32>
    %386 = arith.mulf %384, %385 : vector<2x16x32xf32>
    %387 = vector.broadcast %248 : vector<2x1x32xf32> to vector<2x16x32xf32>
    %388 = arith.addf %386, %387 : vector<2x16x32xf32>
    %389 = vector.shape_cast %388 : vector<2x16x32xf32> to vector<32x32xf32>
    %c392 = arith.constant 392 : index
    %c0_110 = arith.constant 0 : index
    %390 = vector.load %arg3[%c392, %c0_110] : memref<464x128xf32, #tpu.memory_space<vmem>>, vector<32x128xf32>
    %cst_111 = arith.constant dense<0.000000e+00> : vector<32x128xf32>
    %391 = tpu.matmul %389, %390, %cst_111 {dimension_numbers = #tpu.dot_dimension_numbers<[1], [0], [0], [1], [0, 0, 1, 1], [], []>} : vector<32x32xf32>, vector<32x128xf32>, vector<32x128xf32> -> vector<32x128xf32>
    %c428 = arith.constant 428 : index
    %c0_112 = arith.constant 0 : index
    %392 = vector.load %arg3[%c428, %c0_112] : memref<464x128xf32, #tpu.memory_space<vmem>>, vector<1x128xf32>
    %393 = vector.broadcast %392 : vector<1x128xf32> to vector<32x128xf32>
    %394 = arith.addf %391, %393 : vector<32x128xf32>
    %395 = arith.mulf %394, %394 : vector<32x128xf32>
    %396 = arith.mulf %394, %395 : vector<32x128xf32>
    %cst_113 = arith.constant 4.471500e-02 : f32
    %397 = vector.broadcast %cst_113 : f32 to vector<32x128xf32>
    %398 = arith.mulf %397, %396 : vector<32x128xf32>
    %399 = arith.addf %394, %398 : vector<32x128xf32>
    %cst_114 = arith.constant 0.797884583 : f32
    %400 = vector.broadcast %cst_114 : f32 to vector<32x128xf32>
    %401 = arith.mulf %400, %399 : vector<32x128xf32>
    %402 = math.tanh %401 : vector<32x128xf32>
    %cst_115 = arith.constant 1.000000e+00 : f32
    %403 = vector.broadcast %cst_115 : f32 to vector<32x128xf32>
    %404 = arith.addf %403, %402 : vector<32x128xf32>
    %cst_116 = arith.constant 5.000000e-01 : f32
    %405 = vector.broadcast %cst_116 : f32 to vector<32x128xf32>
    %406 = arith.mulf %405, %404 : vector<32x128xf32>
    %407 = arith.mulf %394, %406 : vector<32x128xf32>
    %c32_117 = arith.constant 32 : index
    %c32_118 = arith.constant 32 : index
    %408 = vector.load %arg3[%c32_117, %c32_118] : memref<464x128xf32, #tpu.memory_space<vmem>>, vector<128x32xf32>
    %cst_119 = arith.constant dense<0.000000e+00> : vector<32x32xf32>
    %409 = tpu.matmul %407, %408, %cst_119 {dimension_numbers = #tpu.dot_dimension_numbers<[1], [0], [0], [1], [0, 0, 1, 1], [], []>} : vector<32x128xf32>, vector<128x32xf32>, vector<32x32xf32> -> vector<32x32xf32>
    %c429 = arith.constant 429 : index
    %c0_120 = arith.constant 0 : index
    %410 = vector.load %arg3[%c429, %c0_120] : memref<464x128xf32, #tpu.memory_space<vmem>>, vector<1x32xf32>
    %411 = vector.broadcast %410 : vector<1x32xf32> to vector<32x32xf32>
    %412 = arith.addf %409, %411 : vector<32x32xf32>
    %413 = vector.shape_cast %412 : vector<32x32xf32> to vector<2x16x32xf32>
    %414 = vector.broadcast %252 : vector<2x1x32xf32> to vector<2x16x32xf32>
    %415 = arith.mulf %414, %413 : vector<2x16x32xf32>
    %416 = arith.addf %366, %415 : vector<2x16x32xf32>
    %c432 = arith.constant 432 : index
    %c0_121 = arith.constant 0 : index
    %417 = vector.load %arg3[%c432, %c0_121] : memref<464x128xf32, #tpu.memory_space<vmem>>, vector<32x64xf32>
    %cst_122 = arith.constant dense<0.000000e+00> : vector<2x64xf32>
    %418 = tpu.matmul %44, %417, %cst_122 {dimension_numbers = #tpu.dot_dimension_numbers<[1], [0], [0], [1], [0, 0, 1, 1], [], []>} : vector<2x32xf32>, vector<32x64xf32>, vector<2x64xf32> -> vector<2x64xf32>
    %c29 = arith.constant 29 : index
    %c0_123 = arith.constant 0 : index
    %419 = vector.load %arg3[%c29, %c0_123] : memref<464x128xf32, #tpu.memory_space<vmem>>, vector<1x64xf32>
    %420 = vector.broadcast %419 : vector<1x64xf32> to vector<2x64xf32>
    %421 = arith.addf %418, %420 : vector<2x64xf32>
    %422 = vector.extract_strided_slice %421 {offsets = [0, 0], sizes = [2, 32], strides = [1, 1]} : vector<2x64xf32> to vector<2x32xf32>
    %423 = vector.shape_cast %422 : vector<2x32xf32> to vector<2x1x32xf32>
    %424 = vector.extract_strided_slice %421 {offsets = [0, 32], sizes = [2, 32], strides = [1, 1]} : vector<2x64xf32> to vector<2x32xf32>
    %425 = vector.shape_cast %424 : vector<2x32xf32> to vector<2x1x32xf32>
    %cst_124 = arith.constant dense<0.000000e+00> : vector<2x16xf32>
    %426 = vector.multi_reduction <add>, %416, %cst_124 [2] : vector<2x16x32xf32> to vector<2x16xf32>
    %427 = vector.shape_cast %426 : vector<2x16xf32> to vector<2x16x1xf32>
    %cst_125 = arith.constant 3.200000e+01 : f32
    %428 = vector.broadcast %cst_125 : f32 to vector<2x16x1xf32>
    %429 = arith.divf %427, %428 : vector<2x16x1xf32>
    %430 = vector.broadcast %429 : vector<2x16x1xf32> to vector<2x16x32xf32>
    %431 = arith.subf %416, %430 : vector<2x16x32xf32>
    %432 = arith.mulf %431, %431 : vector<2x16x32xf32>
    %cst_126 = arith.constant dense<0.000000e+00> : vector<2x16xf32>
    %433 = vector.multi_reduction <add>, %432, %cst_126 [2] : vector<2x16x32xf32> to vector<2x16xf32>
    %434 = vector.shape_cast %433 : vector<2x16xf32> to vector<2x16x1xf32>
    %cst_127 = arith.constant 3.200000e+01 : f32
    %435 = vector.broadcast %cst_127 : f32 to vector<2x16x1xf32>
    %436 = arith.divf %434, %435 : vector<2x16x1xf32>
    %437 = vector.broadcast %429 : vector<2x16x1xf32> to vector<2x16x32xf32>
    %438 = arith.subf %416, %437 : vector<2x16x32xf32>
    %cst_128 = arith.constant 9.99999997E-7 : f32
    %439 = vector.broadcast %cst_128 : f32 to vector<2x16x1xf32>
    %440 = arith.addf %436, %439 : vector<2x16x1xf32>
    %441 = math.rsqrt %440 : vector<2x16x1xf32>
    %442 = vector.broadcast %441 : vector<2x16x1xf32> to vector<2x16x32xf32>
    %443 = arith.mulf %438, %442 : vector<2x16x32xf32>
    %444 = vector.broadcast %425 : vector<2x1x32xf32> to vector<2x16x32xf32>
    %445 = arith.mulf %443, %444 : vector<2x16x32xf32>
    %446 = vector.broadcast %423 : vector<2x1x32xf32> to vector<2x16x32xf32>
    %447 = arith.addf %445, %446 : vector<2x16x32xf32>
    %448 = vector.shape_cast %447 : vector<2x16x32xf32> to vector<32x32xf32>
    %c432_129 = arith.constant 432 : index
    %c64_130 = arith.constant 64 : index
    %449 = vector.load %arg3[%c432_129, %c64_130] : memref<464x128xf32, #tpu.memory_space<vmem>>, vector<32x8xf32>
    %cst_131 = arith.constant dense<0.000000e+00> : vector<32x8xf32>
    %450 = tpu.matmul %448, %449, %cst_131 {dimension_numbers = #tpu.dot_dimension_numbers<[1], [0], [0], [1], [0, 0, 1, 1], [], []>} : vector<32x32xf32>, vector<32x8xf32>, vector<32x8xf32> -> vector<32x8xf32>
    %c30 = arith.constant 30 : index
    %c0_132 = arith.constant 0 : index
    %451 = vector.load %arg3[%c30, %c0_132] : memref<464x128xf32, #tpu.memory_space<vmem>>, vector<1x8xf32>
    %452 = vector.broadcast %451 : vector<1x8xf32> to vector<32x8xf32>
    %453 = arith.addf %450, %452 : vector<32x8xf32>
    %454 = vector.shape_cast %453 : vector<32x8xf32> to vector<2x16x8xf32>
    %c0_133 = arith.constant 0 : index
    %c0_134 = arith.constant 0 : index
    %c0_135 = arith.constant 0 : index
    %455 = vector.load %arg4[%c0_133, %c0_134, %c0_135] : memref<2x16x8xf32, #tpu.memory_space<vmem>>, vector<2x16x8xf32>
    tpu.vector_store %arg4[%c0_133, %c0_134, %c0_135], %454 {strides = array<i32>} : memref<2x16x8xf32, #tpu.memory_space<vmem>>, vector<2x16x8xf32>,
    return
  }
}

</mosaic_0001>

<bundles_post_ra>
// kernel: forward.1
= control target key start
LH: loop header
LB: loop body
LE: loop exit
PB: predicated region body
PF: predicated region fallthrough
CT: control target
= control target key end

     0   :  { %9 = vsyncpa [#allocation3], 0  ;;  %s7698_s15 = smov [#allocation2]   ;;  %s8733_s0 = inlined_call_operand.vmem [shape: f32[2,16,8], index: 0, kind: input, shape index: {}]   ;;  %s8734_s1 = inlined_call_operand.vmem [shape: f32[2,1], index: 1, kind: input, shape index: {}]   ;;  %s8735_s2 = inlined_call_operand.vmem [shape: f32[2,10], index: 2, kind: input, shape index: {}]   ;;  %s8736_s3 = inlined_call_operand.hbm [shape: f32[464,128], index: 3, kind: input, shape index: {}]   ;;  %s8737_s4 = inlined_call_operand.vmem [shape: f32[2,16,8], index: 4, kind: output, shape index: {}]  }
   0x1   :  { %s21_s16 = sshll.u32 %s7698_s15, 4  ;;  %s7674_s19 = scalar_lea.hbm %s8736_s3, 7424  ;;  %s22_s16 = int_to_ptr.vmem [resolvable:$true] %s21_s16 }
   0x2   :  { %p7675_p0 = scmp.ne.s32.totalorder %s8736_s3, %s7674_s19  ;;  %p7678_p1 = scmp.lt.u32.totalorder %s7674_s19, %s8736_s3 }
   0x4   :  { %p7680_p2 = pnand %p7678_p1, %p7675_p0 }
   0x6   :  { %7683 = shalt.err (!%p7680_p2)
}
   0x7   :  { %s7684_s24 = scalar_lea.vmem %s22_s16, 7424  ;;  %p7689_p4 = scmp.lt.s32.totalorder %s22_s16, %s22_s16 }
   0x8   :  { %p7685_p3 = scmp.ne.s32.totalorder %s22_s16, %s7684_s24  ;;  %p7690_p5 = scmp.lt.s32.totalorder %s7684_s24, %s7684_s24 }
   0xa   :  { %p7691_p6 = por %p7690_p5, %p7689_p4 }
   0xc   :  { %p7692_p7 = pnand %p7691_p6, %p7685_p3 }
   0xe   :  { %7695 = shalt.err (!%p7692_p7)
}
   0xf   :  { %s7699_s25 = smov 128   ;;  %s7700_s26 = smov 8  }
  0x10   :  { %27 = dma.hbm_to_vmem [thread:$0]  %s8736_s3, 7424, %s22_s16, [#allocation3], %s7699_s25, %s7699_s25, %s7700_s26  }
  0x11   :  { %7696 = dma.done.wait [#allocation3], 7424  }
  0x12   :  { %7697 = vsyncadd [#allocation3], 4294959872  ;;  %v7701_v0 = vmov 0   ;;  %v35_v1 = vld [vmem:[#allocation2] sm:$0xff]  ;;  %v7765_v2 = vld [vmem:[#allocation2 + $0x8] sm:$0xff]  ;;  %vm41_vm0 = vcmask 64512  }
  0x13   :  { %7246 = vset.pattern.permute.xlu1 %v7701_v0  ;;  %7477 = vset.pattern.permute.xlu0 %v7701_v0  ;;  %v379_v3 = vld [vmem:[#allocation2 + $0x10] sm:$0x3]  ;;  %s7702_s29 = smov 96   ;;  %v255_v5 = vld [vmem:[%s8734_s1] sm:$0x3]  ;;  %v32_v7 = vld [vmem:[%s8733_s0 + $0x8] sm:$0xff] }
  0x14   :  { %145 = vrot.lane.b32.xlu0 %v35_v1, %s7702_s29  ;;  %v7241_v4 = vpack.i.bf16 %v379_v3, %v7765_v2  ;;  %6418 = vmatprep.subr.mxu0 %v35_v1  ;;  %v31_v6 = vld [vmem:[%s8733_s0] sm:$0xff]  ;;  %v33_v8 = vld [vmem:[%s8733_s0 + $0x10] sm:$0xff]  ;;  %v7703_v9 = vmov 0.0|0.0   ;;  %s7704_s1 = smov 64   ;;  %v34_v10 = vld [vmem:[%s8733_s0 + $0x18] sm:$0xff]  ;;  %vm7705_vm1 = vmmov 0  }
  0x15   :  { %259 = vperm.xlu1 %7246, %v255_v5   ;;  %6419 = vmatpush3.msra.mxu0 %v35_v1  ;;  %v7706_v11 = vmov 0.0   ;;  %v7795_v12 = vld [vmem:[#allocation2 + $0x10] sm:$0xff]  ;;  %vm396_vm2 = vcmask 1041408   ;;  %vm7707_vm3 = vmmov 1   ;;  %v377_v18 = vld [vmem:[%s8735_s2] sm:$0x3] }
  0x16   :  { %6420 = vmatprep.mubr.msk.f32.mxu0 %vm41_vm0, %v31_v6  ;;  %6428 = vmatprep.mubr.msk.f32.mxu1 %vm41_vm0, %v31_v6  ;;  %vm6896_vm4 = vmpackc.low %vm396_vm2, %vm7707_vm3  ;;  %vm392_vm5 = vcmask 80896   ;;  %v6003_v19 = vld [vmem:[#allocation2 + $0x1b] ss:$0 sm:$0xff]  ;;  %v6004_v22 = vld [vmem:[#allocation2 + $0x1c] ss:$0 sm:$0xff]  ;;  %vm486_vm3 = vcmask 261120  }
  0x17   :  { %6421 = vmatmul.mubr.msk.f32.vlgmr.msra.gmra.mrb[0].mxu0 %vm41_vm0, %v32_v7  ;;  %6904 = vmatprep.subr.bf16.mxu0 %v7703_v9  ;;  %v7708_v31 = vmov 2102212464   ;;  %v7709_v33 = vmov 920167782   ;;  %v7710_v37 = vmov 1326507024  }
  0x18   :  { %7242 = vrot.lane.b32.xlu0 %v7241_v4, %s7704_s1  ;;  %6423 = vmatprep.mubr.msk.f32.mxu0 %vm41_vm0, %v33_v8  ;;  %v7711_v40 = vmov 683565275   ;;  %v7712_v42 = vmov 2475754826   ;;  %v7713_v45 = vmov 2131351028  }
  0x19   :  { %241 = vrot.lane.b32.xlu1 %v7765_v2, %s7702_s29  ;;  %s7715_s2 = smov 88   ;;  %s7716_s14 = smov 120  }
  0x1a   :  { %s7717_s15 = smov 56   ;;  %s7718_s16 = smov 80  }
  0x1b   :  { %6424 = vmatmul.mubr.msk.f32.gmra.mrb[2].mxu0 %vm41_vm0, %v34_v10  ;;  %s7719_s17 = smov 112   ;;  %s7720_s18 = smov 48  }
  0x1c   :  { %6460 = vmatprep.mubr.msk.f32.mxu0 %vm7705_vm1, %v7706_v11  ;;  %243 = vrot.lane.b32.xlu0 %v7795_v12, %s7702_s29  ;;  %s7721_s19 = smov 72   ;;  %s7722_s20 = smov 104  }
  0x1d   :  { %s7723_s21 = smov 40   ;;  %s7724_s22 = smov 16  }
  0x1e   :  { %s7725_s23 = smov 24   ;;  %s7726_s24 = smov 32  }
  0x86   :  { %v146_v13 = vpop.permute.xlu0 %145 }
  0x87   :  { %6426 = vmatprep.subr.mxu1 %v146_v13 }
  0x88   :  { %6427 = vmatpush3.msra.mxu1 %v146_v13 }
  0x89   :  { %6429 = vmatmul.mubr.msk.f32.vlgmr.msra.gmra.mrb[0].mxu1 %vm41_vm0, %v32_v7  ;;  %6894 = vmatprep.subr.bf16.mxu1 %v7703_v9 }
  0x8a   :  { %v7243_v14 = vpop.permute.xlu0 %7242  ;;  %6431 = vmatprep.mubr.msk.f32.mxu1 %vm41_vm0, %v33_v8 }
  0x8b   :  { %v7245_v15 = vunpack.i.h.bf16 %v7243_v14  ;;  %v7244_v16 = vunpack.i.l.bf16 %v7243_v14 }
  0x8d   :  { %v6895_v17 = vpack.c.bf16 %v7245_v15, %v7244_v16  ;;  %6432 = vmatmul.mubr.msk.f32.gmra.mrb[2].mxu1 %vm41_vm0, %v34_v10 }
  0x8e   :  { %6438 = vmatprep.mubr.msk.f32.mxu1 %vm7705_vm1, %v7706_v11 }
  0x8f   :  { %6897 = vmatpush3.bf16.msk.msra.mxu1 %vm6896_vm4, %v6895_v17 }
  0x90   :  { %6898 = vmatprep.subr.bf16.mxu1 %v7703_v9 }
  0x92   :  { %6439 = vmatmul.mubr.msk.f32.vlgmr.msra.gmra.mrb[4].mxu1 %vm392_vm5, %v377_v18 }
  0x93   :  { %6449 = vmatprep.mubr.msk.f32.mxu1 %vm7705_vm1, %v7706_v11 }
  0x94   :  { %v260_v20 = vpop.permute.xlu1 %259 }
  0x95   :  { %v266_v21 = vmul.f32 %v6003_v19, %v260_v20  ;;  %v477_v19 = vld [vmem:[#allocation2 + $0xa0] sm:$0xff]  ;;  %v478_v20 = vld [vmem:[#allocation2 + $0xa8] sm:$0xff] }
  0x97   :  { %v7811_v23 = vadd.f32 %v6004_v22, %v266_v21  ;;  %v560_v21 = vld [vmem:[#allocation2 + $0xc0] sm:$0xff]  ;;  %v6899_v22 = vpack.c.bf16 %v478_v20, %v477_v19 }
  0x98   :  { %v242_v20 = vpop.permute.xlu1 %241 }
  0x99   :  { %v276_v24 = vand.u32 2139095040, %v7811_v23  ;;  %v273_v39 = vand.u32 2147483647, %v7811_v23  ;;  %6900 = vmatpush3.bf16.msra.mxu1 %v6899_v22  ;;  %vm275_vm13 = vcmp.lt.s32.totalorder %v7811_v23, 0  ;;  %vm365_vm5 = vweird.f32 %v7811_v23 }
  0x9a   :  { %6901 = vmatprep.subr.bf16.mxu1 %v7703_v9 }
  0x9b   :  { %v277_v25 = vshrl.u32 %v276_v24, 23  ;;  %v280_v51 = vand.u32 8388607, %v273_v39  ;;  %v561_v24 = vld [vmem:[#allocation2 + $0xc8] sm:$0xff]  ;;  %vm274_vm14 = vcmp.le.f32.partialorder %v273_v39, 0.7853982  ;;  %v244_v39 = vpop.permute.xlu0 %243 }
  0x9d   :  { %v6005_v26 = vadd.s32 4294967169, %v277_v25  ;;  %v281_v59 = vor.u32 8388608, %v280_v51  ;;  %v6905_v25 = vpack.c.bf16 %v561_v24, %v560_v21 }
  0x9f   :  { %v283_v27 = vadd.s32 1, %v6005_v26  ;;  %v321_v3 = vshll.u32 %v281_v59, 8  ;;  %6906 = vmatpush3.bf16.msra.mxu0 %v6905_v25 }
  0xa0   :  { %6907 = vmatprep.subr.bf16.mxu0 %v7703_v9 }
  0xa1   :  { %vm284_vm6 = vcmp.gt.s32.totalorder %v283_v27, 0 }
  0xa2   :  { %v285_v28 = vsel %vm284_vm6, %v283_v27, 0  ;;  %vm7967_vm6 = vmpackc.low %vm41_vm0, %vm41_vm0 }
  0xa3   :  { %v287_v29 = vand.u32 31, %v285_v28  ;;  %v286_v35 = vshrl.u32 %v285_v28, 5  ;;  %v479_v28 = vld [vmem:[#allocation2 + $0xb0] sm:$0xff] }
  0xa5   :  { %v288_v30 = vsub.s32 32, %v287_v29  ;;  %v299_v32 = vshll.u32 %v7708_v31, %v287_v29  ;;  %v302_v36 = vshll.u32 %v7709_v33, %v287_v29  ;;  %v290_v41 = vshll.u32 %v7711_v40, %v287_v29 }
  0xa6   :  { %v293_v43 = vshll.u32 %v7712_v42, %v287_v29  ;;  %v296_v47 = vshll.u32 %v7713_v45, %v287_v29  ;;  %vm308_vm7 = vcmp.lt.s32.totalorder %v286_v35, 4  ;;  %vm305_vm8 = vcmp.lt.s32.totalorder %v286_v35, 1  ;;  %v480_v29 = vld [vmem:[#allocation2 + $0xb8] sm:$0xff] }
  0xa7   :  { %v300_v34 = vshrl.u32 %v7709_v33, %v288_v30  ;;  %v303_v38 = vshrl.u32 %v7710_v37, %v288_v30  ;;  %v291_v44 = vshrl.u32 %v7712_v42, %v288_v30  ;;  %v294_v46 = vshrl.u32 %v7713_v45, %v288_v30 }
  0xa8   :  { %v297_v48 = vshrl.u32 %v7708_v31, %v288_v30  ;;  %vm307_vm9 = vcmp.lt.s32.totalorder %v286_v35, 3  ;;  %vm306_vm10 = vcmp.lt.s32.totalorder %v286_v35, 2  ;;  %v289_v8 = vshrl.u32 %v7711_v40, %v288_v30  ;;  %v562_v30 = vld [vmem:[#allocation2 + $0xd0] sm:$0xff] }
  0xa9   :  { %v301_v49 = vor.u32 %v300_v34, %v299_v32  ;;  %v304_v50 = vor.u32 %v303_v38, %v302_v36  ;;  %v292_v53 = vor.u32 %v291_v44, %v290_v41  ;;  %v295_v54 = vor.u32 %v294_v46, %v293_v43  ;;  %v563_v32 = vld [vmem:[#allocation2 + $0xd8] sm:$0xff] }
  0xaa   :  { %v298_v55 = vor.u32 %v297_v48, %v296_v47  ;;  %v6902_v31 = vpack.c.bf16 %v480_v29, %v479_v28  ;;  %v6908_v33 = vpack.c.bf16 %v563_v32, %v562_v30 }
  0xab   :  { %v314_v56 = vsel %vm308_vm7, %v301_v49, 920167782  ;;  %v318_v58 = vsel %vm308_vm7, %v304_v50, 1326507024  ;;  %v313_v61 = vsel %vm305_vm8, %v292_v53, %v295_v54  ;;  %v309_v15 = vsel %vm305_vm8, %v289_v8, %v292_v53 }
  0xac   :  { %v315_v62 = vsel %vm307_vm9, %v298_v55, %v314_v56  ;;  %v317_v0 = vsel %vm305_vm8, %v295_v54, %v298_v55  ;;  %v319_v1 = vsel %vm307_vm9, %v301_v49, %v318_v58  ;;  %v310_v14 = vsel %vm308_vm7, %v298_v55, 2102212464  ;;  %6903 = vmatpush3.bf16.msra.mxu1 %v6902_v31  ;;  %6909 = vmatpush3.bf16.msra.mxu0 %v6908_v33 }
  0xad   :  { %v316_v4 = vsel %vm306_vm10, %v313_v61, %v315_v62  ;;  %v320_v5 = vsel %vm306_vm10, %v317_v0, %v319_v1  ;;  %v311_v16 = vsel %vm307_vm9, %v295_v54, %v310_v14  ;;  %vm1046_vm7 = vcmask 130048  }
  0xae   :  { %v7833_v6 = vmul.u32.u64.low %v321_v3, %v316_v4  ;;  %v7834_v7 = vmul.u32.u64.high %v321_v3, %v316_v4, %v7833_v6  ;;  %v7836_v10 = vmul.u32.u64.low %v321_v3, %v320_v5  ;;  %v7837_v13 = vmul.u32.u64.high %v321_v3, %v320_v5, %v7836_v10  ;;  %v5993_v5 = vld [vmem:[#allocation2 + $0x18] ss:$0 sm:$0xff] }
  0xaf   :  { %v312_v17 = vsel %vm306_vm10, %v309_v15, %v311_v16  ;;  %vm2521_vm8 = vcmask 195584  }
  0xb0   :  { %v331_v18 = vadd.s32 1, %v7834_v7  ;;  %vm330_vm11 = vc.u32 %v7837_v13, %v7833_v6  ;;  %v328_v26 = vmul.u32 %v321_v3, %v312_v17  ;;  %v329_v46 = vadd.s32 %v7833_v6, %v7837_v13  ;;  %v5998_v13 = vld [vmem:[#allocation2 + $0x19] ss:$0 sm:$0xff] }
  0xb2   :  { %v332_v27 = vsel %vm330_vm11, %v331_v18, %v7834_v7 }
  0xb3   :  { %v333_v34 = vadd.s32 %v332_v27, %v328_v26 }
  0xb5   :  { %v334_v35 = vadd.s32 536870912, %v333_v34 }
  0xb7   :  { %v335_v36 = vshrl.u32 %v334_v35, 30 }
  0xb9   :  { %v336_v37 = vshll.u32 %v335_v36, 30  ;;  %v359_v62 = vsub.s32 4, %v335_v36 }
  0xbb   :  { %v337_v38 = vsub.s32 %v333_v34, %v336_v37  ;;  %v360_v1 = vsel %vm275_vm13, %v359_v62, %v335_v36  ;;  %v6009_v37 = vld [vmem:[#allocation2 + $0x1a] ss:$0 sm:$0xff] }
  0xbc   :  { %v362_v3 = vsel %vm274_vm14, 0, %v360_v1 }
  0xbd   :  { %v339_v40 = vsub.s32 0, %v337_v38  ;;  %v366_v4 = vadd.s32 3, %v362_v3 }
  0xbf   :  { %v6006_v41 = vmin.u32 %v339_v40, %v337_v38  ;;  %v367_v6 = vand.u32 3, %v366_v4 }
  0xc1   :  { %v341_v42 = vclz %v6006_v41  ;;  %vm372_vm15 = vcmp.eq.s32.totalorder %v367_v6, 2  ;;  %vm369_vm2 = vcmp.eq.s32.totalorder %v367_v6, 0  ;;  %vm368_vm4 = vcmp.lt.s32.totalorder %v367_v6, 2 }
  0xc3   :  { %v6007_v43 = vadd.s32 4294967294, %v341_v42 }
  0xc5   :  { %vm6008_vm12 = vcmp.lt.s32.totalorder %v6007_v43, 0 }
  0xc6   :  { %v344_v44 = vsel %vm6008_vm12, 0, %v6007_v43 }
  0xc7   :  { %v349_v45 = vsub.s32 4294967266, %v344_v44  ;;  %v345_v47 = vsub.s32 32, %v344_v44  ;;  %v346_v49 = vshll.u32 %v337_v38, %v344_v44 }
  0xc9   :  { %v350_v48 = vadd.s32 127, %v349_v45  ;;  %v347_v50 = vshrl.u32 %v329_v46, %v345_v47 }
  0xcb   :  { %v351_v51 = vshll.u32 %v350_v48, 23  ;;  %v348_v53 = vor.u32 %v347_v50, %v346_v49 }
  0xcd   :  { %v352_v54 = vor.u32 4788187, %v351_v51  ;;  %v355_v56 = vcvt.s32.f32 %v348_v53 }
  0xcf   :  { %v353_v55 = vand.u32 2147483647, %v352_v54 }
  0xd1   :  { %v356_v58 = vmul.f32 %v355_v56, %v353_v55 }
  0xd3   :  { %v357_v59 = vxor.u32 2147483648, %v356_v58 }
  0xd5   :  { %v358_v61 = vsel %vm275_vm13, %v357_v59, %v356_v58 }
  0xd6   :  { %v361_v0 = vsel %vm274_vm14, %v7811_v23, %v358_v61 }
  0xd7   :  { %7478 = vcosq.f32 %v361_v0 }
  0xd8   :  { %7480 = vsinq.f32 %v361_v0 }
  0xe1   :  { %v7479_v7 = vpop.eup %7478 }
  0xe2   :  { %v7481_v10 = vpop.eup %7480  ;;  %v373_v16 = vxor.u32 2147483648, %v7479_v7 }
  0xe3   :  { %v370_v22 = vxor.u32 2147483648, %v7481_v10 }
  0xe4   :  { %v374_v28 = vsel %vm372_vm15, %v373_v16, %v7481_v10  ;;  %v762_v16 = vld [vmem:[#allocation2 + $0xe0] sm:$0xff] }
  0xea   :  { %v7817_v52 = vpop.f32.mrb[0].mxu0 }
  0xeb   :  { %v7820_v57 = vpop.f32.mrb[1].mxu0  ;;  %v126_v8 = vadd.f32 %v7817_v52, %v5993_v5 }
  0xec   :  { %v121_v14 = vadd.f32 %v5993_v5, %v7820_v57 }
  0xed   :  { %v236_v17 = vmul.f32 %v7795_v12, %v126_v8 }
  0xee   :  { %v7823_v60 = vpop.f32.mrb[2].mxu0  ;;  %v235_v24 = vmul.f32 %v7765_v2, %v121_v14 }
  0xef   :  { %v7827_v63 = vpop.f32.mrb[3].mxu0  ;;  %v136_v21 = vadd.f32 %v7823_v60, %v5993_v5  ;;  %v371_v60 = vsel %vm369_vm2, %v7479_v7, %v370_v22 }
  0xf0   :  { %v131_v52 = vadd.f32 %v5993_v5, %v7827_v63 }
  0xf1   :  { %v238_v29 = vmul.f32 %v7795_v12, %v136_v21  ;;  %v375_v12 = vsel %vm368_vm4, %v371_v60, %v374_v28  ;;  %v643_v21 = vlaneseq }
  0xf2   :  { %v237_v33 = vmul.f32 %v7765_v2, %v131_v52  ;;  %v376_v45 = vsel %vm365_vm5, nan, %v375_v12  ;;  %v765_v52 = vld [vmem:[#allocation2 + $0xf8] sm:$0xff] }
 0x15c   :  { %v6430_v15 = vpop.f32.mrb[0].mxu1 }
 0x15d   :  { %v220_v18 = vadd.f32 %v6430_v15, %v5998_v13  ;;  %v214_v19 = vpop.f32.mrb[1].mxu1 }
 0x15e   :  { %v215_v25 = vadd.f32 %v5998_v13, %v214_v19  ;;  %v7714_v19 = vmov 1966171168  }
 0x15f   :  { %v248_v26 = vmul.f32 %v244_v39, %v220_v18 }
 0x160   :  { %v247_v57 = vmul.f32 %v242_v20, %v215_v25  ;;  %v6433_v27 = vpop.f32.mrb[2].mxu1  ;;  %v764_v25 = vld [vmem:[#allocation2 + $0xf0] sm:$0xff] }
 0x161   :  { %v230_v30 = vadd.f32 %v6433_v27, %v5998_v13  ;;  %v224_v31 = vpop.f32.mrb[3].mxu1  ;;  %v7861_v32 = vadd.f32 %v248_v26, %v236_v17  ;;  %v763_v17 = vld [vmem:[#allocation2 + $0xe8] sm:$0xff]  ;;  %v6914_v26 = vpack.c.bf16 %v765_v52, %v764_v25 }
 0x162   :  { %v225_v34 = vadd.f32 %v5998_v13, %v224_v31  ;;  %v7864_v35 = vadd.f32 %v247_v57, %v235_v24  ;;  %v6910_v18 = vpack.c.bf16 %v763_v17, %v762_v16  ;;  %v644_v24 = vshrl.u32 %v643_v21, 7  ;;  %v6013_v57 = vld [vmem:[#allocation2 + $0x120] ss:$0 sm:$0xff] }
 0x163   :  { %v250_v63 = vmul.f32 %v244_v39, %v230_v30  ;;  %v688_v36 = vsel %vm486_vm3, %v7861_v32, 0.0 }
 0x164   :  { %v249_v38 = vmul.f32 %v242_v20, %v225_v34  ;;  %689 = vadd.xlane.f32.xlu0 %v688_v36  ;;  %v685_v40 = vsel %vm486_vm3, %v7864_v35, 0.0  ;;  %6911 = vmatprep.subr.bf16.mxu1 %v6910_v18  ;;  %v641_v20 = vunpack.c.l.s4 %v7714_v19  ;;  %v7915_v34 = vsub.s32 0, %v644_v24 }
 0x165   :  { %v7872_v41 = vadd.f32 %v250_v63, %v238_v29  ;;  %v465_v2 = vpop.f32.mrb[4].mxu1  ;;  %686 = vadd.xlane.f32.xlu1 %v685_v40 }
 0x166   :  { %v7874_v42 = vadd.f32 %v249_v38, %v237_v33  ;;  %v466_v43 = vadd.f32 %v6009_v37, %v465_v2  ;;  %v6440_v44 = vpop.f32.mrb[5].mxu1  ;;  %v642_v22 = vunpack.c.0.s8 %v641_v20 }
 0x167   :  { %v694_v46 = vsel %vm486_vm3, %v7872_v41, 0.0 }
 0x168   :  { %v469_v47 = vadd.f32 %v466_v43, %v376_v45  ;;  %v691_v23 = vsel %vm486_vm3, %v7874_v42, 0.0  ;;  %v7910_v27 = vsub.s32 %v642_v22, %v644_v24 }
 0x169   :  { %692 = vadd.xlane.f32.xlu0 %v691_v23  ;;  %695 = vadd.xlane.f32.xlu1 %v694_v46 }
 0x16a   :  { %v6012_v48 = vmul.f32 -1.442695, %v469_v47 }
 0x16c   :  { %7482 = vpow2.f32 %v6012_v48 }
 0x176   :  { %v7483_v49 = vpop.eup %7482 }
 0x177   :  { %v473_v50 = vadd.f32 1.0, %v7483_v49 }
 0x179   :  { %7484 = vrcp.f32 %v473_v50 }
 0x183   :  { %v7485_v51 = vpop.eup %7484 }
 0x184   :  { %v7880_v53 = vmul.f32 %v7485_v51, %v469_v47 }
 0x186   :  { %6450 = vmatmul.mubr.msk.f32.vlgmr.msra.gmra.mrb[6].mxu1 %vm486_vm3, %v7880_v53  ;;  %6461 = vmatmul.mubr.msk.f32.vlgmr.msra.gmra.mrb[4].mxu0 %vm486_vm3, %v7880_v53 }
 0x187   :  { %6913 = vmatpush3.bf16.msra.mxu1 %v6910_v18 }
 0x188   :  { %6915 = vmatprep.subr.bf16.mxu1 %v6914_v26 }
 0x18b   :  { %6917 = vmatpush3.bf16.msra.mxu1 %v6914_v26 }
 0x1f1   :  { %v690_v54 = vpop.xlane.xlu0 %689 }
 0x1f2   :  { %v699_v55 = vmul.f32 0.03125, %v690_v54  ;;  %v687_v56 = vpop.xlane.xlu1 %686 }
 0x1f3   :  { %v698_v58 = vmul.f32 0.03125, %v687_v56 }
 0x1f4   :  { %v7887_v59 = vsub.f32 %v7861_v32, %v699_v55 }
 0x1f5   :  { %v7890_v61 = vsub.f32 %v7864_v35, %v698_v58 }
 0x1f6   :  { %v693_v62 = vpop.xlane.xlu0 %692  ;;  %v696_v0 = vpop.xlane.xlu1 %695  ;;  %v707_v1 = vmul.f32 %v7887_v59, %v7887_v59 }
 0x1f7   :  { %v700_v3 = vmul.f32 0.03125, %v693_v62  ;;  %v701_v4 = vmul.f32 0.03125, %v696_v0  ;;  %v706_v5 = vmul.f32 %v7890_v61, %v7890_v61 }
 0x1f8   :  { %v713_v6 = vsel %vm486_vm3, %v707_v1, 0.0 }
 0x1f9   :  { %v7898_v7 = vsub.f32 %v7874_v42, %v700_v3  ;;  %v7901_v8 = vsub.f32 %v7872_v41, %v701_v4  ;;  %714 = vadd.xlane.f32.xlu1 %v713_v6  ;;  %v710_v10 = vsel %vm486_vm3, %v706_v5, 0.0 }
 0x1fa   :  { %711 = vadd.xlane.f32.xlu0 %v710_v10 }
 0x1fb   :  { %v708_v13 = vmul.f32 %v7898_v7, %v7898_v7  ;;  %v709_v14 = vmul.f32 %v7901_v8, %v7901_v8 }
 0x1fd   :  { %v716_v15 = vsel %vm486_vm3, %v708_v13, 0.0  ;;  %v719_v39 = vsel %vm486_vm3, %v709_v14, 0.0 }
 0x1fe   :  { %717 = vadd.xlane.f32.xlu0 %v716_v15  ;;  %720 = vadd.xlane.f32.xlu1 %v719_v39 }
 0x259   :  { %v556_v28 = vpop.f32.mrb[6].mxu1  ;;  %v7912_v29 = vpop.f32.mrb[4].mxu0 }
 0x25a   :  { %v557_v30 = vadd.f32 %v6013_v57, %v556_v28  ;;  %v6451_v31 = vpop.f32.mrb[7].mxu1  ;;  %v6462_v60 = vpop.f32.mrb[5].mxu0 }
 0x25c   :  { %v646_v33 = vrot.slane %v557_v30, %v7910_v27 }
 0x25e   :  { %v647_v63 = vcombine.high %v646_v33, %v646_v33  ;;  %v654_v36 = vrot.slane %v646_v33, %v7910_v27 }
 0x260   :  { %v661_v37 = vrot.slane %v647_v63, %v7910_v27  ;;  %v7920_v38 = vrot.slane %v654_v36, %v7915_v34 }
 0x262   :  { %v7923_v12 = vrot.slane %v661_v37, %v7915_v34  ;;  %746 = vrot.lane.b32.xlu0 %v7920_v38, %s7702_s29 }
 0x264   :  { %748 = vrot.lane.b32.xlu1 %v7923_v12, %s7702_s29 }
 0x286   :  { %v715_v2 = vpop.xlane.xlu1 %714 }
 0x287   :  { %v712_v40 = vpop.xlane.xlu0 %711  ;;  %v723_v43 = vmul.f32 0.03125, %v715_v2 }
 0x288   :  { %v722_v45 = vmul.f32 0.03125, %v712_v40 }
 0x289   :  { %v727_v23 = vadd.f32 1e-06, %v723_v43 }
 0x28a   :  { %v726_v49 = vadd.f32 1e-06, %v722_v45 }
 0x28b   :  { %v718_v44 = vpop.xlane.xlu0 %717  ;;  %v721_v46 = vpop.xlane.xlu1 %720  ;;  %7486 = vrsqrt.f32 %v727_v23 }
 0x28c   :  { %v724_v47 = vmul.f32 0.03125, %v718_v44  ;;  %v725_v48 = vmul.f32 0.03125, %v721_v46  ;;  %7488 = vrsqrt.f32 %v726_v49 }
 0x28e   :  { %v728_v50 = vadd.f32 1e-06, %v724_v47  ;;  %v729_v51 = vadd.f32 1e-06, %v725_v48 }
 0x290   :  { %7490 = vrsqrt.f32 %v728_v50 }
 0x291   :  { %7492 = vrsqrt.f32 %v729_v51 }
 0x295   :  { %v7487_v54 = vpop.eup %7486 }
 0x296   :  { %v7489_v55 = vpop.eup %7488  ;;  %v735_v0 = vmul.f32 %v7487_v54, %v7887_v59 }
 0x297   :  { %v734_v62 = vmul.f32 %v7489_v55, %v7890_v61  ;;  %v6017_v61 = vld [vmem:[#allocation2 + $0x122] ss:$0 sm:$0xff] }
 0x29a   :  { %v7491_v56 = vpop.eup %7490 }
 0x29b   :  { %v7493_v58 = vpop.eup %7492  ;;  %v736_v5 = vmul.f32 %v7491_v56, %v7898_v7 }
 0x29c   :  { %v737_v6 = vmul.f32 %v7493_v58, %v7901_v8 }
 0x2d4   :  { %v747_v1 = vpop.permute.xlu0 %746 }
 0x2d5   :  { %v752_v3 = vmul.f32 %v747_v1, %v734_v62  ;;  %v753_v4 = vmul.f32 %v747_v1, %v735_v0 }
 0x2d6   :  { %v749_v10 = vpop.permute.xlu1 %748 }
 0x2d7   :  { %v758_v13 = vadd.f32 %v752_v3, %v7920_v38  ;;  %v759_v14 = vadd.f32 %v753_v4, %v7920_v38  ;;  %v754_v15 = vmul.f32 %v749_v10, %v736_v5  ;;  %v755_v39 = vmul.f32 %v749_v10, %v737_v6 }
 0x2d9   :  { %v760_v16 = vadd.f32 %v754_v15, %v7923_v12  ;;  %6471 = vmatprep.mubr.msk.f32.mxu1 %vm486_vm3, %v758_v13  ;;  %v761_v59 = vadd.f32 %v755_v39, %v7923_v12 }
 0x2da   :  { %6472 = vmatmul.mubr.msk.f32.vlgmr.msra.gmra.mrb[8].mxu1 %vm486_vm3, %v759_v14 }
 0x2db   :  { %6474 = vmatprep.mubr.msk.f32.mxu1 %vm486_vm3, %v760_v16 }
 0x2de   :  { %6475 = vmatmul.mubr.msk.f32.gmra.mrb[10].mxu1 %vm486_vm3, %v761_v59 }
 0x3ad   :  { %v6473_v7 = vpop.f32.mrb[8].mxu1 }
 0x3ae   :  { %v7941_v8 = vadd.f32 %v6473_v7, %v6017_v61  ;;  %v849_v17 = vpop.f32.mrb[9].mxu1 }
 0x3af   :  { %v7943_v18 = vadd.f32 %v6017_v61, %v849_v17 }
 0x3b1   :  { %v6476_v19 = vpop.f32.mrb[10].mxu1  ;;  %6481 = vmatprep.mubr.msk.f32.mxu0 %vm41_vm0, %v7943_v18  ;;  %v7949_v20 = vpack.i.bf16 %v7941_v8, %v7943_v18 }
 0x3b2   :  { %v7951_v21 = vadd.f32 %v6476_v19, %v6017_v61  ;;  %v859_v22 = vpop.f32.mrb[11].mxu1 }
 0x3b3   :  { %v7953_v24 = vadd.f32 %v6017_v61, %v859_v22  ;;  %7248 = vrot.lane.b32.xlu1 %v7949_v20, %s7702_s29 }
 0x3b5   :  { %6488 = vmatprep.mubr.msk.f32.mxu1 %vm41_vm0, %v7953_v24  ;;  %v7961_v25 = vpack.i.bf16 %v7951_v21, %v7953_v24 }
 0x3b7   :  { %7253 = vrot.lane.b32.xlu0 %v7961_v25, %s7702_s29 }
 0x425   :  { %v7249_v52 = vpop.permute.xlu1 %7248 }
 0x426   :  { %v7251_v26 = vunpack.i.h.bf16 %v7249_v52  ;;  %v7250_v57 = vunpack.i.l.bf16 %v7249_v52 }
 0x428   :  { %v6918_v30 = vpack.c.bf16 %v7251_v26, %v7250_v57 }
 0x429   :  { %v7254_v31 = vpop.permute.xlu0 %7253 }
 0x42a   :  { %v7256_v60 = vunpack.i.h.bf16 %v7254_v31  ;;  %v7255_v33 = vunpack.i.l.bf16 %v7254_v31  ;;  %6920 = vmatprep.subr.msk.bf16.mxu0 %vm7967_vm6, %v6918_v30 }
 0x42b   :  { %6923 = vmatpush3.bf16.xpose.msk.msra.mxu0 %vm7967_vm6, %v6918_v30 }
 0x42c   :  { %v6924_v63 = vpack.c.bf16 %v7256_v60, %v7255_v33 }
 0x42e   :  { %6926 = vmatprep.subr.msk.bf16.mxu1 %vm7967_vm6, %v6924_v63 }
 0x42f   :  { %6929 = vmatpush3.bf16.xpose.msk.msra.mxu1 %vm7967_vm6, %v6924_v63 }
 0x432   :  { %6482 = vmatmul.mubr.msk.f32.vlgmr.msra.gmra.mrb[6].mxu0 %vm41_vm0, %v7941_v8 }
 0x436   :  { %6489 = vmatmul.mubr.msk.f32.vlgmr.msra.gmra.mrb[12].mxu1 %vm41_vm0, %v7951_v21 }
 0x505   :  { %v6483_v36 = vpop.f32.mrb[6].mxu0 }
 0x506   :  { %v948_v37 = vpop.f32.mrb[7].mxu0  ;;  %v1050_v40 = vsel %vm1046_vm7, %v6483_v36, -inf }
 0x507   :  { %1051 = vmax.xlane.f32.xlu0 %v1050_v40  ;;  %v1047_v2 = vsel %vm1046_vm7, %v948_v37, -inf }
 0x508   :  { %1048 = vmax.xlane.f32.xlu1 %v1047_v2 }
 0x509   :  { %v6490_v43 = vpop.f32.mrb[12].mxu1 }
 0x50a   :  { %v1037_v44 = vpop.f32.mrb[13].mxu1  ;;  %v1056_v45 = vsel %vm1046_vm7, %v6490_v43, -inf }
 0x50b   :  { %v1053_v46 = vsel %vm1046_vm7, %v1037_v44, -inf }
 0x50c   :  { %1054 = vmax.xlane.f32.xlu0 %v1053_v46  ;;  %1057 = vmax.xlane.f32.xlu1 %v1056_v45 }
 0x51d   :  { %7263 = vrot.lane.b32.xlu1 %v7961_v25, %s7704_s1 }
 0x521   :  { %7268 = vrot.lane.b32.xlu1 %v7949_v20, %s7715_s2 }
 0x522   :  { %7258 = vrot.lane.b32.xlu0 %v7949_v20, %s7704_s1 }
 0x526   :  { %1265 = vrot.lane.b32.xlu0 %v7943_v18, %s7716_s14 }
 0x594   :  { %v1052_v47 = vpop.xlane.xlu0 %1051 }
 0x595   :  { %v1060_v23 = vsub.f32 %v6483_v36, %v1052_v47  ;;  %v1049_v48 = vpop.xlane.xlu1 %1048 }
 0x596   :  { %v1059_v49 = vsub.f32 %v948_v37, %v1049_v48 }
 0x597   :  { %v1065_v50 = vmul.f32 1.442695, %v1060_v23 }
 0x598   :  { %v1063_v51 = vmul.f32 1.442695, %v1059_v49 }
 0x599   :  { %7494 = vpow2.f32 %v1065_v50  ;;  %v1055_v54 = vpop.xlane.xlu0 %1054  ;;  %v1058_v55 = vpop.xlane.xlu1 %1057 }
 0x59a   :  { %7496 = vpow2.f32 %v1063_v51  ;;  %v1061_v56 = vsub.f32 %v1037_v44, %v1055_v54  ;;  %v1062_v22 = vsub.f32 %v6490_v43, %v1058_v55 }
 0x59c   :  { %v1067_v58 = vmul.f32 1.442695, %v1061_v56  ;;  %v1069_v52 = vmul.f32 1.442695, %v1062_v22 }
 0x59d   :  { %v7259_v62 = vpop.permute.xlu0 %7258  ;;  %v7264_v0 = vpop.permute.xlu1 %7263 }
 0x59e   :  { %7498 = vpow2.f32 %v1067_v58  ;;  %v7261_v1 = vunpack.i.h.bf16 %v7259_v62  ;;  %v7260_v3 = vunpack.i.l.bf16 %v7259_v62  ;;  %v7266_v4 = vunpack.i.h.bf16 %v7264_v0 }
 0x59f   :  { %v7265_v5 = vunpack.i.l.bf16 %v7264_v0  ;;  %7500 = vpow2.f32 %v1069_v52 }
 0x5a0   :  { %v6930_v6 = vpack.c.bf16 %v7261_v1, %v7260_v3 }
 0x5a1   :  { %v7269_v10 = vpop.permute.xlu1 %7268  ;;  %v6934_v13 = vpack.c.bf16 %v7266_v4, %v7265_v5  ;;  %v1266_v30 = vpop.permute.xlu0 %1265 }
 0x5a2   :  { %v7271_v14 = vunpack.i.h.bf16 %v7269_v10  ;;  %v7270_v15 = vunpack.i.l.bf16 %v7269_v10  ;;  %6931 = vmatprep.subr.bf16.mxu0 %v6930_v6 }
 0x5a3   :  { %v7495_v39 = vpop.eup %7494  ;;  %6935 = vmatprep.subr.bf16.mxu1 %v6934_v13  ;;  %6933 = vmatpush3.bf16.msra.mxu0 %v6930_v6 }
 0x5a4   :  { %v7497_v16 = vpop.eup %7496  ;;  %v6938_v59 = vpack.c.bf16 %v7271_v14, %v7270_v15  ;;  %6937 = vmatpush3.bf16.msra.mxu1 %v6934_v13  ;;  %v1074_v61 = vsel %vm1046_vm7, %v7495_v39, 0.0 }
 0x5a5   :  { %1075 = vadd.xlane.f32.xlu1 %v1074_v61  ;;  %v1071_v7 = vsel %vm1046_vm7, %v7497_v16, 0.0 }
 0x5a6   :  { %1072 = vadd.xlane.f32.xlu0 %v1071_v7  ;;  %6940 = vmatprep.subr.msk.bf16.mxu0 %vm7967_vm6, %v6938_v59 }
 0x5a8   :  { %v7499_v17 = vpop.eup %7498 }
 0x5a9   :  { %v1077_v19 = vsel %vm1046_vm7, %v7499_v17, 0.0  ;;  %v7501_v26 = vpop.eup %7500 }
 0x5aa   :  { %1078 = vadd.xlane.f32.xlu0 %v1077_v19  ;;  %v1080_v57 = vsel %vm1046_vm7, %v7501_v26, 0.0 }
 0x5b6   :  { %7273 = vrot.lane.b32.xlu1 %v7961_v25, %s7715_s2 }
 0x5c0   :  { %1267 = vrot.lane.b32.xlu0 %v7941_v8, %s7716_s14 }
 0x5c4   :  { %1358 = vrot.lane.b32.xlu0 %v7951_v21, %s7716_s14 }
 0x5da   :  { %1081 = vadd.xlane.f32.xlu1 %v1080_v57 }
 0x5eb   :  { %1356 = vrot.lane.b32.xlu1 %v7953_v24, %s7716_s14 }
 0x632   :  { %v1076_v31 = vpop.xlane.xlu1 %1075 }
 0x633   :  { %7502 = vrcp.f32 %v1076_v31  ;;  %v1073_v60 = vpop.xlane.xlu0 %1072 }
 0x634   :  { %7504 = vrcp.f32 %v1073_v60 }
 0x636   :  { %v7274_v33 = vpop.permute.xlu1 %7273 }
 0x637   :  { %v7276_v63 = vunpack.i.h.bf16 %v7274_v33  ;;  %v7275_v36 = vunpack.i.l.bf16 %v7274_v33  ;;  %v1079_v37 = vpop.xlane.xlu0 %1078 }
 0x638   :  { %7506 = vrcp.f32 %v1079_v37 }
 0x639   :  { %v6944_v40 = vpack.c.bf16 %v7276_v63, %v7275_v36 }
 0x63b   :  { %6946 = vmatprep.subr.msk.bf16.mxu1 %vm7967_vm6, %v6944_v40  ;;  %v1268_v23 = vpop.permute.xlu0 %1267 }
 0x63d   :  { %v7503_v2 = vpop.eup %7502 }
 0x63e   :  { %v7505_v43 = vpop.eup %7504  ;;  %v1088_v45 = vmul.f32 %v7503_v2, %v7495_v39 }
 0x63f   :  { %v1087_v44 = vmul.f32 %v7505_v43, %v7497_v16  ;;  %v1359_v54 = vpop.permute.xlu0 %1358 }
 0x641   :  { %6495 = vmatprep.mubr.msk.f32.mxu0 %vm1046_vm7, %v1087_v44 }
 0x642   :  { %v7507_v46 = vpop.eup %7506  ;;  %6496 = vmatmul.mubr.msk.f32.vlgmr.msra.gmra.mrb[8].mxu0 %vm1046_vm7, %v1088_v45 }
 0x643   :  { %6943 = vmatpush3.bf16.xpose.msk.msra.mxu0 %vm7967_vm6, %v6938_v59  ;;  %6509 = vmatprep.mubr.msk.f32.mxu0 %vm41_vm0, %v1266_v30  ;;  %v1089_v47 = vmul.f32 %v7507_v46, %v7499_v17 }
 0x645   :  { %6502 = vmatprep.mubr.msk.f32.mxu1 %vm1046_vm7, %v1089_v47 }
 0x64a   :  { %6510 = vmatmul.mubr.msk.f32.vlgmr.msra.gmra.mrb[10].mxu0 %vm41_vm0, %v1268_v23 }
 0x667   :  { %v1082_v48 = vpop.xlane.xlu1 %1081 }
 0x668   :  { %7508 = vrcp.f32 %v1082_v48 }
 0x66b   :  { %v1357_v51 = vpop.permute.xlu1 %1356 }
 0x672   :  { %v7509_v49 = vpop.eup %7508 }
 0x673   :  { %v1090_v50 = vmul.f32 %v7509_v49, %v7501_v26 }
 0x675   :  { %6503 = vmatmul.mubr.msk.f32.vlgmr.msra.gmra.mrb[14].mxu1 %vm1046_vm7, %v1090_v50 }
 0x676   :  { %6949 = vmatpush3.bf16.xpose.msk.msra.mxu1 %vm7967_vm6, %v6944_v40  ;;  %6516 = vmatprep.mubr.msk.f32.mxu1 %vm41_vm0, %v1357_v51 }
 0x67d   :  { %6517 = vmatmul.mubr.msk.f32.vlgmr.msra.gmra.mrb[16].mxu1 %vm41_vm0, %v1359_v54 }
 0x715   :  { %v8023_v55 = vpop.f32.mrb[8].mxu0 }
 0x716   :  { %v8025_v56 = vpop.f32.mrb[9].mxu0 }
 0x71d   :  { %v6511_v58 = vpop.f32.mrb[10].mxu0 }
 0x71e   :  { %v1347_v62 = vpop.f32.mrb[11].mxu0  ;;  %v1450_v0 = vsel %vm1046_vm7, %v6511_v58, -inf }
 0x71f   :  { %1451 = vmax.xlane.f32.xlu0 %v1450_v0  ;;  %v1447_v1 = vsel %vm1046_vm7, %v1347_v62, -inf }
 0x720   :  { %1448 = vmax.xlane.f32.xlu1 %v1447_v1 }
 0x748   :  { %v8029_v3 = vpop.f32.mrb[14].mxu1 }
 0x749   :  { %v8031_v4 = vpop.f32.mrb[15].mxu1 }
 0x750   :  { %v6518_v5 = vpop.f32.mrb[16].mxu1 }
 0x751   :  { %v1438_v6 = vpop.f32.mrb[17].mxu1  ;;  %v1456_v10 = vsel %vm1046_vm7, %v6518_v5, -inf }
 0x752   :  { %1457 = vmax.xlane.f32.xlu1 %v1456_v10  ;;  %v1453_v13 = vsel %vm1046_vm7, %v1438_v6, -inf }
 0x753   :  { %1454 = vmax.xlane.f32.xlu0 %v1453_v13 }
 0x763   :  { %7283 = vrot.lane.b32.xlu1 %v7961_v25, %s7717_s15 }
 0x767   :  { %7288 = vrot.lane.b32.xlu1 %v7949_v20, %s7718_s16 }
 0x769   :  { %7278 = vrot.lane.b32.xlu0 %v7949_v20, %s7717_s15 }
 0x76d   :  { %1665 = vrot.lane.b32.xlu0 %v7943_v18, %s7719_s17 }
 0x7ac   :  { %v1452_v14 = vpop.xlane.xlu0 %1451 }
 0x7ad   :  { %v1460_v15 = vsub.f32 %v6511_v58, %v1452_v14  ;;  %v1449_v39 = vpop.xlane.xlu1 %1448 }
 0x7ae   :  { %v1459_v16 = vsub.f32 %v1347_v62, %v1449_v39 }
 0x7af   :  { %v1465_v59 = vmul.f32 1.442695, %v1460_v15 }
 0x7b0   :  { %v1463_v61 = vmul.f32 1.442695, %v1459_v16 }
 0x7b1   :  { %7510 = vpow2.f32 %v1465_v59 }
 0x7b2   :  { %7512 = vpow2.f32 %v1463_v61 }
 0x7bb   :  { %v7511_v7 = vpop.eup %7510 }
 0x7bc   :  { %v7513_v17 = vpop.eup %7512  ;;  %v1474_v19 = vsel %vm1046_vm7, %v7511_v7, 0.0 }
 0x7bd   :  { %1475 = vadd.xlane.f32.xlu1 %v1474_v19  ;;  %v1471_v22 = vsel %vm1046_vm7, %v7513_v17, 0.0 }
 0x7be   :  { %1472 = vadd.xlane.f32.xlu0 %v1471_v22 }
 0x7ce   :  { %7293 = vrot.lane.b32.xlu1 %v7961_v25, %s7718_s16 }
 0x7df   :  { %v1458_v52 = vpop.xlane.xlu1 %1457 }
 0x7e0   :  { %v1462_v26 = vsub.f32 %v6518_v5, %v1458_v52  ;;  %v1455_v57 = vpop.xlane.xlu0 %1454 }
 0x7e1   :  { %v1461_v30 = vsub.f32 %v1438_v6, %v1455_v57 }
 0x7e2   :  { %v1469_v31 = vmul.f32 1.442695, %v1462_v26 }
 0x7e3   :  { %v1467_v60 = vmul.f32 1.442695, %v1461_v30  ;;  %v7284_v33 = vpop.permute.xlu1 %7283 }
 0x7e4   :  { %7514 = vpow2.f32 %v1469_v31  ;;  %v7286_v63 = vunpack.i.h.bf16 %v7284_v33  ;;  %v7285_v36 = vunpack.i.l.bf16 %v7284_v33  ;;  %v7279_v37 = vpop.permute.xlu0 %7278 }
 0x7e5   :  { %7516 = vpow2.f32 %v1467_v60  ;;  %v7281_v40 = vunpack.i.h.bf16 %v7279_v37  ;;  %v7280_v2 = vunpack.i.l.bf16 %v7279_v37 }
 0x7e6   :  { %v6954_v43 = vpack.c.bf16 %v7286_v63, %v7285_v36 }
 0x7e7   :  { %v7289_v44 = vpop.permute.xlu1 %7288  ;;  %v6950_v45 = vpack.c.bf16 %v7281_v40, %v7280_v2 }
 0x7e8   :  { %v7291_v46 = vunpack.i.h.bf16 %v7289_v44  ;;  %v7290_v47 = vunpack.i.l.bf16 %v7289_v44  ;;  %6955 = vmatprep.subr.bf16.mxu1 %v6954_v43  ;;  %v1666_v54 = vpop.permute.xlu0 %1665 }
 0x7e9   :  { %6951 = vmatprep.subr.bf16.mxu0 %v6950_v45  ;;  %6957 = vmatpush3.bf16.msra.mxu1 %v6954_v43 }
 0x7ea   :  { %v6958_v23 = vpack.c.bf16 %v7291_v46, %v7290_v47  ;;  %6953 = vmatpush3.bf16.msra.mxu0 %v6950_v45 }
 0x7ec   :  { %6960 = vmatprep.subr.msk.bf16.mxu0 %vm7967_vm6, %v6958_v23 }
 0x7ee   :  { %v7515_v48 = vpop.eup %7514 }
 0x7ef   :  { %v7517_v49 = vpop.eup %7516  ;;  %v1480_v51 = vsel %vm1046_vm7, %v7515_v48, 0.0 }
 0x7f0   :  { %v1477_v50 = vsel %vm1046_vm7, %v7517_v49, 0.0 }
 0x7f1   :  { %1478 = vadd.xlane.f32.xlu0 %v1477_v50 }
 0x7f2   :  { %1481 = vadd.xlane.f32.xlu1 %v1480_v51 }
 0x803   :  { %1756 = vrot.lane.b32.xlu1 %v7953_v24, %s7719_s17 }
 0x807   :  { %1667 = vrot.lane.b32.xlu0 %v7941_v8, %s7719_s17 }
 0x80b   :  { %1758 = vrot.lane.b32.xlu0 %v7951_v21, %s7719_s17 }
 0x84a   :  { %v1476_v58 = vpop.xlane.xlu1 %1475 }
 0x84b   :  { %7518 = vrcp.f32 %v1476_v58  ;;  %v1473_v62 = vpop.xlane.xlu0 %1472 }
 0x84c   :  { %7520 = vrcp.f32 %v1473_v62 }
 0x84e   :  { %v7294_v0 = vpop.permute.xlu1 %7293 }
 0x84f   :  { %v7296_v1 = vunpack.i.h.bf16 %v7294_v0  ;;  %v7295_v5 = vunpack.i.l.bf16 %v7294_v0 }
 0x851   :  { %v6964_v6 = vpack.c.bf16 %v7296_v1, %v7295_v5 }
 0x853   :  { %6966 = vmatprep.subr.msk.bf16.mxu1 %vm7967_vm6, %v6964_v6 }
 0x855   :  { %v7519_v10 = vpop.eup %7518 }
 0x856   :  { %v7521_v13 = vpop.eup %7520  ;;  %v1488_v15 = vmul.f32 %v7519_v10, %v7511_v7 }
 0x857   :  { %v1487_v14 = vmul.f32 %v7521_v13, %v7513_v17 }
 0x859   :  { %6523 = vmatprep.mubr.msk.f32.mxu0 %vm1046_vm7, %v1487_v14 }
 0x85a   :  { %6524 = vmatmul.mubr.msk.f32.vlgmr.msra.gmra.mrb[12].mxu0 %vm1046_vm7, %v1488_v15 }
 0x85b   :  { %6963 = vmatpush3.bf16.xpose.msk.msra.mxu0 %vm7967_vm6, %v6958_v23  ;;  %6537 = vmatprep.mubr.msk.f32.mxu0 %vm41_vm0, %v1666_v54 }
 0x87e   :  { %v1479_v39 = vpop.xlane.xlu0 %1478 }
 0x87f   :  { %7522 = vrcp.f32 %v1479_v39  ;;  %v1482_v16 = vpop.xlane.xlu1 %1481 }
 0x880   :  { %7524 = vrcp.f32 %v1482_v16 }
 0x882   :  { %v1668_v59 = vpop.permute.xlu0 %1667 }
 0x883   :  { %6538 = vmatmul.mubr.msk.f32.vlgmr.msra.gmra.mrb[14].mxu0 %vm41_vm0, %v1668_v59  ;;  %v1757_v22 = vpop.permute.xlu1 %1756 }
 0x886   :  { %v1759_v52 = vpop.permute.xlu0 %1758 }
 0x889   :  { %v7523_v61 = vpop.eup %7522 }
 0x88a   :  { %v7525_v19 = vpop.eup %7524  ;;  %v1489_v17 = vmul.f32 %v7523_v61, %v7517_v49 }
 0x88b   :  { %v1490_v7 = vmul.f32 %v7525_v19, %v7515_v48 }
 0x88c   :  { %6530 = vmatprep.mubr.msk.f32.mxu1 %vm1046_vm7, %v1489_v17 }
 0x88d   :  { %6531 = vmatmul.mubr.msk.f32.vlgmr.msra.gmra.mrb[18].mxu1 %vm1046_vm7, %v1490_v7 }
 0x88e   :  { %6969 = vmatpush3.bf16.xpose.msk.msra.mxu1 %vm7967_vm6, %v6964_v6  ;;  %6544 = vmatprep.mubr.msk.f32.mxu1 %vm41_vm0, %v1757_v22 }
 0x895   :  { %6545 = vmatmul.mubr.msk.f32.vlgmr.msra.gmra.mrb[20].mxu1 %vm41_vm0, %v1759_v52 }
 0x92d   :  { %v8071_v26 = vpop.f32.mrb[12].mxu0 }
 0x92e   :  { %v8073_v57 = vpop.f32.mrb[13].mxu0 }
 0x956   :  { %v6539_v30 = vpop.f32.mrb[14].mxu0 }
 0x957   :  { %v1747_v31 = vpop.f32.mrb[15].mxu0  ;;  %v1850_v60 = vsel %vm1046_vm7, %v6539_v30, -inf }
 0x958   :  { %1851 = vmax.xlane.f32.xlu0 %v1850_v60  ;;  %v1847_v33 = vsel %vm1046_vm7, %v1747_v31, -inf }
 0x959   :  { %1848 = vmax.xlane.f32.xlu1 %v1847_v33 }
 0x960   :  { %v8077_v63 = vpop.f32.mrb[18].mxu1 }
 0x961   :  { %v8079_v36 = vpop.f32.mrb[19].mxu1 }
 0x968   :  { %v6546_v37 = vpop.f32.mrb[20].mxu1 }
 0x969   :  { %v1838_v40 = vpop.f32.mrb[21].mxu1  ;;  %v1856_v2 = vsel %vm1046_vm7, %v6546_v37, -inf }
 0x96a   :  { %1857 = vmax.xlane.f32.xlu1 %v1856_v2  ;;  %v1853_v43 = vsel %vm1046_vm7, %v1838_v40, -inf }
 0x96b   :  { %1854 = vmax.xlane.f32.xlu0 %v1853_v43 }
 0x97b   :  { %7303 = vrot.lane.b32.xlu1 %v7961_v25, %s7720_s18 }
 0x97f   :  { %7308 = vrot.lane.b32.xlu1 %v7949_v20, %s7721_s19 }
 0x981   :  { %7298 = vrot.lane.b32.xlu0 %v7949_v20, %s7720_s18 }
 0x985   :  { %2065 = vrot.lane.b32.xlu0 %v7943_v18, %s7722_s20 }
 0x9e5   :  { %v1852_v44 = vpop.xlane.xlu0 %1851 }
 0x9e6   :  { %v1860_v45 = vsub.f32 %v6539_v30, %v1852_v44  ;;  %v1849_v46 = vpop.xlane.xlu1 %1848 }
 0x9e7   :  { %v1859_v47 = vsub.f32 %v1747_v31, %v1849_v46 }
 0x9e8   :  { %v1865_v23 = vmul.f32 1.442695, %v1860_v45 }
 0x9e9   :  { %v1863_v48 = vmul.f32 1.442695, %v1859_v47 }
 0x9ea   :  { %7526 = vpow2.f32 %v1865_v23 }
 0x9eb   :  { %7528 = vpow2.f32 %v1863_v48 }
 0x9f4   :  { %v7527_v49 = vpop.eup %7526 }
 0x9f5   :  { %v7529_v50 = vpop.eup %7528  ;;  %v1874_v51 = vsel %vm1046_vm7, %v7527_v49, 0.0 }
 0x9f6   :  { %1875 = vadd.xlane.f32.xlu1 %v1874_v51  ;;  %v1871_v54 = vsel %vm1046_vm7, %v7529_v50, 0.0 }
 0x9f7   :  { %v1858_v58 = vpop.xlane.xlu1 %1857  ;;  %1872 = vadd.xlane.f32.xlu0 %v1871_v54 }
 0x9f8   :  { %v1855_v62 = vpop.xlane.xlu0 %1854  ;;  %v1862_v22 = vsub.f32 %v6546_v37, %v1858_v58 }
 0x9f9   :  { %v1861_v0 = vsub.f32 %v1838_v40, %v1855_v62 }
 0x9fa   :  { %v1869_v52 = vmul.f32 1.442695, %v1862_v22 }
 0x9fb   :  { %v1867_v18 = vmul.f32 1.442695, %v1861_v0  ;;  %v7304_v1 = vpop.permute.xlu1 %7303 }
 0x9fc   :  { %v7306_v5 = vunpack.i.h.bf16 %v7304_v1  ;;  %v7305_v6 = vunpack.i.l.bf16 %v7304_v1  ;;  %v7299_v10 = vpop.permute.xlu0 %7298 }
 0x9fd   :  { %7530 = vpow2.f32 %v1867_v18  ;;  %v7301_v13 = vunpack.i.h.bf16 %v7299_v10  ;;  %v7300_v14 = vunpack.i.l.bf16 %v7299_v10 }
 0x9fe   :  { %v6974_v15 = vpack.c.bf16 %v7306_v5, %v7305_v6  ;;  %7532 = vpow2.f32 %v1869_v52 }
 0x9ff   :  { %v7309_v39 = vpop.permute.xlu1 %7308  ;;  %v6970_v16 = vpack.c.bf16 %v7301_v13, %v7300_v14 }
 0xa00   :  { %v7311_v59 = vunpack.i.h.bf16 %v7309_v39  ;;  %v7310_v61 = vunpack.i.l.bf16 %v7309_v39  ;;  %6975 = vmatprep.subr.bf16.mxu1 %v6974_v15  ;;  %v2066_v60 = vpop.permute.xlu0 %2065 }
 0xa01   :  { %6971 = vmatprep.subr.bf16.mxu0 %v6970_v16  ;;  %6977 = vmatpush3.bf16.msra.mxu1 %v6974_v15 }
 0xa02   :  { %v6978_v19 = vpack.c.bf16 %v7311_v59, %v7310_v61  ;;  %6973 = vmatpush3.bf16.msra.mxu0 %v6970_v16 }
 0xa04   :  { %6980 = vmatprep.subr.msk.bf16.mxu0 %vm7967_vm6, %v6978_v19 }
 0xa07   :  { %v7531_v17 = vpop.eup %7530  ;;  %7313 = vrot.lane.b32.xlu1 %v7961_v25, %s7721_s19 }
 0xa08   :  { %v1877_v7 = vsel %vm1046_vm7, %v7531_v17, 0.0  ;;  %v7533_v30 = vpop.eup %7532 }
 0xa09   :  { %1878 = vadd.xlane.f32.xlu0 %v1877_v7  ;;  %v1880_v31 = vsel %vm1046_vm7, %v7533_v30, 0.0 }
 0xa1f   :  { %2067 = vrot.lane.b32.xlu0 %v7941_v8, %s7722_s20 }
 0xa23   :  { %2158 = vrot.lane.b32.xlu0 %v7951_v21, %s7722_s20 }
 0xa2b   :  { %1881 = vadd.xlane.f32.xlu1 %v1880_v31 }
 0xa3c   :  { %2156 = vrot.lane.b32.xlu1 %v7953_v24, %s7722_s20 }
 0xa83   :  { %v1876_v33 = vpop.xlane.xlu1 %1875 }
 0xa84   :  { %7534 = vrcp.f32 %v1876_v33  ;;  %v1873_v40 = vpop.xlane.xlu0 %1872 }
 0xa85   :  { %7536 = vrcp.f32 %v1873_v40 }
 0xa87   :  { %v7314_v37 = vpop.permute.xlu1 %7313 }
 0xa88   :  { %v7316_v2 = vunpack.i.h.bf16 %v7314_v37  ;;  %v7315_v43 = vunpack.i.l.bf16 %v7314_v37 }
 0xa8a   :  { %v6984_v44 = vpack.c.bf16 %v7316_v2, %v7315_v43 }
 0xa8c   :  { %6986 = vmatprep.subr.msk.bf16.mxu1 %vm7967_vm6, %v6984_v44 }
 0xa8e   :  { %v7535_v8 = vpop.eup %7534 }
 0xa8f   :  { %v7537_v21 = vpop.eup %7536  ;;  %v1888_v46 = vmul.f32 %v7535_v8, %v7527_v49 }
 0xa90   :  { %v1887_v45 = vmul.f32 %v7537_v21, %v7529_v50 }
 0xa92   :  { %6551 = vmatprep.mubr.msk.f32.mxu0 %vm1046_vm7, %v1887_v45 }
 0xa93   :  { %6552 = vmatmul.mubr.msk.f32.vlgmr.msra.gmra.mrb[16].mxu0 %vm1046_vm7, %v1888_v46 }
 0xa94   :  { %6983 = vmatpush3.bf16.xpose.msk.msra.mxu0 %vm7967_vm6, %v6978_v19  ;;  %6565 = vmatprep.mubr.msk.f32.mxu0 %vm41_vm0, %v2066_v60 }
 0xa96   :  { %v1879_v24 = vpop.xlane.xlu0 %1878 }
 0xa97   :  { %7538 = vrcp.f32 %v1879_v24  ;;  %v7670_v24 = vld [vmem:[#allocation2 + $0xc0] sm:$0xff] }
 0xa9a   :  { %v2068_v47 = vpop.permute.xlu0 %2067 }
 0xa9b   :  { %6566 = vmatmul.mubr.msk.f32.vlgmr.msra.gmra.mrb[18].mxu0 %vm41_vm0, %v2068_v47  ;;  %v7671_v47 = vld [vmem:[#allocation2 + $0xc8] sm:$0xff] }
 0xa9e   :  { %v2159_v58 = vpop.permute.xlu0 %2158 }
 0xaa1   :  { %v7539_v23 = vpop.eup %7538 }
 0xaa2   :  { %v1889_v48 = vmul.f32 %v7539_v23, %v7531_v17  ;;  %v7327_v23 = vpack.i.bf16 %v7671_v47, %v7670_v24 }
 0xaa4   :  { %6558 = vmatprep.mubr.msk.f32.mxu1 %vm1046_vm7, %v1889_v48  ;;  %v7672_v48 = vld [vmem:[#allocation2 + $0xd0] sm:$0xff] }
 0xab8   :  { %v1882_v50 = vpop.xlane.xlu1 %1881 }
 0xab9   :  { %7540 = vrcp.f32 %v1882_v50  ;;  %v7673_v50 = vld [vmem:[#allocation2 + $0xd8] sm:$0xff] }
 0xabc   :  { %v2157_v54 = vpop.permute.xlu1 %2156 }
 0xac3   :  { %v7541_v49 = vpop.eup %7540 }
 0xac4   :  { %v1890_v51 = vmul.f32 %v7541_v49, %v7533_v30  ;;  %v7332_v49 = vpack.i.bf16 %v7673_v50, %v7672_v48 }
 0xac6   :  { %6559 = vmatmul.mubr.msk.f32.vlgmr.msra.gmra.mrb[22].mxu1 %vm1046_vm7, %v1890_v51 }
 0xac7   :  { %6989 = vmatpush3.bf16.xpose.msk.msra.mxu1 %vm7967_vm6, %v6984_v44  ;;  %6572 = vmatprep.mubr.msk.f32.mxu1 %vm41_vm0, %v2157_v54 }
 0xace   :  { %6573 = vmatmul.mubr.msk.f32.vlgmr.msra.gmra.mrb[24].mxu1 %vm41_vm0, %v2159_v58 }
 0xb66   :  { %v6553_v62 = vpop.f32.mrb[16].mxu0 }
 0xb67   :  { %v1969_v0 = vpop.f32.mrb[17].mxu0 }
 0xb6e   :  { %v6567_v18 = vpop.f32.mrb[18].mxu0 }
 0xb6f   :  { %v2147_v1 = vpop.f32.mrb[19].mxu0  ;;  %v2250_v5 = vsel %vm1046_vm7, %v6567_v18, -inf }
 0xb70   :  { %2251 = vmax.xlane.f32.xlu0 %v2250_v5  ;;  %v2247_v6 = vsel %vm1046_vm7, %v2147_v1, -inf }
 0xb71   :  { %2248 = vmax.xlane.f32.xlu1 %v2247_v6 }
 0xb99   :  { %v8121_v10 = vpop.f32.mrb[22].mxu1 }
 0xb9a   :  { %v8123_v13 = vpop.f32.mrb[23].mxu1 }
 0xba1   :  { %v6574_v14 = vpop.f32.mrb[24].mxu1 }
 0xba2   :  { %v2238_v15 = vpop.f32.mrb[25].mxu1  ;;  %v2256_v39 = vsel %vm1046_vm7, %v6574_v14, -inf }
 0xba3   :  { %2257 = vmax.xlane.f32.xlu1 %v2256_v39  ;;  %v2253_v16 = vsel %vm1046_vm7, %v2238_v15, -inf }
 0xba4   :  { %2254 = vmax.xlane.f32.xlu0 %v2253_v16 }
 0xbfd   :  { %v2252_v59 = vpop.xlane.xlu0 %2251 }
 0xbfe   :  { %v2260_v61 = vsub.f32 %v6567_v18, %v2252_v59  ;;  %v2249_v19 = vpop.xlane.xlu1 %2248 }
 0xbff   :  { %v2259_v17 = vsub.f32 %v2147_v1, %v2249_v19 }
 0xc00   :  { %v2265_v7 = vmul.f32 1.442695, %v2260_v61 }
 0xc01   :  { %v2263_v22 = vmul.f32 1.442695, %v2259_v17 }
 0xc02   :  { %7542 = vpow2.f32 %v2265_v7 }
 0xc03   :  { %7544 = vpow2.f32 %v2263_v22 }
 0xc0c   :  { %v7543_v52 = vpop.eup %7542 }
 0xc0d   :  { %v7545_v30 = vpop.eup %7544  ;;  %v2274_v31 = vsel %vm1046_vm7, %v7543_v52, 0.0 }
 0xc0e   :  { %2275 = vadd.xlane.f32.xlu1 %v2274_v31  ;;  %v2271_v60 = vsel %vm1046_vm7, %v7545_v30, 0.0 }
 0xc0f   :  { %2272 = vadd.xlane.f32.xlu0 %v2271_v60 }
 0xc30   :  { %v2258_v33 = vpop.xlane.xlu1 %2257 }
 0xc31   :  { %v2262_v40 = vsub.f32 %v6574_v14, %v2258_v33  ;;  %v2255_v37 = vpop.xlane.xlu0 %2254 }
 0xc32   :  { %v2261_v2 = vsub.f32 %v2238_v15, %v2255_v37 }
 0xc33   :  { %v2269_v43 = vmul.f32 1.442695, %v2262_v40 }
 0xc34   :  { %v2267_v44 = vmul.f32 1.442695, %v2261_v2 }
 0xc35   :  { %7546 = vpow2.f32 %v2269_v43 }
 0xc36   :  { %7548 = vpow2.f32 %v2267_v44 }
 0xc3f   :  { %v7547_v8 = vpop.eup %7546 }
 0xc40   :  { %v7549_v21 = vpop.eup %7548  ;;  %v2280_v45 = vsel %vm1046_vm7, %v7547_v8, 0.0 }
 0xc41   :  { %2281 = vadd.xlane.f32.xlu1 %v2280_v45  ;;  %v2277_v46 = vsel %vm1046_vm7, %v7549_v21, 0.0 }
 0xc42   :  { %2278 = vadd.xlane.f32.xlu0 %v2277_v46 }
 0xc52   :  { %7323 = vrot.lane.b32.xlu1 %v7961_v25, %s7723_s21 }
 0xc56   :  { %7328 = vrot.lane.b32.xlu1 %v7327_v23, %s7704_s1 }
 0xc58   :  { %7318 = vrot.lane.b32.xlu0 %v7949_v20, %s7723_s21 }
 0xc5a   :  { %2469 = vrot.lane.b32.xlu1 %v8073_v57, %s7700_s26 }
 0xc5c   :  { %7333 = vrot.lane.b32.xlu0 %v7332_v49, %s7704_s1 }
 0xc5e   :  { %2485 = vrot.lane.b32.xlu1 %v1969_v0, %s7724_s22 }
 0xc60   :  { %2471 = vrot.lane.b32.xlu0 %v8071_v26, %s7700_s26 }
 0xc64   :  { %2487 = vrot.lane.b32.xlu0 %v6553_v62, %s7724_s22 }
 0xc9b   :  { %v2276_v54 = vpop.xlane.xlu1 %2275 }
 0xc9c   :  { %v2273_v25 = vpop.xlane.xlu0 %2272 }
 0xc9d   :  { %7550 = vrcp.f32 %v2273_v25 }
 0xc9e   :  { %7552 = vrcp.f32 %v2276_v54 }
 0xca7   :  { %v7551_v51 = vpop.eup %7550 }
 0xca8   :  { %v2287_v20 = vmul.f32 %v7551_v51, %v7545_v30  ;;  %v7553_v15 = vpop.eup %7552 }
 0xca9   :  { %v2288_v59 = vmul.f32 %v7553_v15, %v7543_v52 }
 0xcaa   :  { %6579 = vmatprep.mubr.msk.f32.mxu0 %vm1046_vm7, %v2287_v20 }
 0xcce   :  { %v2282_v58 = vpop.xlane.xlu1 %2281 }
 0xccf   :  { %7554 = vrcp.f32 %v2282_v58  ;;  %v2279_v57 = vpop.xlane.xlu0 %2278 }
 0xcd0   :  { %7556 = vrcp.f32 %v2279_v57 }
 0xcd2   :  { %v7324_v18 = vpop.permute.xlu1 %7323 }
 0xcd3   :  { %v7326_v1 = vunpack.i.h.bf16 %v7324_v18  ;;  %v7325_v0 = vunpack.i.l.bf16 %v7324_v18  ;;  %v7319_v5 = vpop.permute.xlu0 %7318 }
 0xcd4   :  { %v7321_v6 = vunpack.i.h.bf16 %v7319_v5  ;;  %v7320_v26 = vunpack.i.l.bf16 %v7319_v5 }
 0xcd5   :  { %v6994_v14 = vpack.c.bf16 %v7326_v1, %v7325_v0  ;;  %v6070_v1 = vld [vmem:[#allocation2 + $0x123] ss:$0 sm:$0xff] }
 0xcd6   :  { %v6990_v62 = vpack.c.bf16 %v7321_v6, %v7320_v26  ;;  %v7329_v17 = vpop.permute.xlu1 %7328 }
 0xcd7   :  { %6995 = vmatprep.subr.bf16.mxu1 %v6994_v14  ;;  %v7334_v7 = vpop.permute.xlu0 %7333  ;;  %v7331_v22 = vunpack.i.h.bf16 %v7329_v17  ;;  %v7330_v30 = vunpack.i.l.bf16 %v7329_v17 }
 0xcd8   :  { %6991 = vmatprep.subr.bf16.mxu0 %v6990_v62  ;;  %6997 = vmatpush3.bf16.msra.mxu1 %v6994_v14  ;;  %v7336_v31 = vunpack.i.h.bf16 %v7334_v7  ;;  %v7335_v60 = vunpack.i.l.bf16 %v7334_v7 }
 0xcd9   :  { %v7555_v39 = vpop.eup %7554  ;;  %6993 = vmatpush3.bf16.msra.mxu0 %v6990_v62  ;;  %v6998_v33 = vpack.c.bf16 %v7331_v22, %v7330_v30 }
 0xcda   :  { %v7557_v16 = vpop.eup %7556  ;;  %v2290_v19 = vmul.f32 %v7555_v39, %v7547_v8  ;;  %v7002_v40 = vpack.c.bf16 %v7336_v31, %v7335_v60  ;;  %v2470_v8 = vpop.permute.xlu1 %2469 }
 0xcdb   :  { %v2289_v61 = vmul.f32 %v7557_v16, %v7549_v21  ;;  %6999 = vmatprep.subr.bf16.mxu0 %v6998_v33  ;;  %v2472_v44 = vpop.permute.xlu0 %2471 }
 0xcdc   :  { %6580 = vmatmul.mubr.msk.f32.vlgmr.msra.gmra.mrb[20].mxu0 %vm1046_vm7, %v2288_v59 }
 0xcdd   :  { %6586 = vmatprep.mubr.msk.f32.mxu1 %vm1046_vm7, %v2289_v61  ;;  %7001 = vmatpush3.bf16.msra.mxu0 %v6998_v33 }
 0xcde   :  { %6587 = vmatmul.mubr.msk.f32.vlgmr.msra.gmra.mrb[26].mxu1 %vm1046_vm7, %v2290_v19  ;;  %7003 = vmatprep.subr.bf16.mxu0 %v7002_v40  ;;  %v2486_v45 = vpop.permute.xlu1 %2485 }
 0xcdf   :  { %v2488_v21 = vpop.permute.xlu0 %2487 }
 0xce1   :  { %7005 = vmatpush3.bf16.msra.mxu0 %v7002_v40 }
 0xdaf   :  { %v6581_v52 = vpop.f32.mrb[20].mxu0 }
 0xdb0   :  { %2503 = vrot.lane.b32.xlu0 %v6581_v52, %s7725_s23  ;;  %v2369_v37 = vpop.f32.mrb[21].mxu0 }
 0xdb1   :  { %v6588_v2 = vpop.f32.mrb[26].mxu1  ;;  %2501 = vrot.lane.b32.xlu1 %v2369_v37, %s7725_s23 }
 0xdb2   :  { %v2456_v43 = vpop.f32.mrb[27].mxu1 }
 0xdb4   :  { %2475 = vrot.lane.b32.xlu0 %v8077_v63, %s7700_s26  ;;  %v2513_v63 = vsel %vm41_vm0, %v8025_v56, %v2470_v8 }
 0xdb5   :  { %2473 = vrot.lane.b32.xlu1 %v8079_v36, %s7700_s26  ;;  %v2514_v36 = vsel %vm41_vm0, %v8023_v55, %v2472_v44 }
 0xdb8   :  { %2491 = vrot.lane.b32.xlu0 %v8121_v10, %s7724_s22  ;;  %v2517_v10 = vsel %vm1046_vm7, %v2513_v63, %v2486_v45 }
 0xdb9   :  { %2489 = vrot.lane.b32.xlu1 %v8123_v13, %s7724_s22  ;;  %v2518_v13 = vsel %vm1046_vm7, %v2514_v36, %v2488_v21 }
 0xdbc   :  { %2507 = vrot.lane.b32.xlu0 %v6588_v2, %s7725_s23 }
 0xdbd   :  { %2505 = vrot.lane.b32.xlu1 %v2456_v43, %s7725_s23 }
 0xe22   :  { %v2504_v46 = vpop.permute.xlu0 %2503 }
 0xe23   :  { %v2502_v24 = vpop.permute.xlu1 %2501  ;;  %v2523_v23 = vsel %vm2521_vm8, %v2518_v13, %v2504_v46 }
 0xe24   :  { %v2522_v47 = vsel %vm2521_vm8, %v2517_v10, %v2502_v24 }
 0xe25   :  { %6597 = vmatprep.mubr.msk.f32.mxu0 %vm486_vm3, %v2522_v47 }
 0xe26   :  { %v2476_v48 = vpop.permute.xlu0 %2475  ;;  %6598 = vmatmul.mubr.msk.f32.vlgmr.msra.gmra.mrb[22].mxu0 %vm486_vm3, %v2523_v23 }
 0xe27   :  { %v2474_v50 = vpop.permute.xlu1 %2473  ;;  %v2516_v51 = vsel %vm41_vm0, %v8029_v3, %v2476_v48 }
 0xe28   :  { %v2515_v55 = vsel %vm41_vm0, %v8031_v4, %v2474_v50 }
 0xe2a   :  { %v2492_v56 = vpop.permute.xlu0 %2491 }
 0xe2b   :  { %v2490_v49 = vpop.permute.xlu1 %2489  ;;  %v2520_v58 = vsel %vm1046_vm7, %v2516_v51, %v2492_v56  ;;  %v2764_v51 = vld [vmem:[#allocation2 + $0x100] sm:$0xff] }
 0xe2c   :  { %v2519_v20 = vsel %vm1046_vm7, %v2515_v55, %v2490_v49 }
 0xe2e   :  { %v2508_v25 = vpop.permute.xlu0 %2507 }
 0xe2f   :  { %v2506_v54 = vpop.permute.xlu1 %2505  ;;  %v2525_v18 = vsel %vm2521_vm8, %v2520_v58, %v2508_v25  ;;  %v2766_v58 = vld [vmem:[#allocation2 + $0x110] sm:$0xff] }
 0xe30   :  { %v2524_v57 = vsel %vm2521_vm8, %v2519_v20, %v2506_v54  ;;  %v2765_v20 = vld [vmem:[#allocation2 + $0x108] sm:$0xff] }
 0xe31   :  { %6600 = vmatprep.mubr.msk.f32.mxu0 %vm486_vm3, %v2524_v57  ;;  %v7006_v54 = vpack.c.bf16 %v2765_v20, %v2764_v51  ;;  %v2767_v57 = vld [vmem:[#allocation2 + $0x118] sm:$0xff]  ;;  %v3134_v51 = vld [vmem:[#allocation2 + $0x160] sm:$0xff] }
 0xe32   :  { %6601 = vmatmul.mubr.msk.f32.gmra.mrb[24].mxu0 %vm486_vm3, %v2525_v18  ;;  %v7010_v18 = vpack.c.bf16 %v2767_v57, %v2766_v58  ;;  %v2907_v58 = vld [vmem:[#allocation2 + $0x28] sm:$0xff] }
 0xe33   :  { %7007 = vmatprep.subr.bf16.mxu1 %v7006_v54 }
 0xe34   :  { %7009 = vmatpush3.bf16.msra.mxu1 %v7006_v54  ;;  %v2906_v54 = vld [vmem:[#allocation2 + $0x20] sm:$0xff] }
 0xe35   :  { %7011 = vmatprep.subr.bf16.mxu1 %v7010_v18  ;;  %v7014_v57 = vpack.c.bf16 %v2907_v58, %v2906_v54 }
 0xe37   :  { %7015 = vmatprep.subr.bf16.mxu0 %v7014_v57 }
 0xe38   :  { %7013 = vmatpush3.bf16.msra.mxu1 %v7010_v18  ;;  %7017 = vmatpush3.bf16.msra.mxu0 %v7014_v57  ;;  %v2908_v18 = vld [vmem:[#allocation2 + $0x30] sm:$0xff] }
 0xe39   :  { %7046 = vmatprep.subr.bf16.mxu1 %v7703_v9 }
 0xef9   :  { %v6599_v0 = vpop.f32.mrb[22].mxu0 }
 0xefa   :  { %v2635_v4 = vadd.f32 %v6599_v0, %v6070_v1  ;;  %v2629_v5 = vpop.f32.mrb[23].mxu0  ;;  %v6015_v0 = vld [vmem:[#allocation2 + $0x121] ss:$0 sm:$0xff] }
 0xefb   :  { %v2630_v6 = vadd.f32 %v6070_v1, %v2629_v5 }
 0xefc   :  { %2654 = vrot.lane.b32.xlu0 %v2635_v4, %s7704_s1 }
 0xefd   :  { %2652 = vrot.lane.b32.xlu1 %v2630_v6, %s7704_s1 }
 0xf05   :  { %v6602_v3 = vpop.f32.mrb[24].mxu0 }
 0xf06   :  { %v2645_v26 = vadd.f32 %v6602_v3, %v6070_v1  ;;  %v2639_v14 = vpop.f32.mrb[25].mxu0 }
 0xf07   :  { %v2640_v62 = vadd.f32 %v6070_v1, %v2639_v14 }
 0xf08   :  { %2658 = vrot.lane.b32.xlu0 %v2645_v26, %s7704_s1 }
 0xf09   :  { %2656 = vrot.lane.b32.xlu1 %v2640_v62, %s7704_s1 }
 0xf6e   :  { %v2655_v15 = vpop.permute.xlu0 %2654 }
 0xf6f   :  { %v2665_v39 = vmul.f32 %v2655_v15, %v7920_v38  ;;  %v2653_v16 = vpop.permute.xlu1 %2652 }
 0xf70   :  { %v2664_v59 = vmul.f32 %v2653_v16, %v7920_v38 }
 0xf71   :  { %2674 = vrot.lane.b32.xlu0 %v2665_v39, %s7704_s1 }
 0xf72   :  { %2672 = vrot.lane.b32.xlu1 %v2664_v59, %s7704_s1 }
 0xf7a   :  { %v2659_v61 = vpop.permute.xlu0 %2658 }
 0xf7b   :  { %v2667_v19 = vmul.f32 %v2659_v61, %v7923_v12  ;;  %v2657_v17 = vpop.permute.xlu1 %2656 }
 0xf7c   :  { %v2666_v7 = vmul.f32 %v2657_v17, %v7923_v12 }
 0xf7d   :  { %2678 = vrot.lane.b32.xlu0 %v2667_v19, %s7704_s1 }
 0xf7e   :  { %2676 = vrot.lane.b32.xlu1 %v2666_v7, %s7704_s1 }
 0xfe3   :  { %v2675_v22 = vpop.permute.xlu0 %2674 }
 0xfe4   :  { %v8192_v30 = vadd.f32 %v2675_v22, %v7861_v32  ;;  %v2673_v31 = vpop.permute.xlu1 %2672 }
 0xfe5   :  { %v8195_v60 = vadd.f32 %v2673_v31, %v7864_v35 }
 0xfe6   :  { %v2691_v33 = vsel %vm486_vm3, %v8192_v30, 0.0 }
 0xfe7   :  { %2692 = vadd.xlane.f32.xlu0 %v2691_v33  ;;  %v2688_v40 = vsel %vm486_vm3, %v8195_v60, 0.0  ;;  %v3052_v33 = vld [vmem:[#allocation2 + $0x128] sm:$0xff] }
 0xfe8   :  { %2689 = vadd.xlane.f32.xlu1 %v2688_v40  ;;  %v3053_v40 = vld [vmem:[#allocation2 + $0x130] sm:$0xff] }
 0xfef   :  { %v2679_v52 = vpop.permute.xlu0 %2678 }
 0xff0   :  { %v8202_v37 = vadd.f32 %v2679_v52, %v7872_v41  ;;  %v2677_v2 = vpop.permute.xlu1 %2676 }
 0xff1   :  { %v8205_v32 = vadd.f32 %v2677_v2, %v7874_v42 }
 0xff2   :  { %v2697_v35 = vsel %vm486_vm3, %v8202_v37, 0.0 }
 0xff3   :  { %2698 = vadd.xlane.f32.xlu1 %v2697_v35  ;;  %v2694_v43 = vsel %vm486_vm3, %v8205_v32, 0.0 }
 0xff4   :  { %2695 = vadd.xlane.f32.xlu0 %v2694_v43 }
0x1074   :  { %v2693_v44 = vpop.xlane.xlu0 %2692 }
0x1075   :  { %v2701_v8 = vmul.f32 0.03125, %v2693_v44  ;;  %v2690_v21 = vpop.xlane.xlu1 %2689  ;;  %v7047_v44 = vpack.c.bf16 %v3053_v40, %v3052_v33 }
0x1076   :  { %v2700_v45 = vmul.f32 0.03125, %v2690_v21  ;;  %v3054_v21 = vld [vmem:[#allocation2 + $0x138] sm:$0xff] }
0x1077   :  { %v2705_v63 = vsub.f32 %v8192_v30, %v2701_v8 }
0x1078   :  { %v2704_v41 = vsub.f32 %v8195_v60, %v2700_v45  ;;  %v3055_v45 = vld [vmem:[#allocation2 + $0x140] sm:$0xff] }
0x1079   :  { %v2709_v46 = vmul.f32 %v2705_v63, %v2705_v63 }
0x107a   :  { %v2708_v36 = vmul.f32 %v2704_v41, %v2704_v41 }
0x107b   :  { %v2715_v42 = vsel %vm486_vm3, %v2709_v46, 0.0 }
0x107c   :  { %2716 = vadd.xlane.f32.xlu1 %v2715_v42  ;;  %v2712_v10 = vsel %vm486_vm3, %v2708_v36, 0.0 }
0x107d   :  { %2713 = vadd.xlane.f32.xlu0 %v2712_v10 }
0x1080   :  { %v2699_v24 = vpop.xlane.xlu1 %2698 }
0x1081   :  { %v2703_v13 = vmul.f32 0.03125, %v2699_v24  ;;  %v2696_v47 = vpop.xlane.xlu0 %2695 }
0x1082   :  { %v2702_v23 = vmul.f32 0.03125, %v2696_v47 }
0x1083   :  { %v8216_v48 = vsub.f32 %v8202_v37, %v2703_v13 }
0x1084   :  { %v8219_v50 = vsub.f32 %v8205_v32, %v2702_v23 }
0x1085   :  { %v2711_v56 = vmul.f32 %v8216_v48, %v8216_v48 }
0x1086   :  { %v2710_v49 = vmul.f32 %v8219_v50, %v8219_v50 }
0x1087   :  { %v2721_v55 = vsel %vm486_vm3, %v2711_v56, 0.0 }
0x1088   :  { %2722 = vadd.xlane.f32.xlu1 %v2721_v55  ;;  %v2718_v25 = vsel %vm486_vm3, %v2710_v49, 0.0  ;;  %v3131_v55 = vld [vmem:[#allocation2 + $0x148] sm:$0xff] }
0x1089   :  { %2719 = vadd.xlane.f32.xlu0 %v2718_v25  ;;  %v3132_v25 = vld [vmem:[#allocation2 + $0x150] sm:$0xff] }
0x1099   :  { %2756 = vrot.lane.b32.xlu1 %v7923_v12, %s7726_s24  ;;  %v636_v12 = vadd.f32 %v6015_v0, %v7912_v29 }
0x109b   :  { %v669_v14 = vrot.slane %v636_v12, %v7910_v27  ;;  %v2913_v12 = vld [vmem:[#allocation2 + $0x58] sm:$0xff] }
0x109d   :  { %v677_v62 = vrot.slane %v669_v14, %v7910_v27  ;;  %v670_v2 = vcombine.high %v669_v14, %v669_v14  ;;  %v2914_v14 = vld [vmem:[#allocation2 + $0x60] sm:$0xff] }
0x109f   :  { %2754 = vrot.lane.b32.xlu0 %v7920_v38, %s7726_s24  ;;  %v8236_v17 = vrot.slane %v677_v62, %v7915_v34  ;;  %v2915_v62 = vld [vmem:[#allocation2 + $0x68] sm:$0xff] }
0x1109   :  { %v2717_v1 = vpop.xlane.xlu1 %2716 }
0x110a   :  { %v2725_v4 = vmul.f32 0.03125, %v2717_v1  ;;  %v2714_v5 = vpop.xlane.xlu0 %2713  ;;  %v2909_v1 = vld [vmem:[#allocation2 + $0x38] sm:$0xff] }
0x110b   :  { %v2724_v6 = vmul.f32 0.03125, %v2714_v5  ;;  %v7018_v0 = vpack.c.bf16 %v2909_v1, %v2908_v18  ;;  %v2911_v5 = vld [vmem:[#allocation2 + $0x48] sm:$0xff] }
0x110c   :  { %v2729_v3 = vadd.f32 1e-06, %v2725_v4  ;;  %v2910_v4 = vld [vmem:[#allocation2 + $0x40] sm:$0xff] }
0x110d   :  { %v2728_v26 = vadd.f32 1e-06, %v2724_v6  ;;  %7019 = vmatprep.subr.bf16.mxu0 %v7018_v0  ;;  %v7022_v6 = vpack.c.bf16 %v2911_v5, %v2910_v4 }
0x110e   :  { %7558 = vrsqrt.f32 %v2729_v3  ;;  %7021 = vmatpush3.bf16.msra.mxu0 %v7018_v0  ;;  %v2912_v3 = vld [vmem:[#allocation2 + $0x50] sm:$0xff] }
0x110f   :  { %7560 = vrsqrt.f32 %v2728_v26  ;;  %7023 = vmatprep.subr.bf16.mxu0 %v7022_v6  ;;  %v7026_v26 = vpack.c.bf16 %v2913_v12, %v2912_v3 }
0x1112   :  { %7025 = vmatpush3.bf16.msra.mxu0 %v7022_v6 }
0x1113   :  { %7027 = vmatprep.subr.bf16.mxu0 %v7026_v26 }
0x1115   :  { %v2723_v15 = vpop.xlane.xlu1 %2722 }
0x1116   :  { %v2727_v39 = vmul.f32 0.03125, %v2723_v15  ;;  %v2720_v38 = vpop.xlane.xlu0 %2719  ;;  %7029 = vmatpush3.bf16.msra.mxu0 %v7026_v26  ;;  %v7030_v15 = vpack.c.bf16 %v2915_v62, %v2914_v14 }
0x1117   :  { %v2726_v16 = vmul.f32 0.03125, %v2720_v38  ;;  %v2917_v38 = vld [vmem:[#allocation2 + $0x78] sm:$0xff] }
0x1118   :  { %v7559_v59 = vpop.eup %7558  ;;  %v2731_v61 = vadd.f32 1e-06, %v2727_v39  ;;  %7031 = vmatprep.subr.bf16.mxu0 %v7030_v15  ;;  %v2916_v39 = vld [vmem:[#allocation2 + $0x70] sm:$0xff] }
0x1119   :  { %v7561_v19 = vpop.eup %7560  ;;  %v2730_v7 = vadd.f32 1e-06, %v2726_v16  ;;  %v2737_v22 = vmul.f32 %v7559_v59, %v2705_v63  ;;  %v684_v63 = vrot.slane %v670_v2, %v7910_v27  ;;  %v2757_v23 = vpop.permute.xlu1 %2756  ;;  %v7034_v16 = vpack.c.bf16 %v2917_v38, %v2916_v39  ;;  %v2918_v59 = vld [vmem:[#allocation2 + $0x80] sm:$0xff] }
0x111a   :  { %7562 = vrsqrt.f32 %v2731_v61  ;;  %v2736_v29 = vmul.f32 %v7561_v19, %v2704_v41  ;;  %v2755_v35 = vpop.permute.xlu0 %2754  ;;  %v7050_v41 = vpack.c.bf16 %v3055_v45, %v3054_v21  ;;  %7033 = vmatpush3.bf16.msra.mxu0 %v7030_v15  ;;  %v2919_v61 = vld [vmem:[#allocation2 + $0x88] sm:$0xff] }
0x111b   :  { %7564 = vrsqrt.f32 %v2730_v7  ;;  %v2751_v31 = vmul.f32 %v8236_v17, %v2737_v22  ;;  %v8245_v42 = vrot.slane %v684_v63, %v7915_v34  ;;  %7035 = vmatprep.subr.bf16.mxu0 %v7034_v16  ;;  %v7038_v19 = vpack.c.bf16 %v2919_v61, %v2918_v59  ;;  %v2920_v7 = vld [vmem:[#allocation2 + $0x90] sm:$0xff]  ;;  %v2921_v22 = vld [vmem:[#allocation2 + $0x98] sm:$0xff] }
0x111c   :  { %v2750_v52 = vmul.f32 %v8236_v17, %v2736_v29  ;;  %v7042_v29 = vpack.c.bf16 %v2921_v22, %v2920_v7  ;;  %v6080_v7 = vld [vmem:[#allocation2 + $0x125] ss:$0 sm:$0xff] }
0x111d   :  { %v2761_v8 = vadd.f32 %v2755_v35, %v2751_v31  ;;  %v6075_v31 = vld [vmem:[#allocation2 + $0x124] ss:$0 sm:$0xff] }
0x111e   :  { %v2760_v43 = vadd.f32 %v2755_v35, %v2750_v52  ;;  %7037 = vmatpush3.bf16.msra.mxu0 %v7034_v16 }
0x111f   :  { %7039 = vmatprep.subr.bf16.mxu0 %v7038_v19 }
0x1120   :  { %6611 = vmatprep.mubr.msk.f32.mxu1 %vm486_vm3, %v2760_v43 }
0x1121   :  { %6612 = vmatmul.mubr.msk.f32.vlgmr.msra.gmra.mrb[28].mxu1 %vm486_vm3, %v2761_v8 }
0x1122   :  { %7048 = vmatpush3.bf16.msra.mxu1 %v7047_v44  ;;  %7041 = vmatpush3.bf16.msra.mxu0 %v7038_v19 }
0x1123   :  { %7049 = vmatprep.subr.bf16.mxu1 %v7703_v9  ;;  %7043 = vmatprep.subr.bf16.mxu0 %v7042_v29 }
0x1124   :  { %v7563_v46 = vpop.eup %7562 }
0x1125   :  { %v7565_v36 = vpop.eup %7564  ;;  %v2739_v10 = vmul.f32 %v7563_v46, %v8216_v48  ;;  %v7053_v48 = vpack.c.bf16 %v3132_v25, %v3131_v55 }
0x1126   :  { %v2738_v24 = vmul.f32 %v7565_v36, %v8219_v50  ;;  %7051 = vmatpush3.bf16.msra.mxu1 %v7050_v41  ;;  %v3133_v50 = vld [vmem:[#allocation2 + $0x158] sm:$0xff]  ;;  %7045 = vmatpush3.bf16.msra.mxu0 %v7042_v29 }
0x1127   :  { %v2753_v13 = vmul.f32 %v8245_v42, %v2739_v10  ;;  %7052 = vmatprep.subr.bf16.mxu1 %v7703_v9  ;;  %v7056_v20 = vpack.c.bf16 %v3134_v51, %v3133_v50 }
0x1128   :  { %v2752_v47 = vmul.f32 %v8245_v42, %v2738_v24 }
0x1129   :  { %v2763_v49 = vadd.f32 %v2757_v23, %v2753_v13 }
0x112a   :  { %v2762_v56 = vadd.f32 %v2757_v23, %v2752_v47 }
0x112c   :  { %6614 = vmatprep.mubr.msk.f32.mxu1 %vm486_vm3, %v2762_v56 }
0x112d   :  { %6615 = vmatmul.mubr.msk.f32.gmra.mrb[30].mxu1 %vm486_vm3, %v2763_v49 }
0x112e   :  { %6663 = vmatprep.mubr.msk.f32.mxu1 %vm7705_vm1, %v7706_v11 }
0x1131   :  { %6664 = vmatmul.mubr.msk.f32.vlgmr.msra.gmra.mrb[32].mxu1 %vm486_vm3, %v7880_v53 }
0x1132   :  { %7054 = vmatpush3.bf16.msra.mxu1 %v7053_v48  ;;  %6674 = vmatprep.mubr.msk.f32.mxu1 %vm7705_vm1, %v7706_v11 }
0x1133   :  { %7055 = vmatprep.subr.bf16.mxu1 %v7703_v9 }
0x1136   :  { %7057 = vmatpush3.bf16.msra.mxu1 %v7056_v20 }
0x1139   :  { %6675 = vmatmul.mubr.msk.f32.vlgmr.msra.gmra.mrb[34].mxu1 %vm486_vm3, %v7880_v53 }
0x11f4   :  { %v6613_v33 = vpop.f32.mrb[28].mxu1 }
0x11f5   :  { %v2857_v40 = vadd.f32 %v6613_v33, %v6075_v31  ;;  %v2851_v52 = vpop.f32.mrb[29].mxu1 }
0x11f6   :  { %v2852_v2 = vadd.f32 %v6075_v31, %v2851_v52 }
0x11f7   :  { %v2871_v35 = vmul.f32 %v2857_v40, %v2857_v40 }
0x11f8   :  { %v2870_v43 = vmul.f32 %v2852_v2, %v2852_v2 }
0x11f9   :  { %v2875_v44 = vmul.f32 %v2871_v35, %v2857_v40 }
0x11fa   :  { %v2874_v8 = vmul.f32 %v2870_v43, %v2852_v2 }
0x11fb   :  { %v2879_v21 = vmul.f32 0.044715, %v2875_v44 }
0x11fc   :  { %v2878_v45 = vmul.f32 0.044715, %v2874_v8 }
0x11fd   :  { %v2883_v63 = vadd.f32 %v2879_v21, %v2857_v40 }
0x11fe   :  { %v2882_v41 = vadd.f32 %v2878_v45, %v2852_v2 }
0x11ff   :  { %v2887_v46 = vmul.f32 0.7978846, %v2883_v63 }
0x1200   :  { %v2886_v36 = vmul.f32 0.7978846, %v2882_v41  ;;  %v6616_v10 = vpop.f32.mrb[30].mxu1 }
0x1201   :  { %7566 = vtanh.f32 %v2887_v46  ;;  %v2867_v24 = vadd.f32 %v6616_v10, %v6075_v31  ;;  %v2861_v13 = vpop.f32.mrb[31].mxu1 }
0x1202   :  { %v2862_v47 = vadd.f32 %v6075_v31, %v2861_v13  ;;  %7568 = vtanh.f32 %v2886_v36 }
0x1203   :  { %v2873_v23 = vmul.f32 %v2867_v24, %v2867_v24 }
0x1204   :  { %v2872_v56 = vmul.f32 %v2862_v47, %v2862_v47  ;;  %v8263_v49 = vpop.f32.mrb[32].mxu1 }
0x1205   :  { %v2877_v55 = vmul.f32 %v2873_v23, %v2867_v24  ;;  %v6665_v25 = vpop.f32.mrb[33].mxu1 }
0x1206   :  { %v2876_v48 = vmul.f32 %v2872_v56, %v2862_v47 }
0x1207   :  { %v2881_v50 = vmul.f32 0.044715, %v2877_v55 }
0x1208   :  { %v2880_v51 = vmul.f32 0.044715, %v2876_v48 }
0x1209   :  { %v2885_v20 = vadd.f32 %v2881_v50, %v2867_v24 }
0x120a   :  { %v2884_v54 = vadd.f32 %v2880_v51, %v2862_v47 }
0x120b   :  { %v7567_v58 = vpop.eup %7566  ;;  %v2889_v57 = vmul.f32 0.7978846, %v2885_v20 }
0x120c   :  { %v7569_v18 = vpop.eup %7568  ;;  %v2895_v1 = vadd.f32 1.0, %v7567_v58  ;;  %v2888_v0 = vmul.f32 0.7978846, %v2884_v54  ;;  %v8265_v4 = vpop.f32.mrb[34].mxu1 }
0x120d   :  { %v6676_v5 = vpop.f32.mrb[35].mxu1  ;;  %v2894_v6 = vadd.f32 1.0, %v7569_v18  ;;  %7570 = vtanh.f32 %v2889_v57 }
0x120e   :  { %v2899_v3 = vmul.f32 0.5, %v2895_v1  ;;  %7572 = vtanh.f32 %v2888_v0 }
0x120f   :  { %v2898_v12 = vmul.f32 0.5, %v2894_v6 }
0x1210   :  { %v2903_v14 = vmul.f32 %v2899_v3, %v2857_v40  ;;  %v6081_v3 = vld [vmem:[#allocation2 + $0x1a8] ss:$0 sm:$0xff] }
0x1211   :  { %v2902_v26 = vmul.f32 %v2898_v12, %v2852_v2 }
0x1213   :  { %6649 = vmatprep.mubr.f32.mxu0 %v2902_v26 }
0x1214   :  { %6650 = vmatmul.mubr.f32.vlgmr.msra.gmra.mrb[26].mxu0 %v2903_v14 }
0x1217   :  { %v7571_v62 = vpop.eup %7570 }
0x1218   :  { %v7573_v15 = vpop.eup %7572  ;;  %v2897_v39 = vadd.f32 1.0, %v7571_v62  ;;  %v3128_v62 = vadd.f32 %v6081_v3, %v8263_v49  ;;  %v3334_v49 = vld [vmem:[#allocation2 + $0x178] sm:$0xff] }
0x1219   :  { %v2896_v38 = vadd.f32 1.0, %v7573_v15 }
0x121a   :  { %v2901_v16 = vmul.f32 0.5, %v2897_v39 }
0x121b   :  { %v2900_v59 = vmul.f32 0.5, %v2896_v38  ;;  %v3217_v38 = vrot.slane %v3128_v62, %v7910_v27 }
0x121c   :  { %v2905_v19 = vmul.f32 %v2901_v16, %v2867_v24 }
0x121d   :  { %v2904_v61 = vmul.f32 %v2900_v59, %v2862_v47  ;;  %v3218_v16 = vcombine.high %v3217_v38, %v3217_v38 }
0x121f   :  { %6652 = vmatprep.mubr.f32.mxu0 %v2904_v61  ;;  %v3232_v59 = vrot.slane %v3218_v16, %v7910_v27 }
0x1220   :  { %6653 = vmatmul.mubr.f32.gmra.mrb[28].mxu0 %v2905_v19  ;;  %v3332_v19 = vld [vmem:[#allocation2 + $0x168] sm:$0xff] }
0x1221   :  { %v8311_v61 = vrot.slane %v3232_v59, %v7915_v34 }
0x12e7   :  { %v6651_v22 = vpop.f32.mrb[26].mxu0 }
0x12e8   :  { %v2999_v29 = vadd.f32 %v6651_v22, %v6080_v7  ;;  %v2993_v31 = vpop.f32.mrb[27].mxu0 }
0x12e9   :  { %v2994_v33 = vadd.f32 %v6080_v7, %v2993_v31  ;;  %v3335_v31 = vld [vmem:[#allocation2 + $0x180] sm:$0xff] }
0x12ea   :  { %3018 = vrot.lane.b32.xlu0 %v2999_v29, %s7726_s24  ;;  %v3225_v29 = vrot.slane %v3217_v38, %v7910_v27 }
0x12eb   :  { %3016 = vrot.lane.b32.xlu1 %v2994_v33, %s7726_s24  ;;  %v7062_v33 = vpack.c.bf16 %v3335_v31, %v3334_v49 }
0x12f3   :  { %v6654_v40 = vpop.f32.mrb[28].mxu0 }
0x12f4   :  { %v3009_v52 = vadd.f32 %v6654_v40, %v6080_v7  ;;  %v3003_v2 = vpop.f32.mrb[29].mxu0  ;;  %v8317_v40 = vrot.slane %v3225_v29, %v7915_v34 }
0x12f5   :  { %v3004_v35 = vadd.f32 %v6080_v7, %v3003_v2  ;;  %v3333_v7 = vld [vmem:[#allocation2 + $0x170] sm:$0xff] }
0x12f6   :  { %3022 = vrot.lane.b32.xlu0 %v3009_v52, %s7726_s24  ;;  %v7058_v22 = vpack.c.bf16 %v3333_v7, %v3332_v19 }
0x12f7   :  { %3020 = vrot.lane.b32.xlu1 %v3004_v35, %s7726_s24 }
0x12f8   :  { %7059 = vmatprep.subr.bf16.mxu1 %v7058_v22 }
0x12f9   :  { %7061 = vmatpush3.bf16.msra.mxu1 %v7058_v22 }
0x12fa   :  { %7063 = vmatprep.subr.bf16.mxu1 %v7062_v33 }
0x12fd   :  { %7065 = vmatpush3.bf16.msra.mxu1 %v7062_v33 }
0x135c   :  { %v3019_v43 = vpop.permute.xlu0 %3018 }
0x135d   :  { %v3029_v44 = vmul.f32 %v3019_v43, %v8236_v17  ;;  %v3017_v8 = vpop.permute.xlu1 %3016 }
0x135e   :  { %v3028_v21 = vmul.f32 %v3017_v8, %v8236_v17 }
0x135f   :  { %3038 = vrot.lane.b32.xlu0 %v3029_v44, %s7702_s29 }
0x1360   :  { %3036 = vrot.lane.b32.xlu1 %v3028_v21, %s7702_s29 }
0x1368   :  { %v3023_v45 = vpop.permute.xlu0 %3022 }
0x1369   :  { %v3031_v63 = vmul.f32 %v3023_v45, %v8245_v42  ;;  %v3021_v41 = vpop.permute.xlu1 %3020 }
0x136a   :  { %v3030_v46 = vmul.f32 %v3021_v41, %v8245_v42 }
0x136b   :  { %3042 = vrot.lane.b32.xlu0 %v3031_v63, %s7702_s29 }
0x136c   :  { %3040 = vrot.lane.b32.xlu1 %v3030_v46, %s7702_s29 }
0x13d1   :  { %v3039_v36 = vpop.permute.xlu0 %3038 }
0x13d2   :  { %v8280_v10 = vadd.f32 %v3039_v36, %v8192_v30  ;;  %v3037_v24 = vpop.permute.xlu1 %3036 }
0x13d3   :  { %v8283_v17 = vadd.f32 %v3037_v24, %v8195_v60 }
0x13d4   :  { %v3259_v13 = vsel %vm486_vm3, %v8280_v10, 0.0 }
0x13d5   :  { %3260 = vadd.xlane.f32.xlu0 %v3259_v13  ;;  %v3256_v47 = vsel %vm486_vm3, %v8283_v17, 0.0 }
0x13d6   :  { %3257 = vadd.xlane.f32.xlu1 %v3256_v47 }
0x13dd   :  { %v3043_v42 = vpop.permute.xlu0 %3042 }
0x13de   :  { %v8290_v23 = vadd.f32 %v3043_v42, %v8202_v37  ;;  %v3041_v56 = vpop.permute.xlu1 %3040 }
0x13df   :  { %v8293_v30 = vadd.f32 %v3041_v56, %v8205_v32 }
0x13e0   :  { %v3265_v60 = vsel %vm486_vm3, %v8290_v23, 0.0 }
0x13e1   :  { %3266 = vadd.xlane.f32.xlu1 %v3265_v60  ;;  %v3262_v55 = vsel %vm486_vm3, %v8293_v30, 0.0 }
0x13e2   :  { %3263 = vadd.xlane.f32.xlu0 %v3262_v55 }
0x1462   :  { %v3261_v25 = vpop.xlane.xlu0 %3260 }
0x1463   :  { %v3269_v48 = vmul.f32 0.03125, %v3261_v25  ;;  %v3258_v50 = vpop.xlane.xlu1 %3257 }
0x1464   :  { %v3268_v51 = vmul.f32 0.03125, %v3258_v50 }
0x1465   :  { %v3273_v20 = vsub.f32 %v8280_v10, %v3269_v48 }
0x1466   :  { %v3272_v37 = vsub.f32 %v8283_v17, %v3268_v51 }
0x1467   :  { %v3277_v54 = vmul.f32 %v3273_v20, %v3273_v20 }
0x1468   :  { %v3276_v58 = vmul.f32 %v3272_v37, %v3272_v37 }
0x1469   :  { %v3283_v32 = vsel %vm486_vm3, %v3277_v54, 0.0 }
0x146a   :  { %3284 = vadd.xlane.f32.xlu1 %v3283_v32  ;;  %v3280_v57 = vsel %vm486_vm3, %v3276_v58, 0.0 }
0x146b   :  { %3281 = vadd.xlane.f32.xlu0 %v3280_v57 }
0x146e   :  { %v3267_v18 = vpop.xlane.xlu1 %3266 }
0x146f   :  { %v3271_v1 = vmul.f32 0.03125, %v3267_v18  ;;  %v3264_v0 = vpop.xlane.xlu0 %3263 }
0x1470   :  { %v3270_v5 = vmul.f32 0.03125, %v3264_v0 }
0x1471   :  { %v3275_v6 = vsub.f32 %v8290_v23, %v3271_v1  ;;  %v6085_v1 = vld [vmem:[#allocation2 + $0x1aa] ss:$0 sm:$0xff] }
0x1472   :  { %v3274_v12 = vsub.f32 %v8293_v30, %v3270_v5 }
0x1473   :  { %v3279_v26 = vmul.f32 %v3275_v6, %v3275_v6 }
0x1474   :  { %v3278_v14 = vmul.f32 %v3274_v12, %v3274_v12 }
0x1475   :  { %v3289_v15 = vsel %vm486_vm3, %v3279_v26, 0.0 }
0x1476   :  { %3290 = vadd.xlane.f32.xlu1 %v3289_v15  ;;  %v3286_v39 = vsel %vm486_vm3, %v3278_v14, 0.0 }
0x1477   :  { %3287 = vadd.xlane.f32.xlu0 %v3286_v39 }
0x1487   :  { %3318 = vrot.lane.b32.xlu1 %v8311_v61, %s7702_s29 }
0x148d   :  { %3316 = vrot.lane.b32.xlu0 %v8317_v40, %s7702_s29 }
0x14f7   :  { %v3285_v52 = vpop.xlane.xlu1 %3284 }
0x14f8   :  { %v3293_v2 = vmul.f32 0.03125, %v3285_v52  ;;  %v3282_v35 = vpop.xlane.xlu0 %3281 }
0x14f9   :  { %v3292_v43 = vmul.f32 0.03125, %v3282_v35 }
0x14fa   :  { %v3297_v44 = vadd.f32 1e-06, %v3293_v2 }
0x14fb   :  { %v3296_v8 = vadd.f32 1e-06, %v3292_v43 }
0x14fc   :  { %7574 = vrsqrt.f32 %v3297_v44 }
0x14fd   :  { %7576 = vrsqrt.f32 %v3296_v8 }
0x1503   :  { %v3291_v21 = vpop.xlane.xlu1 %3290 }
0x1504   :  { %v3295_v45 = vmul.f32 0.03125, %v3291_v21  ;;  %v3288_v63 = vpop.xlane.xlu0 %3287 }
0x1505   :  { %v3294_v41 = vmul.f32 0.03125, %v3288_v63 }
0x1506   :  { %v7575_v46 = vpop.eup %7574  ;;  %v3299_v36 = vadd.f32 1e-06, %v3295_v45 }
0x1507   :  { %v7577_v24 = vpop.eup %7576  ;;  %v3298_v13 = vadd.f32 1e-06, %v3294_v41  ;;  %v3305_v47 = vmul.f32 %v7575_v46, %v3273_v20  ;;  %v3319_v32 = vpop.permute.xlu1 %3318 }
0x1508   :  { %7578 = vrsqrt.f32 %v3299_v36  ;;  %v3304_v42 = vmul.f32 %v7577_v24, %v3272_v37  ;;  %v3317_v56 = vpop.permute.xlu0 %3316 }
0x1509   :  { %7580 = vrsqrt.f32 %v3298_v13  ;;  %v3323_v60 = vmul.f32 %v3317_v56, %v3305_v47 }
0x150a   :  { %v3322_v55 = vmul.f32 %v3317_v56, %v3304_v42 }
0x150b   :  { %v3329_v48 = vadd.f32 %v3323_v60, %v8317_v40 }
0x150c   :  { %v3328_v25 = vadd.f32 %v3322_v55, %v8317_v40 }
0x150e   :  { %6685 = vmatprep.mubr.msk.f32.mxu1 %vm486_vm3, %v3328_v25 }
0x150f   :  { %6686 = vmatmul.mubr.msk.f32.vlgmr.msra.gmra.mrb[36].mxu1 %vm486_vm3, %v3329_v48 }
0x1512   :  { %v7579_v50 = vpop.eup %7578 }
0x1513   :  { %v7581_v51 = vpop.eup %7580  ;;  %v3307_v54 = vmul.f32 %v7579_v50, %v3275_v6 }
0x1514   :  { %v3306_v58 = vmul.f32 %v7581_v51, %v3274_v12 }
0x1515   :  { %v3325_v20 = vmul.f32 %v3319_v32, %v3307_v54 }
0x1516   :  { %v3324_v57 = vmul.f32 %v3319_v32, %v3306_v58 }
0x1517   :  { %v3331_v18 = vadd.f32 %v3325_v20, %v8311_v61 }
0x1518   :  { %v3330_v37 = vadd.f32 %v3324_v57, %v8311_v61 }
0x151a   :  { %6688 = vmatprep.mubr.msk.f32.mxu1 %vm486_vm3, %v3330_v37 }
0x151b   :  { %6689 = vmatmul.mubr.msk.f32.gmra.mrb[38].mxu1 %vm486_vm3, %v3331_v18 }
0x15e2   :  { %v6687_v0 = vpop.f32.mrb[36].mxu1 }
0x15e3   :  { %v8329_v5 = vadd.f32 %v6687_v0, %v6085_v1  ;;  %v3419_v3 = vpop.f32.mrb[37].mxu1 }
0x15e4   :  { %v8331_v26 = vadd.f32 %v6085_v1, %v3419_v3 }
0x15e6   :  { %6695 = vmatprep.mubr.msk.f32.mxu1 %vm41_vm0, %v8331_v26  ;;  %v8337_v6 = vpack.i.bf16 %v8329_v5, %v8331_v26 }
0x15e8   :  { %7338 = vrot.lane.b32.xlu1 %v8337_v6, %s7702_s29 }
0x15ee   :  { %v6690_v12 = vpop.f32.mrb[38].mxu1 }
0x15ef   :  { %v8341_v14 = vadd.f32 %v6690_v12, %v6085_v1  ;;  %v3429_v62 = vpop.f32.mrb[39].mxu1 }
0x15f0   :  { %v8343_v15 = vadd.f32 %v6085_v1, %v3429_v62 }
0x15f2   :  { %6702 = vmatprep.mubr.msk.f32.mxu0 %vm41_vm0, %v8343_v15  ;;  %v8349_v39 = vpack.i.bf16 %v8341_v14, %v8343_v15 }
0x15f4   :  { %7343 = vrot.lane.b32.xlu0 %v8349_v39, %s7702_s29 }
0x165a   :  { %v7339_v38 = vpop.permute.xlu1 %7338 }
0x165b   :  { %v7341_v16 = vunpack.i.h.bf16 %v7339_v38  ;;  %v7340_v59 = vunpack.i.l.bf16 %v7339_v38 }
0x165d   :  { %v7066_v19 = vpack.c.bf16 %v7341_v16, %v7340_v59 }
0x165f   :  { %7068 = vmatprep.subr.msk.bf16.mxu1 %vm7967_vm6, %v7066_v19 }
0x1660   :  { %7071 = vmatpush3.bf16.xpose.msk.msra.mxu1 %vm7967_vm6, %v7066_v19 }
0x1666   :  { %v7344_v7 = vpop.permute.xlu0 %7343 }
0x1667   :  { %v7346_v22 = vunpack.i.h.bf16 %v7344_v7  ;;  %v7345_v29 = vunpack.i.l.bf16 %v7344_v7  ;;  %6696 = vmatmul.mubr.msk.f32.vlgmr.msra.gmra.mrb[40].mxu1 %vm41_vm0, %v8329_v5 }
0x1669   :  { %v7072_v49 = vpack.c.bf16 %v7346_v22, %v7345_v29 }
0x166b   :  { %7074 = vmatprep.subr.msk.bf16.mxu0 %vm7967_vm6, %v7072_v49 }
0x166c   :  { %7077 = vmatpush3.bf16.xpose.msk.msra.mxu0 %vm7967_vm6, %v7072_v49 }
0x1673   :  { %6703 = vmatmul.mubr.msk.f32.vlgmr.msra.gmra.mrb[30].mxu0 %vm41_vm0, %v8341_v14 }
0x173a   :  { %v6697_v31 = vpop.f32.mrb[40].mxu1 }
0x173b   :  { %v3518_v33 = vpop.f32.mrb[41].mxu1  ;;  %v3619_v52 = vsel %vm1046_vm7, %v6697_v31, -inf }
0x173c   :  { %3620 = vmax.xlane.f32.xlu0 %v3619_v52  ;;  %v3616_v2 = vsel %vm1046_vm7, %v3518_v33, -inf }
0x173d   :  { %3617 = vmax.xlane.f32.xlu1 %v3616_v2 }
0x1746   :  { %v6704_v35 = vpop.f32.mrb[30].mxu0 }
0x1747   :  { %v3607_v43 = vpop.f32.mrb[31].mxu0  ;;  %v3625_v44 = vsel %vm1046_vm7, %v6704_v35, -inf }
0x1748   :  { %3626 = vmax.xlane.f32.xlu1 %v3625_v44  ;;  %v3622_v8 = vsel %vm1046_vm7, %v3607_v43, -inf }
0x1749   :  { %3623 = vmax.xlane.f32.xlu0 %v3622_v8 }
0x1759   :  { %7353 = vrot.lane.b32.xlu1 %v8349_v39, %s7704_s1 }
0x175d   :  { %7358 = vrot.lane.b32.xlu1 %v8337_v6, %s7715_s2 }
0x175f   :  { %7348 = vrot.lane.b32.xlu0 %v8337_v6, %s7704_s1 }
0x17c9   :  { %v3621_v21 = vpop.xlane.xlu0 %3620 }
0x17ca   :  { %v3629_v45 = vsub.f32 %v6697_v31, %v3621_v21  ;;  %v3618_v63 = vpop.xlane.xlu1 %3617 }
0x17cb   :  { %v3628_v41 = vsub.f32 %v3518_v33, %v3618_v63 }
0x17cc   :  { %v3634_v46 = vmul.f32 1.442695, %v3629_v45 }
0x17cd   :  { %v3632_v36 = vmul.f32 1.442695, %v3628_v41 }
0x17ce   :  { %7582 = vpow2.f32 %v3634_v46 }
0x17cf   :  { %7584 = vpow2.f32 %v3632_v36 }
0x17d5   :  { %v3627_v24 = vpop.xlane.xlu1 %3626 }
0x17d6   :  { %v3624_v13 = vpop.xlane.xlu0 %3623  ;;  %v3631_v1 = vsub.f32 %v6704_v35, %v3627_v24 }
0x17d7   :  { %v3630_v0 = vsub.f32 %v3607_v43, %v3624_v13 }
0x17d8   :  { %v7583_v47 = vpop.eup %7582  ;;  %v3638_v3 = vmul.f32 1.442695, %v3631_v1 }
0x17d9   :  { %v7585_v42 = vpop.eup %7584  ;;  %v7354_v56 = vpop.permute.xlu1 %7353  ;;  %v3643_v60 = vsel %vm1046_vm7, %v7583_v47, 0.0  ;;  %v3636_v12 = vmul.f32 1.442695, %v3630_v0 }
0x17da   :  { %v7349_v55 = vpop.permute.xlu0 %7348  ;;  %3644 = vadd.xlane.f32.xlu1 %v3643_v60  ;;  %v3640_v25 = vsel %vm1046_vm7, %v7585_v42, 0.0  ;;  %v7356_v48 = vunpack.i.h.bf16 %v7354_v56  ;;  %v7355_v50 = vunpack.i.l.bf16 %v7354_v56  ;;  %7586 = vpow2.f32 %v3638_v3 }
0x17db   :  { %v7351_v51 = vunpack.i.h.bf16 %v7349_v55  ;;  %v7350_v54 = vunpack.i.l.bf16 %v7349_v55  ;;  %3641 = vadd.xlane.f32.xlu0 %v3640_v25  ;;  %7588 = vpow2.f32 %v3636_v12 }
0x17dc   :  { %v7082_v37 = vpack.c.bf16 %v7356_v48, %v7355_v50 }
0x17dd   :  { %v7359_v58 = vpop.permute.xlu1 %7358  ;;  %v7078_v32 = vpack.c.bf16 %v7351_v51, %v7350_v54 }
0x17de   :  { %v7361_v20 = vunpack.i.h.bf16 %v7359_v58  ;;  %v7360_v57 = vunpack.i.l.bf16 %v7359_v58 }
0x17df   :  { %7079 = vmatprep.subr.bf16.mxu1 %v7078_v32 }
0x17e0   :  { %v7086_v18 = vpack.c.bf16 %v7361_v20, %v7360_v57  ;;  %7081 = vmatpush3.bf16.msra.mxu1 %v7078_v32 }
0x17e1   :  { %7083 = vmatprep.subr.bf16.mxu1 %v7082_v37 }
0x17e2   :  { %7088 = vmatprep.subr.msk.bf16.mxu0 %vm7967_vm6, %v7086_v18 }
0x17e3   :  { %7091 = vmatpush3.bf16.xpose.msk.msra.mxu0 %vm7967_vm6, %v7086_v18 }
0x17e4   :  { %v7587_v62 = vpop.eup %7586 }
0x17e5   :  { %v7589_v38 = vpop.eup %7588  ;;  %v3649_v16 = vsel %vm1046_vm7, %v7587_v62, 0.0 }
0x17e6   :  { %v3646_v59 = vsel %vm1046_vm7, %v7589_v38, 0.0 }
0x17eb   :  { %3834 = vrot.lane.b32.xlu1 %v8331_v26, %s7716_s14 }
0x17f1   :  { %7363 = vrot.lane.b32.xlu0 %v8349_v39, %s7715_s2 }
0x180f   :  { %3650 = vadd.xlane.f32.xlu1 %v3649_v16 }
0x1810   :  { %3647 = vadd.xlane.f32.xlu0 %v3646_v59 }
0x1820   :  { %3925 = vrot.lane.b32.xlu1 %v8343_v15, %s7716_s14 }
0x1826   :  { %3836 = vrot.lane.b32.xlu0 %v8329_v5, %s7716_s14 }
0x182a   :  { %3927 = vrot.lane.b32.xlu0 %v8341_v14, %s7716_s14 }
0x1867   :  { %v3645_v19 = vpop.xlane.xlu1 %3644 }
0x1868   :  { %7590 = vrcp.f32 %v3645_v19  ;;  %v3642_v7 = vpop.xlane.xlu0 %3641 }
0x1869   :  { %7592 = vrcp.f32 %v3642_v7 }
0x186b   :  { %v3835_v22 = vpop.permute.xlu1 %3834 }
0x186c   :  { %6723 = vmatprep.mubr.msk.f32.mxu0 %vm41_vm0, %v3835_v22  ;;  %v7364_v29 = vpop.permute.xlu0 %7363 }
0x186d   :  { %v7366_v33 = vunpack.i.h.bf16 %v7364_v29  ;;  %v7365_v52 = vunpack.i.l.bf16 %v7364_v29 }
0x186f   :  { %v7092_v43 = vpack.c.bf16 %v7366_v33, %v7365_v52 }
0x1872   :  { %v7591_v49 = vpop.eup %7590 }
0x1873   :  { %v7593_v31 = vpop.eup %7592  ;;  %v3657_v35 = vmul.f32 %v7591_v49, %v7583_v47 }
0x1874   :  { %v3656_v2 = vmul.f32 %v7593_v31, %v7585_v42 }
0x1876   :  { %6709 = vmatprep.mubr.msk.f32.mxu1 %vm1046_vm7, %v3656_v2 }
0x1877   :  { %6710 = vmatmul.mubr.msk.f32.vlgmr.msra.gmra.mrb[42].mxu1 %vm1046_vm7, %v3657_v35 }
0x1878   :  { %7085 = vmatpush3.bf16.msra.mxu1 %v7082_v37 }
0x1879   :  { %7094 = vmatprep.subr.msk.bf16.mxu1 %vm7967_vm6, %v7092_v43 }
0x189c   :  { %v3651_v44 = vpop.xlane.xlu1 %3650 }
0x189d   :  { %7594 = vrcp.f32 %v3651_v44  ;;  %v3648_v8 = vpop.xlane.xlu0 %3647 }
0x189e   :  { %7596 = vrcp.f32 %v3648_v8 }
0x18a0   :  { %v3926_v36 = vpop.permute.xlu1 %3925 }
0x18a1   :  { %v3837_v21 = vpop.permute.xlu0 %3836 }
0x18a2   :  { %6724 = vmatmul.mubr.msk.f32.vlgmr.msra.gmra.mrb[32].mxu0 %vm41_vm0, %v3837_v21 }
0x18a5   :  { %v3928_v24 = vpop.permute.xlu0 %3927 }
0x18a7   :  { %v7595_v45 = vpop.eup %7594 }
0x18a8   :  { %v7597_v63 = vpop.eup %7596  ;;  %v3659_v46 = vmul.f32 %v7595_v45, %v7587_v62 }
0x18a9   :  { %v3658_v41 = vmul.f32 %v7597_v63, %v7589_v38 }
0x18ab   :  { %6716 = vmatprep.mubr.msk.f32.mxu1 %vm1046_vm7, %v3658_v41 }
0x18ac   :  { %6717 = vmatmul.mubr.msk.f32.vlgmr.msra.gmra.mrb[44].mxu1 %vm1046_vm7, %v3659_v46 }
0x18ad   :  { %7097 = vmatpush3.bf16.xpose.msk.msra.mxu1 %vm7967_vm6, %v7092_v43  ;;  %6730 = vmatprep.mubr.msk.f32.mxu1 %vm41_vm0, %v3926_v36 }
0x18b4   :  { %6731 = vmatmul.mubr.msk.f32.vlgmr.msra.gmra.mrb[46].mxu1 %vm41_vm0, %v3928_v24 }
0x194a   :  { %v8405_v13 = vpop.f32.mrb[42].mxu1 }
0x194b   :  { %v8407_v47 = vpop.f32.mrb[43].mxu1 }
0x1975   :  { %v6725_v42 = vpop.f32.mrb[32].mxu0 }
0x1976   :  { %v3916_v56 = vpop.f32.mrb[33].mxu0  ;;  %v4019_v60 = vsel %vm1046_vm7, %v6725_v42, -inf }
0x1977   :  { %4020 = vmax.xlane.f32.xlu0 %v4019_v60  ;;  %v4016_v55 = vsel %vm1046_vm7, %v3916_v56, -inf }
0x1978   :  { %4017 = vmax.xlane.f32.xlu1 %v4016_v55 }
0x197f   :  { %v8411_v25 = vpop.f32.mrb[44].mxu1 }
0x1980   :  { %v8413_v48 = vpop.f32.mrb[45].mxu1 }
0x1987   :  { %v6732_v50 = vpop.f32.mrb[46].mxu1 }
0x1988   :  { %v4007_v51 = vpop.f32.mrb[47].mxu1  ;;  %v4025_v54 = vsel %vm1046_vm7, %v6732_v50, -inf }
0x1989   :  { %4026 = vmax.xlane.f32.xlu1 %v4025_v54  ;;  %v4022_v58 = vsel %vm1046_vm7, %v4007_v51, -inf }
0x198a   :  { %4023 = vmax.xlane.f32.xlu0 %v4022_v58 }
0x1a04   :  { %v4021_v32 = vpop.xlane.xlu0 %4020 }
0x1a05   :  { %v4029_v20 = vsub.f32 %v6725_v42, %v4021_v32  ;;  %v4018_v57 = vpop.xlane.xlu1 %4017 }
0x1a06   :  { %v4028_v37 = vsub.f32 %v3916_v56, %v4018_v57 }
0x1a07   :  { %v4034_v18 = vmul.f32 1.442695, %v4029_v20 }
0x1a08   :  { %v4032_v1 = vmul.f32 1.442695, %v4028_v37 }
0x1a09   :  { %7598 = vpow2.f32 %v4034_v18 }
0x1a0a   :  { %7600 = vpow2.f32 %v4032_v1 }
0x1a13   :  { %v7599_v0 = vpop.eup %7598 }
0x1a14   :  { %v7601_v3 = vpop.eup %7600  ;;  %v4043_v12 = vsel %vm1046_vm7, %v7599_v0, 0.0 }
0x1a15   :  { %4044 = vadd.xlane.f32.xlu1 %v4043_v12  ;;  %v4040_v62 = vsel %vm1046_vm7, %v7601_v3, 0.0 }
0x1a16   :  { %4041 = vadd.xlane.f32.xlu0 %v4040_v62  ;;  %v4027_v16 = vpop.xlane.xlu1 %4026 }
0x1a17   :  { %v4024_v38 = vpop.xlane.xlu0 %4023  ;;  %v4031_v19 = vsub.f32 %v6732_v50, %v4027_v16 }
0x1a18   :  { %v4030_v59 = vsub.f32 %v4007_v51, %v4024_v38 }
0x1a19   :  { %v4038_v22 = vmul.f32 1.442695, %v4031_v19 }
0x1a1a   :  { %v4036_v7 = vmul.f32 1.442695, %v4030_v59 }
0x1a1c   :  { %7602 = vpow2.f32 %v4036_v7 }
0x1a1d   :  { %7604 = vpow2.f32 %v4038_v22 }
0x1a26   :  { %7373 = vrot.lane.b32.xlu1 %v8349_v39, %s7717_s15  ;;  %v7603_v29 = vpop.eup %7602 }
0x1a27   :  { %v7605_v49 = vpop.eup %7604  ;;  %v4046_v31 = vsel %vm1046_vm7, %v7603_v29, 0.0 }
0x1a28   :  { %v4049_v33 = vsel %vm1046_vm7, %v7605_v49, 0.0 }
0x1a2a   :  { %7378 = vrot.lane.b32.xlu1 %v8337_v6, %s7718_s16 }
0x1a2c   :  { %7368 = vrot.lane.b32.xlu0 %v8337_v6, %s7717_s15 }
0x1a2e   :  { %4234 = vrot.lane.b32.xlu1 %v8331_v26, %s7719_s17 }
0x1a30   :  { %7383 = vrot.lane.b32.xlu0 %v8349_v39, %s7718_s16 }
0x1a4f   :  { %4047 = vadd.xlane.f32.xlu0 %v4046_v31 }
0x1a52   :  { %4050 = vadd.xlane.f32.xlu1 %v4049_v33 }
0x1a63   :  { %4325 = vrot.lane.b32.xlu1 %v8343_v15, %s7719_s17 }
0x1a65   :  { %4236 = vrot.lane.b32.xlu0 %v8329_v5, %s7719_s17 }
0x1a69   :  { %4327 = vrot.lane.b32.xlu0 %v8341_v14, %s7719_s17 }
0x1aa2   :  { %v4045_v52 = vpop.xlane.xlu1 %4044 }
0x1aa3   :  { %7606 = vrcp.f32 %v4045_v52  ;;  %v4042_v2 = vpop.xlane.xlu0 %4041 }
0x1aa4   :  { %7608 = vrcp.f32 %v4042_v2 }
0x1aa6   :  { %v7374_v35 = vpop.permute.xlu1 %7373 }
0x1aa7   :  { %v7376_v43 = vunpack.i.h.bf16 %v7374_v35  ;;  %v7375_v44 = vunpack.i.l.bf16 %v7374_v35  ;;  %v7369_v8 = vpop.permute.xlu0 %7368 }
0x1aa8   :  { %v7371_v21 = vunpack.i.h.bf16 %v7369_v8  ;;  %v7370_v45 = vunpack.i.l.bf16 %v7369_v8 }
0x1aa9   :  { %v7102_v63 = vpack.c.bf16 %v7376_v43, %v7375_v44 }
0x1aaa   :  { %v7098_v41 = vpack.c.bf16 %v7371_v21, %v7370_v45  ;;  %v7379_v46 = vpop.permute.xlu1 %7378 }
0x1aab   :  { %v7381_v36 = vunpack.i.h.bf16 %v7379_v46  ;;  %v7380_v24 = vunpack.i.l.bf16 %v7379_v46  ;;  %7103 = vmatprep.subr.bf16.mxu1 %v7102_v63  ;;  %v7384_v42 = vpop.permute.xlu0 %7383 }
0x1aac   :  { %v7386_v56 = vunpack.i.h.bf16 %v7384_v42  ;;  %v7385_v60 = vunpack.i.l.bf16 %v7384_v42  ;;  %7099 = vmatprep.subr.bf16.mxu0 %v7098_v41  ;;  %7105 = vmatpush3.bf16.msra.mxu1 %v7102_v63 }
0x1aad   :  { %v7607_v55 = vpop.eup %7606  ;;  %v7106_v50 = vpack.c.bf16 %v7381_v36, %v7380_v24  ;;  %7101 = vmatpush3.bf16.msra.mxu0 %v7098_v41 }
0x1aae   :  { %v7609_v51 = vpop.eup %7608  ;;  %v7112_v54 = vpack.c.bf16 %v7386_v56, %v7385_v60  ;;  %v4057_v32 = vmul.f32 %v7607_v55, %v7599_v0  ;;  %v4235_v20 = vpop.permute.xlu1 %4234 }
0x1aaf   :  { %7108 = vmatprep.subr.msk.bf16.mxu0 %vm7967_vm6, %v7106_v50  ;;  %v4056_v58 = vmul.f32 %v7609_v51, %v7601_v3 }
0x1ab0   :  { %7114 = vmatprep.subr.msk.bf16.mxu1 %vm7967_vm6, %v7112_v54 }
0x1ab1   :  { %6737 = vmatprep.mubr.msk.f32.mxu0 %vm1046_vm7, %v4056_v58 }
0x1ab2   :  { %6738 = vmatmul.mubr.msk.f32.vlgmr.msra.gmra.mrb[34].mxu0 %vm1046_vm7, %v4057_v32 }
0x1ab3   :  { %6751 = vmatprep.mubr.msk.f32.mxu0 %vm41_vm0, %v4235_v20 }
0x1ab6   :  { %7111 = vmatpush3.bf16.xpose.msk.msra.mxu0 %vm7967_vm6, %v7106_v50 }
0x1adc   :  { %v4048_v57 = vpop.xlane.xlu0 %4047 }
0x1add   :  { %7610 = vrcp.f32 %v4048_v57 }
0x1adf   :  { %v4051_v37 = vpop.xlane.xlu1 %4050 }
0x1ae0   :  { %7612 = vrcp.f32 %v4051_v37  ;;  %v4237_v18 = vpop.permute.xlu0 %4236 }
0x1ae1   :  { %6752 = vmatmul.mubr.msk.f32.vlgmr.msra.gmra.mrb[36].mxu0 %vm41_vm0, %v4237_v18 }
0x1ae3   :  { %v4326_v62 = vpop.permute.xlu1 %4325 }
0x1ae4   :  { %v4328_v38 = vpop.permute.xlu0 %4327 }
0x1ae7   :  { %v7611_v1 = vpop.eup %7610 }
0x1ae8   :  { %v4058_v0 = vmul.f32 %v7611_v1, %v7603_v29 }
0x1aea   :  { %v7613_v3 = vpop.eup %7612  ;;  %6744 = vmatprep.mubr.msk.f32.mxu1 %vm1046_vm7, %v4058_v0 }
0x1aeb   :  { %v4059_v12 = vmul.f32 %v7613_v3, %v7605_v49 }
0x1aed   :  { %6745 = vmatmul.mubr.msk.f32.vlgmr.msra.gmra.mrb[48].mxu1 %vm1046_vm7, %v4059_v12 }
0x1aee   :  { %7117 = vmatpush3.bf16.xpose.msk.msra.mxu1 %vm7967_vm6, %v7112_v54  ;;  %6758 = vmatprep.mubr.msk.f32.mxu1 %vm41_vm0, %v4326_v62 }
0x1af5   :  { %6759 = vmatmul.mubr.msk.f32.vlgmr.msra.gmra.mrb[50].mxu1 %vm41_vm0, %v4328_v38 }
0x1b85   :  { %v8453_v16 = vpop.f32.mrb[34].mxu0 }
0x1b86   :  { %v8455_v59 = vpop.f32.mrb[35].mxu0 }
0x1bb4   :  { %v6753_v19 = vpop.f32.mrb[36].mxu0 }
0x1bb5   :  { %v4316_v7 = vpop.f32.mrb[37].mxu0  ;;  %v4419_v22 = vsel %vm1046_vm7, %v6753_v19, -inf }
0x1bb6   :  { %4420 = vmax.xlane.f32.xlu0 %v4419_v22  ;;  %v4416_v29 = vsel %vm1046_vm7, %v4316_v7, -inf }
0x1bb7   :  { %4417 = vmax.xlane.f32.xlu1 %v4416_v29 }
0x1bc0   :  { %v8459_v49 = vpop.f32.mrb[48].mxu1 }
0x1bc1   :  { %v8461_v31 = vpop.f32.mrb[49].mxu1 }
0x1bc8   :  { %v6760_v33 = vpop.f32.mrb[50].mxu1 }
0x1bc9   :  { %v4407_v52 = vpop.f32.mrb[51].mxu1  ;;  %v4425_v2 = vsel %vm1046_vm7, %v6760_v33, -inf }
0x1bca   :  { %4426 = vmax.xlane.f32.xlu1 %v4425_v2  ;;  %v4422_v35 = vsel %vm1046_vm7, %v4407_v52, -inf }
0x1bcb   :  { %4423 = vmax.xlane.f32.xlu0 %v4422_v35 }
0x1c43   :  { %v4421_v43 = vpop.xlane.xlu0 %4420 }
0x1c44   :  { %v4429_v44 = vsub.f32 %v6753_v19, %v4421_v43  ;;  %v4418_v8 = vpop.xlane.xlu1 %4417 }
0x1c45   :  { %v4428_v21 = vsub.f32 %v4316_v7, %v4418_v8 }
0x1c46   :  { %v4434_v45 = vmul.f32 1.442695, %v4429_v44 }
0x1c47   :  { %v4432_v63 = vmul.f32 1.442695, %v4428_v21 }
0x1c48   :  { %7614 = vpow2.f32 %v4434_v45 }
0x1c49   :  { %7616 = vpow2.f32 %v4432_v63 }
0x1c52   :  { %v7615_v41 = vpop.eup %7614 }
0x1c53   :  { %v7617_v46 = vpop.eup %7616  ;;  %v4443_v36 = vsel %vm1046_vm7, %v7615_v41, 0.0 }
0x1c54   :  { %4444 = vadd.xlane.f32.xlu1 %v4443_v36  ;;  %v4440_v24 = vsel %vm1046_vm7, %v7617_v46, 0.0 }
0x1c55   :  { %4441 = vadd.xlane.f32.xlu0 %v4440_v24 }
0x1c57   :  { %v4427_v56 = vpop.xlane.xlu1 %4426 }
0x1c58   :  { %v4424_v42 = vpop.xlane.xlu0 %4423  ;;  %v4431_v55 = vsub.f32 %v6760_v33, %v4427_v56 }
0x1c59   :  { %v4430_v60 = vsub.f32 %v4407_v52, %v4424_v42 }
0x1c5a   :  { %v4438_v51 = vmul.f32 1.442695, %v4431_v55 }
0x1c5b   :  { %v4436_v50 = vmul.f32 1.442695, %v4430_v60 }
0x1c5d   :  { %7618 = vpow2.f32 %v4436_v50 }
0x1c5e   :  { %7620 = vpow2.f32 %v4438_v51 }
0x1c65   :  { %7393 = vrot.lane.b32.xlu1 %v8349_v39, %s7720_s18 }
0x1c67   :  { %v7619_v54 = vpop.eup %7618 }
0x1c68   :  { %v7621_v58 = vpop.eup %7620  ;;  %v4446_v32 = vsel %vm1046_vm7, %v7619_v54, 0.0 }
0x1c69   :  { %7398 = vrot.lane.b32.xlu1 %v8337_v6, %s7721_s19  ;;  %v4449_v20 = vsel %vm1046_vm7, %v7621_v58, 0.0 }
0x1c6b   :  { %7388 = vrot.lane.b32.xlu0 %v8337_v6, %s7720_s18 }
0x1c6d   :  { %4634 = vrot.lane.b32.xlu1 %v8331_v26, %s7722_s20 }
0x1c6f   :  { %7403 = vrot.lane.b32.xlu0 %v8349_v39, %s7721_s19 }
0x1c8e   :  { %4447 = vadd.xlane.f32.xlu0 %v4446_v32 }
0x1c91   :  { %4450 = vadd.xlane.f32.xlu1 %v4449_v20 }
0x1ca2   :  { %4725 = vrot.lane.b32.xlu1 %v8343_v15, %s7722_s20 }
0x1ca4   :  { %4636 = vrot.lane.b32.xlu0 %v8329_v5, %s7722_s20 }
0x1ca8   :  { %4727 = vrot.lane.b32.xlu0 %v8341_v14, %s7722_s20 }
0x1ce1   :  { %v4445_v26 = vpop.xlane.xlu1 %4444 }
0x1ce2   :  { %7622 = vrcp.f32 %v4445_v26  ;;  %v4442_v57 = vpop.xlane.xlu0 %4441 }
0x1ce3   :  { %7624 = vrcp.f32 %v4442_v57 }
0x1ce5   :  { %v7394_v37 = vpop.permute.xlu1 %7393 }
0x1ce6   :  { %v7396_v18 = vunpack.i.h.bf16 %v7394_v37  ;;  %v7395_v1 = vunpack.i.l.bf16 %v7394_v37  ;;  %v7389_v0 = vpop.permute.xlu0 %7388 }
0x1ce7   :  { %v7391_v3 = vunpack.i.h.bf16 %v7389_v0  ;;  %v7390_v12 = vunpack.i.l.bf16 %v7389_v0 }
0x1ce8   :  { %v7122_v62 = vpack.c.bf16 %v7396_v18, %v7395_v1 }
0x1ce9   :  { %v7118_v38 = vpack.c.bf16 %v7391_v3, %v7390_v12  ;;  %v7399_v19 = vpop.permute.xlu1 %7398 }
0x1cea   :  { %v7401_v15 = vunpack.i.h.bf16 %v7399_v19  ;;  %v7400_v7 = vunpack.i.l.bf16 %v7399_v19  ;;  %v7404_v22 = vpop.permute.xlu0 %7403  ;;  %7123 = vmatprep.subr.bf16.mxu1 %v7122_v62 }
0x1ceb   :  { %v7406_v5 = vunpack.i.h.bf16 %v7404_v22  ;;  %v7405_v29 = vunpack.i.l.bf16 %v7404_v22  ;;  %7119 = vmatprep.subr.bf16.mxu0 %v7118_v38  ;;  %7125 = vmatpush3.bf16.msra.mxu1 %v7122_v62 }
0x1cec   :  { %v7623_v14 = vpop.eup %7622  ;;  %v7126_v33 = vpack.c.bf16 %v7401_v15, %v7400_v7  ;;  %7121 = vmatpush3.bf16.msra.mxu0 %v7118_v38 }
0x1ced   :  { %v7625_v52 = vpop.eup %7624  ;;  %v7132_v2 = vpack.c.bf16 %v7406_v5, %v7405_v29  ;;  %v4457_v43 = vmul.f32 %v7623_v14, %v7615_v41  ;;  %v4635_v44 = vpop.permute.xlu1 %4634 }
0x1cee   :  { %7128 = vmatprep.subr.msk.bf16.mxu0 %vm7967_vm6, %v7126_v33  ;;  %v4456_v35 = vmul.f32 %v7625_v52, %v7617_v46 }
0x1cef   :  { %7134 = vmatprep.subr.msk.bf16.mxu1 %vm7967_vm6, %v7132_v2 }
0x1cf0   :  { %6765 = vmatprep.mubr.msk.f32.mxu0 %vm1046_vm7, %v4456_v35 }
0x1cf1   :  { %6766 = vmatmul.mubr.msk.f32.vlgmr.msra.gmra.mrb[38].mxu0 %vm1046_vm7, %v4457_v43 }
0x1cf2   :  { %6779 = vmatprep.mubr.msk.f32.mxu0 %vm41_vm0, %v4635_v44  ;;  %v5094_v44 = vld [vmem:[#allocation2 + $0x148] sm:$0xff] }
0x1cf5   :  { %7131 = vmatpush3.bf16.xpose.msk.msra.mxu0 %vm7967_vm6, %v7126_v33 }
0x1d1b   :  { %v4448_v8 = vpop.xlane.xlu0 %4447 }
0x1d1c   :  { %7626 = vrcp.f32 %v4448_v8  ;;  %v5095_v8 = vld [vmem:[#allocation2 + $0x150] sm:$0xff] }
0x1d1e   :  { %v4451_v21 = vpop.xlane.xlu1 %4450 }
0x1d1f   :  { %7628 = vrcp.f32 %v4451_v21  ;;  %v4637_v45 = vpop.permute.xlu0 %4636  ;;  %v7417_v21 = vpack.i.bf16 %v5095_v8, %v5094_v44 }
0x1d20   :  { %6780 = vmatmul.mubr.msk.f32.vlgmr.msra.gmra.mrb[40].mxu0 %vm41_vm0, %v4637_v45  ;;  %v5096_v45 = vld [vmem:[#allocation2 + $0x158] sm:$0xff] }
0x1d22   :  { %v4726_v24 = vpop.permute.xlu1 %4725 }
0x1d23   :  { %v4728_v42 = vpop.permute.xlu0 %4727 }
0x1d26   :  { %v7627_v63 = vpop.eup %7626 }
0x1d27   :  { %v4458_v41 = vmul.f32 %v7627_v63, %v7619_v54  ;;  %v5097_v63 = vld [vmem:[#allocation2 + $0x160] sm:$0xff] }
0x1d29   :  { %v7629_v46 = vpop.eup %7628  ;;  %6772 = vmatprep.mubr.msk.f32.mxu1 %vm1046_vm7, %v4458_v41  ;;  %v7422_v41 = vpack.i.bf16 %v5097_v63, %v5096_v45 }
0x1d2a   :  { %v4459_v36 = vmul.f32 %v7629_v46, %v7621_v58 }
0x1d2c   :  { %6773 = vmatmul.mubr.msk.f32.vlgmr.msra.gmra.mrb[52].mxu1 %vm1046_vm7, %v4459_v36 }
0x1d2d   :  { %7137 = vmatpush3.bf16.xpose.msk.msra.mxu1 %vm7967_vm6, %v7132_v2  ;;  %6786 = vmatprep.mubr.msk.f32.mxu1 %vm41_vm0, %v4726_v24 }
0x1d34   :  { %6787 = vmatmul.mubr.msk.f32.vlgmr.msra.gmra.mrb[54].mxu1 %vm41_vm0, %v4728_v42 }
0x1dc4   :  { %v6767_v56 = vpop.f32.mrb[38].mxu0 }
0x1dc5   :  { %v4538_v60 = vpop.f32.mrb[39].mxu0 }
0x1df3   :  { %v6781_v55 = vpop.f32.mrb[40].mxu0 }
0x1df4   :  { %v4716_v50 = vpop.f32.mrb[41].mxu0  ;;  %v4819_v51 = vsel %vm1046_vm7, %v6781_v55, -inf }
0x1df5   :  { %4820 = vmax.xlane.f32.xlu0 %v4819_v51  ;;  %v4816_v54 = vsel %vm1046_vm7, %v4716_v50, -inf }
0x1df6   :  { %4817 = vmax.xlane.f32.xlu1 %v4816_v54 }
0x1dff   :  { %v8503_v58 = vpop.f32.mrb[52].mxu1 }
0x1e00   :  { %v8505_v32 = vpop.f32.mrb[53].mxu1 }
0x1e07   :  { %v6788_v28 = vpop.f32.mrb[54].mxu1 }
0x1e08   :  { %v4807_v20 = vpop.f32.mrb[55].mxu1  ;;  %v4825_v26 = vsel %vm1046_vm7, %v6788_v28, -inf }
0x1e09   :  { %4826 = vmax.xlane.f32.xlu1 %v4825_v26  ;;  %v4822_v57 = vsel %vm1046_vm7, %v4807_v20, -inf }
0x1e0a   :  { %4823 = vmax.xlane.f32.xlu0 %v4822_v57 }
0x1e82   :  { %v4821_v37 = vpop.xlane.xlu0 %4820 }
0x1e83   :  { %v4829_v18 = vsub.f32 %v6781_v55, %v4821_v37  ;;  %v4818_v1 = vpop.xlane.xlu1 %4817 }
0x1e84   :  { %v4828_v0 = vsub.f32 %v4716_v50, %v4818_v1 }
0x1e85   :  { %v4834_v3 = vmul.f32 1.442695, %v4829_v18 }
0x1e86   :  { %v4832_v12 = vmul.f32 1.442695, %v4828_v0 }
0x1e87   :  { %7630 = vpow2.f32 %v4834_v3 }
0x1e88   :  { %7632 = vpow2.f32 %v4832_v12 }
0x1e91   :  { %v8509_v62 = vpop.eup %7630 }
0x1e92   :  { %v7633_v38 = vpop.eup %7632  ;;  %v4843_v19 = vsel %vm1046_vm7, %v8509_v62, 0.0 }
0x1e93   :  { %4844 = vadd.xlane.f32.xlu1 %v4843_v19  ;;  %v4840_v15 = vsel %vm1046_vm7, %v7633_v38, 0.0 }
0x1e94   :  { %4841 = vadd.xlane.f32.xlu0 %v4840_v15 }
0x1e96   :  { %v4827_v7 = vpop.xlane.xlu1 %4826 }
0x1e97   :  { %v4831_v22 = vsub.f32 %v6788_v28, %v4827_v7  ;;  %v4824_v5 = vpop.xlane.xlu0 %4823 }
0x1e98   :  { %v4830_v29 = vsub.f32 %v4807_v20, %v4824_v5 }
0x1e99   :  { %v4838_v14 = vmul.f32 1.442695, %v4831_v22 }
0x1e9a   :  { %v4836_v33 = vmul.f32 1.442695, %v4830_v29 }
0x1e9b   :  { %7634 = vpow2.f32 %v4838_v14 }
0x1e9c   :  { %7636 = vpow2.f32 %v4836_v33 }
0x1ea5   :  { %v7635_v52 = vpop.eup %7634 }
0x1ea6   :  { %v7637_v2 = vpop.eup %7636  ;;  %v4849_v35 = vsel %vm1046_vm7, %v7635_v52, 0.0 }
0x1ea7   :  { %4850 = vadd.xlane.f32.xlu1 %v4849_v35  ;;  %v4846_v43 = vsel %vm1046_vm7, %v7637_v2, 0.0 }
0x1ea8   :  { %4847 = vadd.xlane.f32.xlu0 %v4846_v43 }
0x1eb8   :  { %7413 = vrot.lane.b32.xlu1 %v8349_v39, %s7723_s21 }
0x1ebc   :  { %7418 = vrot.lane.b32.xlu1 %v7417_v21, %s7704_s1 }
0x1ebe   :  { %7408 = vrot.lane.b32.xlu0 %v8337_v6, %s7723_s21 }
0x1ec0   :  { %5038 = vrot.lane.b32.xlu1 %v8455_v59, %s7700_s26 }
0x1ec2   :  { %7423 = vrot.lane.b32.xlu0 %v7422_v41, %s7704_s1 }
0x1ec4   :  { %5054 = vrot.lane.b32.xlu1 %v4538_v60, %s7724_s22 }
0x1ec6   :  { %5040 = vrot.lane.b32.xlu0 %v8453_v16, %s7700_s26 }
0x1eca   :  { %5056 = vrot.lane.b32.xlu0 %v6767_v56, %s7724_s22 }
0x1f20   :  { %v4845_v6 = vpop.xlane.xlu1 %4844 }
0x1f21   :  { %v4842_v39 = vpop.xlane.xlu0 %4841 }
0x1f22   :  { %7638 = vrcp.f32 %v4842_v39 }
0x1f23   :  { %7640 = vrcp.f32 %v4845_v6 }
0x1f2c   :  { %v7639_v46 = vpop.eup %7638 }
0x1f2d   :  { %v4856_v36 = vmul.f32 %v7639_v46, %v7633_v38  ;;  %v7641_v20 = vpop.eup %7640 }
0x1f2e   :  { %v4857_v38 = vmul.f32 %v7641_v20, %v8509_v62 }
0x1f2f   :  { %6793 = vmatprep.mubr.msk.f32.mxu0 %vm1046_vm7, %v4856_v36 }
0x1f34   :  { %v4851_v24 = vpop.xlane.xlu1 %4850 }
0x1f35   :  { %7642 = vrcp.f32 %v4851_v24  ;;  %v4848_v59 = vpop.xlane.xlu0 %4847 }
0x1f36   :  { %7644 = vrcp.f32 %v4848_v59 }
0x1f38   :  { %v7414_v42 = vpop.permute.xlu1 %7413 }
0x1f39   :  { %v7416_v55 = vunpack.i.h.bf16 %v7414_v42  ;;  %v7415_v60 = vunpack.i.l.bf16 %v7414_v42  ;;  %v7409_v50 = vpop.permute.xlu0 %7408  ;;  %v6138_v42 = vld [vmem:[#allocation2 + $0x1ab] ss:$0 sm:$0xff] }
0x1f3a   :  { %v7411_v51 = vunpack.i.h.bf16 %v7409_v50  ;;  %v7410_v16 = vunpack.i.l.bf16 %v7409_v50 }
0x1f3b   :  { %v7142_v54 = vpack.c.bf16 %v7416_v55, %v7415_v60 }
0x1f3c   :  { %v7138_v56 = vpack.c.bf16 %v7411_v51, %v7410_v16  ;;  %v7419_v28 = vpop.permute.xlu1 %7418 }
0x1f3d   :  { %v7421_v26 = vunpack.i.h.bf16 %v7419_v28  ;;  %v7420_v57 = vunpack.i.l.bf16 %v7419_v28  ;;  %7143 = vmatprep.subr.bf16.mxu1 %v7142_v54  ;;  %v7424_v37 = vpop.permute.xlu0 %7423 }
0x1f3e   :  { %v7426_v18 = vunpack.i.h.bf16 %v7424_v37  ;;  %v7425_v1 = vunpack.i.l.bf16 %v7424_v37  ;;  %7139 = vmatprep.subr.bf16.mxu0 %v7138_v56  ;;  %7145 = vmatpush3.bf16.msra.mxu1 %v7142_v54 }
0x1f3f   :  { %v7643_v0 = vpop.eup %7642  ;;  %v7146_v3 = vpack.c.bf16 %v7421_v26, %v7420_v57  ;;  %7141 = vmatpush3.bf16.msra.mxu0 %v7138_v56 }
0x1f40   :  { %v7645_v12 = vpop.eup %7644  ;;  %v7150_v19 = vpack.c.bf16 %v7426_v18, %v7425_v1  ;;  %v4859_v7 = vmul.f32 %v7643_v0, %v7635_v52  ;;  %v5039_v33 = vpop.permute.xlu1 %5038 }
0x1f41   :  { %v4858_v15 = vmul.f32 %v7645_v12, %v7637_v2  ;;  %7147 = vmatprep.subr.bf16.mxu0 %v7146_v3  ;;  %v5041_v14 = vpop.permute.xlu0 %5040 }
0x1f42   :  { %6794 = vmatmul.mubr.msk.f32.vlgmr.msra.gmra.mrb[42].mxu0 %vm1046_vm7, %v4857_v38 }
0x1f43   :  { %6800 = vmatprep.mubr.msk.f32.mxu1 %vm1046_vm7, %v4858_v15  ;;  %7149 = vmatpush3.bf16.msra.mxu0 %v7146_v3 }
0x1f44   :  { %6801 = vmatmul.mubr.msk.f32.vlgmr.msra.gmra.mrb[56].mxu1 %vm1046_vm7, %v4859_v7  ;;  %7151 = vmatprep.subr.bf16.mxu0 %v7150_v19  ;;  %v5055_v2 = vpop.permute.xlu1 %5054 }
0x1f45   :  { %v5057_v52 = vpop.permute.xlu0 %5056 }
0x1f47   :  { %7153 = vmatpush3.bf16.msra.mxu0 %v7150_v19 }
0x2015   :  { %v6795_v22 = vpop.f32.mrb[42].mxu0 }
0x2016   :  { %5072 = vrot.lane.b32.xlu0 %v6795_v22, %s7725_s23  ;;  %v4938_v5 = vpop.f32.mrb[43].mxu0 }
0x2017   :  { %v6802_v29 = vpop.f32.mrb[56].mxu1  ;;  %5070 = vrot.lane.b32.xlu1 %v4938_v5, %s7725_s23 }
0x2018   :  { %v5025_v62 = vpop.f32.mrb[57].mxu1 }
0x201a   :  { %5044 = vrot.lane.b32.xlu0 %v8459_v49, %s7700_s26  ;;  %v5082_v49 = vsel %vm41_vm0, %v8407_v47, %v5039_v33 }
0x201b   :  { %5042 = vrot.lane.b32.xlu1 %v8461_v31, %s7700_s26  ;;  %v5083_v31 = vsel %vm41_vm0, %v8405_v13, %v5041_v14 }
0x201e   :  { %5060 = vrot.lane.b32.xlu0 %v8503_v58, %s7724_s22  ;;  %v5086_v58 = vsel %vm1046_vm7, %v5082_v49, %v5055_v2 }
0x201f   :  { %5058 = vrot.lane.b32.xlu1 %v8505_v32, %s7724_s22  ;;  %v5087_v32 = vsel %vm1046_vm7, %v5083_v31, %v5057_v52 }
0x2022   :  { %5076 = vrot.lane.b32.xlu0 %v6802_v29, %s7725_s23 }
0x2023   :  { %5074 = vrot.lane.b32.xlu1 %v5025_v62, %s7725_s23 }
0x2088   :  { %v5073_v35 = vpop.permute.xlu0 %5072 }
0x2089   :  { %v5071_v43 = vpop.permute.xlu1 %5070  ;;  %v5091_v8 = vsel %vm2521_vm8, %v5087_v32, %v5073_v35 }
0x208a   :  { %v5090_v44 = vsel %vm2521_vm8, %v5086_v58, %v5071_v43 }
0x208b   :  { %6811 = vmatprep.mubr.msk.f32.mxu0 %vm486_vm3, %v5090_v44 }
0x208c   :  { %v5045_v21 = vpop.permute.xlu0 %5044  ;;  %6812 = vmatmul.mubr.msk.f32.vlgmr.msra.gmra.mrb[44].mxu0 %vm486_vm3, %v5091_v8 }
0x208d   :  { %v5043_v45 = vpop.permute.xlu1 %5042  ;;  %v5085_v39 = vsel %vm41_vm0, %v8411_v25, %v5045_v21 }
0x208e   :  { %v5084_v13 = vsel %vm41_vm0, %v8413_v48, %v5043_v45 }
0x2090   :  { %v5061_v47 = vpop.permute.xlu0 %5060 }
0x2091   :  { %v5059_v63 = vpop.permute.xlu1 %5058  ;;  %v5089_v6 = vsel %vm1046_vm7, %v5085_v39, %v5061_v47  ;;  %v5333_v39 = vld [vmem:[#allocation2 + $0x190] sm:$0xff] }
0x2092   :  { %v5088_v46 = vsel %vm1046_vm7, %v5084_v13, %v5059_v63 }
0x2094   :  { %v5077_v41 = vpop.permute.xlu0 %5076 }
0x2095   :  { %v5075_v36 = vpop.permute.xlu1 %5074  ;;  %v5093_v59 = vsel %vm2521_vm8, %v5089_v6, %v5077_v41  ;;  %v5332_v41 = vld [vmem:[#allocation2 + $0x188] sm:$0xff]  ;;  %v5335_v6 = vld [vmem:[#allocation2 + $0x1a0] sm:$0xff] }
0x2096   :  { %v5092_v24 = vsel %vm2521_vm8, %v5088_v46, %v5075_v36  ;;  %v7154_v46 = vpack.c.bf16 %v5333_v39, %v5332_v41  ;;  %v5334_v36 = vld [vmem:[#allocation2 + $0x198] sm:$0xff]  ;;  %v8643_v39 = vld [vmem:[#allocation2 + $0x1b0] sm:$0xff] }
0x2097   :  { %6814 = vmatprep.mubr.msk.f32.mxu0 %vm486_vm3, %v5092_v24  ;;  %v7158_v24 = vpack.c.bf16 %v5335_v6, %v5334_v36 }
0x2098   :  { %6815 = vmatmul.mubr.msk.f32.gmra.mrb[46].mxu0 %vm486_vm3, %v5093_v59  ;;  %7155 = vmatprep.subr.bf16.mxu1 %v7154_v46  ;;  %v5474_v59 = vld [vmem:[#allocation2 + $0x20] sm:$0xff] }
0x2099   :  { %7157 = vmatpush3.bf16.msra.mxu1 %v7154_v46  ;;  %v8645_v46 = vld [vmem:[#allocation2 + $0x1b8] sm:$0xff] }
0x209a   :  { %7159 = vmatprep.subr.bf16.mxu1 %v7158_v24 }
0x209d   :  { %7161 = vmatpush3.bf16.msra.mxu1 %v7158_v24 }
0x209e   :  { %7194 = vmatprep.subr.bf16.mxu1 %v7703_v9 }
0x215f   :  { %v6813_v55 = vpop.f32.mrb[44].mxu0 }
0x2160   :  { %v5203_v48 = vadd.f32 %v6813_v55, %v6138_v42  ;;  %v5197_v60 = vpop.f32.mrb[45].mxu0  ;;  %v5476_v55 = vld [vmem:[#allocation2 + $0x30] sm:$0xff] }
0x2161   :  { %v5198_v50 = vadd.f32 %v6138_v42, %v5197_v60  ;;  %v5477_v60 = vld [vmem:[#allocation2 + $0x38] sm:$0xff] }
0x2162   :  { %5222 = vrot.lane.b32.xlu0 %v5203_v48, %s7704_s1 }
0x2163   :  { %5220 = vrot.lane.b32.xlu1 %v5198_v50, %s7704_s1  ;;  %v5478_v50 = vld [vmem:[#allocation2 + $0x40] sm:$0xff] }
0x216b   :  { %v6816_v25 = vpop.f32.mrb[46].mxu0 }
0x216c   :  { %v5213_v51 = vadd.f32 %v6816_v25, %v6138_v42  ;;  %v5207_v16 = vpop.f32.mrb[47].mxu0  ;;  %v5479_v25 = vld [vmem:[#allocation2 + $0x48] sm:$0xff] }
0x216d   :  { %v5208_v54 = vadd.f32 %v6138_v42, %v5207_v16  ;;  %v5475_v42 = vld [vmem:[#allocation2 + $0x28] sm:$0xff]  ;;  %v5481_v16 = vld [vmem:[#allocation2 + $0x58] sm:$0xff] }
0x216e   :  { %5226 = vrot.lane.b32.xlu0 %v5213_v51, %s7704_s1  ;;  %v7427_v48 = vpack.i.bf16 %v5475_v42, %v5474_v59  ;;  %v5480_v51 = vld [vmem:[#allocation2 + $0x50] sm:$0xff]  ;;  %v7195_v42 = vpack.c.bf16 %v8645_v46, %v8643_v39 }
0x216f   :  { %5224 = vrot.lane.b32.xlu1 %v5208_v54, %s7704_s1  ;;  %v7437_v54 = vpack.i.bf16 %v5479_v25, %v5478_v50 }
0x21d4   :  { %v5223_v56 = vpop.permute.xlu0 %5222 }
0x21d5   :  { %v5233_v28 = vmul.f32 %v5223_v56, %v8317_v40  ;;  %v5221_v20 = vpop.permute.xlu1 %5220  ;;  %v7442_v56 = vpack.i.bf16 %v5481_v16, %v5480_v51 }
0x21d6   :  { %v5232_v26 = vmul.f32 %v5221_v20, %v8317_v40  ;;  %v5484_v20 = vld [vmem:[#allocation2 + $0x70] sm:$0xff] }
0x21d7   :  { %5242 = vrot.lane.b32.xlu0 %v5233_v28, %s7704_s1  ;;  %v5482_v28 = vld [vmem:[#allocation2 + $0x60] sm:$0xff] }
0x21d8   :  { %5240 = vrot.lane.b32.xlu1 %v5232_v26, %s7704_s1  ;;  %v5485_v26 = vld [vmem:[#allocation2 + $0x78] sm:$0xff] }
0x21e0   :  { %v5227_v57 = vpop.permute.xlu0 %5226 }
0x21e1   :  { %v5235_v37 = vmul.f32 %v5227_v57, %v8311_v61  ;;  %v5225_v18 = vpop.permute.xlu1 %5224 }
0x21e2   :  { %v5234_v1 = vmul.f32 %v5225_v18, %v8311_v61  ;;  %v5486_v18 = vld [vmem:[#allocation2 + $0x80] sm:$0xff] }
0x21e3   :  { %5246 = vrot.lane.b32.xlu0 %v5235_v37, %s7704_s1  ;;  %v7452_v37 = vpack.i.bf16 %v5485_v26, %v5484_v20 }
0x21e4   :  { %5244 = vrot.lane.b32.xlu1 %v5234_v1, %s7704_s1  ;;  %v5487_v1 = vld [vmem:[#allocation2 + $0x88] sm:$0xff] }
0x2249   :  { %v5243_v0 = vpop.permute.xlu0 %5242 }
0x224a   :  { %v8578_v3 = vadd.f32 %v5243_v0, %v8280_v10  ;;  %v5241_v12 = vpop.permute.xlu1 %5240  ;;  %v5488_v0 = vld [vmem:[#allocation2 + $0x90] sm:$0xff] }
0x224b   :  { %v8581_v38 = vadd.f32 %v5241_v12, %v8283_v17  ;;  %v5489_v12 = vld [vmem:[#allocation2 + $0x98] sm:$0xff] }
0x224c   :  { %v5259_v19 = vsel %vm486_vm3, %v8578_v3, 0.0 }
0x224d   :  { %5260 = vadd.xlane.f32.xlu0 %v5259_v19  ;;  %v5256_v15 = vsel %vm486_vm3, %v8581_v38, 0.0  ;;  %v7457_v19 = vpack.i.bf16 %v5487_v1, %v5486_v18 }
0x224e   :  { %5257 = vadd.xlane.f32.xlu1 %v5256_v15  ;;  %v7462_v15 = vpack.i.bf16 %v5489_v12, %v5488_v0 }
0x2255   :  { %v5247_v7 = vpop.permute.xlu0 %5246 }
0x2256   :  { %v8588_v22 = vadd.f32 %v5247_v7, %v8290_v23  ;;  %v5245_v5 = vpop.permute.xlu1 %5244 }
0x2257   :  { %v8591_v10 = vadd.f32 %v5245_v5, %v8293_v30  ;;  %v6083_v5 = vld [vmem:[#allocation2 + $0x1a9] ss:$0 sm:$0xff] }
0x2258   :  { %v5265_v17 = vsel %vm486_vm3, %v8588_v22, 0.0 }
0x2259   :  { %5266 = vadd.xlane.f32.xlu1 %v5265_v17  ;;  %v5262_v29 = vsel %vm486_vm3, %v8591_v10, 0.0 }
0x225a   :  { %5263 = vadd.xlane.f32.xlu0 %v5262_v29 }
0x22da   :  { %v5261_v62 = vpop.xlane.xlu0 %5260 }
0x22db   :  { %v5269_v14 = vmul.f32 0.03125, %v5261_v62  ;;  %v5258_v33 = vpop.xlane.xlu1 %5257 }
0x22dc   :  { %v5268_v52 = vmul.f32 0.03125, %v5258_v33  ;;  %v3207_v33 = vadd.f32 %v6083_v5, %v8265_v4 }
0x22dd   :  { %v8598_v2 = vsub.f32 %v8578_v3, %v5269_v14 }
0x22de   :  { %v8601_v23 = vsub.f32 %v8581_v38, %v5268_v52 }
0x22df   :  { %v5277_v30 = vmul.f32 %v8598_v2, %v8598_v2 }
0x22e0   :  { %v5276_v49 = vmul.f32 %v8601_v23, %v8601_v23 }
0x22e1   :  { %v5283_v35 = vsel %vm486_vm3, %v5277_v30, 0.0  ;;  %v3240_v30 = vrot.slane %v3207_v33, %v7910_v27 }
0x22e2   :  { %5284 = vadd.xlane.f32.xlu1 %v5283_v35  ;;  %v5280_v31 = vsel %vm486_vm3, %v5276_v49, 0.0 }
0x22e3   :  { %5281 = vadd.xlane.f32.xlu0 %v5280_v31  ;;  %v3248_v49 = vrot.slane %v3240_v30, %v7910_v27  ;;  %v3241_v6 = vcombine.high %v3240_v30, %v3240_v30 }
0x22e6   :  { %v5267_v58 = vpop.xlane.xlu1 %5266 }
0x22e7   :  { %v5271_v43 = vmul.f32 0.03125, %v5267_v58  ;;  %v5264_v32 = vpop.xlane.xlu0 %5263 }
0x22e8   :  { %v5270_v44 = vmul.f32 0.03125, %v5264_v32 }
0x22e9   :  { %v8610_v8 = vsub.f32 %v8588_v22, %v5271_v43 }
0x22ea   :  { %v8613_v21 = vsub.f32 %v8591_v10, %v5270_v44 }
0x22eb   :  { %v5279_v45 = vmul.f32 %v8610_v8, %v8610_v8 }
0x22ec   :  { %v5278_v47 = vmul.f32 %v8613_v21, %v8613_v21 }
0x22ed   :  { %v5289_v63 = vsel %vm486_vm3, %v5279_v45, 0.0 }
0x22ee   :  { %5290 = vadd.xlane.f32.xlu1 %v5289_v63  ;;  %v5286_v13 = vsel %vm486_vm3, %v5278_v47, 0.0  ;;  %v8638_v47 = vrot.slane %v3248_v49, %v7915_v34 }
0x22ef   :  { %5287 = vadd.xlane.f32.xlu0 %v5286_v13 }
0x22ff   :  { %5324 = vrot.lane.b32.xlu1 %v8311_v61, %s7726_s24  ;;  %v7432_v61 = vpack.i.bf16 %v5477_v60, %v5476_v55 }
0x2303   :  { %7428 = vrot.lane.b32.xlu1 %v7427_v48, %s7702_s29  ;;  %v8652_v48 = vld [vmem:[#allocation2 + $0x1c8] sm:$0xff] }
0x2305   :  { %5322 = vrot.lane.b32.xlu0 %v8317_v40, %s7726_s24  ;;  %v5483_v40 = vld [vmem:[#allocation2 + $0x68] sm:$0xff] }
0x2306   :  { %v7447_v57 = vpack.i.bf16 %v5483_v40, %v5482_v28 }
0x2307   :  { %7438 = vrot.lane.b32.xlu1 %v7437_v54, %s7702_s29 }
0x2309   :  { %7433 = vrot.lane.b32.xlu0 %v7432_v61, %s7702_s29 }
0x230b   :  { %7448 = vrot.lane.b32.xlu1 %v7447_v57, %s7702_s29 }
0x230d   :  { %7443 = vrot.lane.b32.xlu0 %v7442_v56, %s7702_s29 }
0x230f   :  { %7458 = vrot.lane.b32.xlu1 %v7457_v19, %s7702_s29 }
0x2311   :  { %7453 = vrot.lane.b32.xlu0 %v7452_v37, %s7702_s29 }
0x2315   :  { %7463 = vrot.lane.b32.xlu0 %v7462_v15, %s7702_s29 }
0x236f   :  { %v5285_v7 = vpop.xlane.xlu1 %5284 }
0x2370   :  { %v5293_v17 = vmul.f32 0.03125, %v5285_v7  ;;  %v5282_v29 = vpop.xlane.xlu0 %5281 }
0x2371   :  { %v5292_v62 = vmul.f32 0.03125, %v5282_v29 }
0x2372   :  { %v5297_v14 = vadd.f32 1e-06, %v5293_v17 }
0x2373   :  { %v5296_v52 = vadd.f32 1e-06, %v5292_v62 }
0x2374   :  { %7646 = vrsqrt.f32 %v5297_v14 }
0x2375   :  { %7648 = vrsqrt.f32 %v5296_v52 }
0x237b   :  { %v5291_v35 = vpop.xlane.xlu1 %5290 }
0x237c   :  { %v5295_v31 = vmul.f32 0.03125, %v5291_v35  ;;  %v5288_v58 = vpop.xlane.xlu0 %5287 }
0x237d   :  { %v5294_v43 = vmul.f32 0.03125, %v5288_v58 }
0x237e   :  { %v7647_v32 = vpop.eup %7646  ;;  %v5299_v44 = vadd.f32 1e-06, %v5295_v31 }
0x237f   :  { %v7649_v45 = vpop.eup %7648  ;;  %v5298_v63 = vadd.f32 1e-06, %v5294_v43  ;;  %v5305_v4 = vmul.f32 %v7647_v32, %v8598_v2  ;;  %v8650_v2 = vld [vmem:[#allocation2 + $0x1c0] sm:$0xff]  ;;  %v5325_v60 = vpop.permute.xlu1 %5324 }
0x2380   :  { %7650 = vrsqrt.f32 %v5299_v44  ;;  %v5304_v13 = vmul.f32 %v7649_v45, %v8601_v23  ;;  %v5323_v24 = vpop.permute.xlu0 %5322  ;;  %v3255_v23 = vrot.slane %v3241_v6, %v7910_v27  ;;  %v7198_v50 = vpack.c.bf16 %v8652_v48, %v8650_v2 }
0x2381   :  { %7652 = vrsqrt.f32 %v5298_v63  ;;  %v5319_v41 = vmul.f32 %v8638_v47, %v5305_v4  ;;  %v6143_v4 = vld [vmem:[#allocation2 + $0x1ac] ss:$0 sm:$0xff] }
0x2382   :  { %v5318_v36 = vmul.f32 %v8638_v47, %v5304_v13  ;;  %v8661_v51 = vrot.slane %v3255_v23, %v7915_v34 }
0x2383   :  { %v5329_v55 = vadd.f32 %v5323_v24, %v5319_v41  ;;  %v7429_v56 = vpop.permute.xlu1 %7428 }
0x2384   :  { %v5328_v59 = vadd.f32 %v5323_v24, %v5318_v36  ;;  %v7431_v40 = vunpack.i.h.bf16 %v7429_v56  ;;  %v7430_v20 = vunpack.i.l.bf16 %v7429_v56  ;;  %v7434_v26 = vpop.permute.xlu0 %7433 }
0x2385   :  { %v7436_v37 = vunpack.i.h.bf16 %v7434_v26 }
0x2386   :  { %6825 = vmatprep.mubr.msk.f32.mxu1 %vm486_vm3, %v5328_v59  ;;  %v7162_v18 = vpack.c.bf16 %v7431_v40, %v7430_v20 }
0x2387   :  { %6826 = vmatmul.mubr.msk.f32.vlgmr.msra.gmra.mrb[58].mxu1 %vm486_vm3, %v5329_v55 }
0x2388   :  { %7196 = vmatpush3.bf16.msra.mxu1 %v7195_v42  ;;  %7163 = vmatprep.subr.bf16.mxu0 %v7162_v18  ;;  %v7444_v7 = vpop.permute.xlu0 %7443 }
0x2389   :  { %7197 = vmatprep.subr.bf16.mxu1 %v7703_v9  ;;  %v7435_v9 = vunpack.i.l.bf16 %v7434_v26  ;;  %7165 = vmatpush3.bf16.msra.mxu0 %v7162_v18  ;;  %v7446_v5 = vunpack.i.h.bf16 %v7444_v7  ;;  %v7445_v17 = vunpack.i.l.bf16 %v7444_v7 }
0x238a   :  { %v7651_v25 = vpop.eup %7650 }
0x238b   :  { %v7653_v61 = vpop.eup %7652  ;;  %v5307_v16 = vmul.f32 %v7651_v25, %v8610_v8  ;;  %v7166_v0 = vpack.c.bf16 %v7436_v37, %v7435_v9  ;;  %v7439_v8 = vpop.permute.xlu1 %7438  ;;  %v7174_v29 = vpack.c.bf16 %v7446_v5, %v7445_v17 }
0x238c   :  { %v5306_v54 = vmul.f32 %v7653_v61, %v8613_v21  ;;  %7199 = vmatpush3.bf16.msra.mxu1 %v7198_v50  ;;  %v7441_v21 = vunpack.i.h.bf16 %v7439_v8  ;;  %v7440_v19 = vunpack.i.l.bf16 %v7439_v8  ;;  %v7454_v52 = vpop.permute.xlu0 %7453 }
0x238d   :  { %v5321_v28 = vmul.f32 %v8661_v51, %v5307_v16  ;;  %7167 = vmatprep.subr.bf16.mxu0 %v7166_v0  ;;  %v7456_v30 = vunpack.i.h.bf16 %v7454_v52  ;;  %v7455_v49 = vunpack.i.l.bf16 %v7454_v52 }
0x238e   :  { %v5320_v57 = vmul.f32 %v8661_v51, %v5306_v54  ;;  %7169 = vmatpush3.bf16.msra.mxu0 %v7166_v0  ;;  %v7170_v15 = vpack.c.bf16 %v7441_v21, %v7440_v19 }
0x238f   :  { %v5331_v12 = vadd.f32 %v5325_v60, %v5321_v28  ;;  %v7449_v62 = vpop.permute.xlu1 %7448 }
0x2390   :  { %v5330_v1 = vadd.f32 %v5325_v60, %v5320_v57  ;;  %7171 = vmatprep.subr.bf16.mxu0 %v7170_v15  ;;  %v7451_v14 = vunpack.i.h.bf16 %v7449_v62  ;;  %v7450_v33 = vunpack.i.l.bf16 %v7449_v62  ;;  %v7464_v32 = vpop.permute.xlu0 %7463 }
0x2391   :  { %v7466_v44 = vunpack.i.h.bf16 %v7464_v32  ;;  %v7465_v45 = vunpack.i.l.bf16 %v7464_v32 }
0x2392   :  { %6828 = vmatprep.mubr.msk.f32.mxu1 %vm486_vm3, %v5330_v1  ;;  %7173 = vmatpush3.bf16.msra.mxu0 %v7170_v15 }
0x2393   :  { %6829 = vmatmul.mubr.msk.f32.gmra.mrb[60].mxu1 %vm486_vm3, %v5331_v12  ;;  %7175 = vmatprep.subr.bf16.mxu0 %v7174_v29  ;;  %v7459_v35 = vpop.permute.xlu1 %7458  ;;  %v7190_v63 = vpack.c.bf16 %v7466_v44, %v7465_v45 }
0x2394   :  { %6877 = vmatprep.mubr.msk.f32.mxu1 %vm7705_vm1, %v7706_v11  ;;  %v7178_v11 = vpack.c.bf16 %v7451_v14, %v7450_v33  ;;  %v7461_v31 = vunpack.i.h.bf16 %v7459_v35  ;;  %v7460_v58 = vunpack.i.l.bf16 %v7459_v35 }
0x2396   :  { %7177 = vmatpush3.bf16.msra.mxu0 %v7174_v29  ;;  %v7186_v43 = vpack.c.bf16 %v7461_v31, %v7460_v58 }
0x2397   :  { %6878 = vmatmul.mubr.msk.f32.vlgmr.msra.gmra.mrb[62].mxu1 %vm486_vm3, %v7880_v53  ;;  %7179 = vmatprep.subr.bf16.mxu0 %v7178_v11  ;;  %v7182_v53 = vpack.c.bf16 %v7456_v30, %v7455_v49 }
0x239a   :  { %7181 = vmatpush3.bf16.msra.mxu0 %v7178_v11 }
0x239b   :  { %7183 = vmatprep.subr.bf16.mxu0 %v7182_v53 }
0x239e   :  { %7185 = vmatpush3.bf16.msra.mxu0 %v7182_v53 }
0x239f   :  { %7187 = vmatprep.subr.bf16.mxu0 %v7186_v43 }
0x23a2   :  { %7189 = vmatpush3.bf16.msra.mxu0 %v7186_v43  ;;  %v6148_v43 = vld [vmem:[#allocation2 + $0x1ad] ss:$0 sm:$0xff] }
0x23a3   :  { %7191 = vmatprep.subr.bf16.mxu0 %v7190_v63 }
0x23a6   :  { %7193 = vmatpush3.bf16.msra.mxu0 %v7190_v63 }
0x245a   :  { %v6827_v13 = vpop.f32.mrb[58].mxu1 }
0x245b   :  { %v5425_v41 = vadd.f32 %v6827_v13, %v6143_v4  ;;  %v5419_v36 = vpop.f32.mrb[59].mxu1 }
0x245c   :  { %v5420_v6 = vadd.f32 %v6143_v4, %v5419_v36 }
0x245d   :  { %v5439_v24 = vmul.f32 %v5425_v41, %v5425_v41 }
0x245e   :  { %v5438_v59 = vmul.f32 %v5420_v6, %v5420_v6 }
0x245f   :  { %v5443_v42 = vmul.f32 %v5439_v24, %v5425_v41 }
0x2460   :  { %v5442_v55 = vmul.f32 %v5438_v59, %v5420_v6 }
0x2461   :  { %v5447_v23 = vmul.f32 0.044715, %v5443_v42 }
0x2462   :  { %v5446_v60 = vmul.f32 0.044715, %v5442_v55 }
0x2463   :  { %v5451_v50 = vadd.f32 %v5447_v23, %v5425_v41 }
0x2464   :  { %v5450_v25 = vadd.f32 %v5446_v60, %v5420_v6 }
0x2465   :  { %v5455_v61 = vmul.f32 0.7978846, %v5451_v50 }
0x2466   :  { %v5454_v16 = vmul.f32 0.7978846, %v5450_v25  ;;  %v6830_v54 = vpop.f32.mrb[60].mxu1 }
0x2467   :  { %7654 = vtanh.f32 %v5455_v61  ;;  %v5435_v56 = vadd.f32 %v6830_v54, %v6143_v4  ;;  %v5429_v28 = vpop.f32.mrb[61].mxu1 }
0x2468   :  { %v5430_v40 = vadd.f32 %v6143_v4, %v5429_v28  ;;  %7656 = vtanh.f32 %v5454_v16 }
0x2469   :  { %v5441_v20 = vmul.f32 %v5435_v56, %v5435_v56 }
0x246a   :  { %v5440_v26 = vmul.f32 %v5430_v40, %v5430_v40  ;;  %v8673_v57 = vpop.f32.mrb[62].mxu1 }
0x246b   :  { %v5445_v37 = vmul.f32 %v5441_v20, %v5435_v56  ;;  %v6879_v9 = vpop.f32.mrb[63].mxu1 }
0x246c   :  { %v5444_v18 = vmul.f32 %v5440_v26, %v5430_v40 }
0x246d   :  { %v5449_v1 = vmul.f32 0.044715, %v5445_v37 }
0x246e   :  { %v5448_v0 = vmul.f32 0.044715, %v5444_v18 }
0x246f   :  { %v5453_v12 = vadd.f32 %v5449_v1, %v5435_v56 }
0x2470   :  { %v5452_v8 = vadd.f32 %v5448_v0, %v5430_v40 }
0x2471   :  { %v7655_v21 = vpop.eup %7654  ;;  %v5457_v19 = vmul.f32 0.7978846, %v5453_v12 }
0x2472   :  { %v7657_v15 = vpop.eup %7656  ;;  %v5463_v7 = vadd.f32 1.0, %v7655_v21  ;;  %v5456_v5 = vmul.f32 0.7978846, %v5452_v8 }
0x2473   :  { %v5462_v17 = vadd.f32 1.0, %v7657_v15  ;;  %7658 = vtanh.f32 %v5457_v19  ;;  %v7467_v19 = vpack.i.bf16 %v8645_v46, %v8643_v39 }
0x2474   :  { %v5467_v29 = vmul.f32 0.5, %v5463_v7  ;;  %7660 = vtanh.f32 %v5456_v5 }
0x2475   :  { %v5466_v62 = vmul.f32 0.5, %v5462_v17 }
0x2476   :  { %v5471_v33 = vmul.f32 %v5467_v29, %v5425_v41 }
0x2477   :  { %v5470_v14 = vmul.f32 %v5466_v62, %v5420_v6 }
0x2479   :  { %6863 = vmatprep.mubr.f32.mxu0 %v5470_v14 }
0x247a   :  { %6864 = vmatmul.mubr.f32.vlgmr.msra.gmra.mrb[48].mxu0 %v5471_v33 }
0x247d   :  { %v7659_v11 = vpop.eup %7658 }
0x247e   :  { %v7661_v52 = vpop.eup %7660  ;;  %v5465_v30 = vadd.f32 1.0, %v7659_v11 }
0x247f   :  { %v5464_v49 = vadd.f32 1.0, %v7661_v52  ;;  %v6149_v52 = vld [vmem:[#allocation2 + $0x1d] ss:$0 sm:$0xff] }
0x2480   :  { %v5469_v53 = vmul.f32 0.5, %v5465_v30 }
0x2481   :  { %v5468_v35 = vmul.f32 0.5, %v5464_v49 }
0x2482   :  { %v5473_v58 = vmul.f32 %v5469_v53, %v5435_v56 }
0x2483   :  { %v5472_v31 = vmul.f32 %v5468_v35, %v5430_v40 }
0x2485   :  { %6866 = vmatprep.mubr.f32.mxu0 %v5472_v31 }
0x2486   :  { %6867 = vmatmul.mubr.f32.gmra.mrb[50].mxu0 %v5473_v58 }
0x254d   :  { %v6865_v32 = vpop.f32.mrb[48].mxu0 }
0x254e   :  { %v5631_v44 = vadd.f32 %v6865_v32, %v6148_v43  ;;  %v5625_v45 = vpop.f32.mrb[49].mxu0 }
0x254f   :  { %v5626_v63 = vadd.f32 %v6148_v43, %v5625_v45 }
0x2550   :  { %5650 = vrot.lane.b32.xlu0 %v5631_v44, %s7726_s24 }
0x2551   :  { %5648 = vrot.lane.b32.xlu1 %v5626_v63, %s7726_s24 }
0x2559   :  { %v6868_v4 = vpop.f32.mrb[50].mxu0 }
0x255a   :  { %v5641_v13 = vadd.f32 %v6868_v4, %v6148_v43  ;;  %v5635_v41 = vpop.f32.mrb[51].mxu0 }
0x255b   :  { %v5636_v36 = vadd.f32 %v6148_v43, %v5635_v41 }
0x255c   :  { %5654 = vrot.lane.b32.xlu0 %v5641_v13, %s7726_s24 }
0x255d   :  { %5652 = vrot.lane.b32.xlu1 %v5636_v36, %s7726_s24 }
0x25c2   :  { %v5651_v6 = vpop.permute.xlu0 %5650 }
0x25c3   :  { %v5661_v24 = vmul.f32 %v5651_v6, %v8638_v47  ;;  %v5649_v59 = vpop.permute.xlu1 %5648 }
0x25c4   :  { %v5660_v42 = vmul.f32 %v5649_v59, %v8638_v47 }
0x25c5   :  { %5670 = vrot.lane.b32.xlu0 %v5661_v24, %s7702_s29 }
0x25c6   :  { %5668 = vrot.lane.b32.xlu1 %v5660_v42, %s7702_s29 }
0x25ce   :  { %v5655_v55 = vpop.permute.xlu0 %5654 }
0x25cf   :  { %v5663_v23 = vmul.f32 %v5655_v55, %v8661_v51  ;;  %v5653_v60 = vpop.permute.xlu1 %5652 }
0x25d0   :  { %v5662_v50 = vmul.f32 %v5653_v60, %v8661_v51 }
0x25d1   :  { %5674 = vrot.lane.b32.xlu0 %v5663_v23, %s7702_s29 }
0x25d2   :  { %5672 = vrot.lane.b32.xlu1 %v5662_v50, %s7702_s29 }
0x2637   :  { %v5671_v25 = vpop.permute.xlu0 %5670 }
0x2638   :  { %v5681_v61 = vadd.f32 %v5671_v25, %v8578_v3  ;;  %v5669_v16 = vpop.permute.xlu1 %5668 }
0x2639   :  { %v5680_v47 = vadd.f32 %v5669_v16, %v8581_v38 }
0x263a   :  { %v5789_v54 = vsel %vm486_vm3, %v5681_v61, 0.0 }
0x263b   :  { %5790 = vadd.xlane.f32.xlu0 %v5789_v54  ;;  %v5786_v56 = vsel %vm486_vm3, %v5680_v47, 0.0 }
0x263c   :  { %5787 = vadd.xlane.f32.xlu1 %v5786_v56 }
0x2643   :  { %v5675_v28 = vpop.permute.xlu0 %5674 }
0x2644   :  { %v5683_v40 = vadd.f32 %v5675_v28, %v8588_v22  ;;  %v5673_v51 = vpop.permute.xlu1 %5672 }
0x2645   :  { %v5682_v20 = vadd.f32 %v5673_v51, %v8591_v10  ;;  %v7472_v10 = vpack.i.bf16 %v8652_v48, %v8650_v2  ;;  %v5760_v48 = vadd.f32 %v6149_v52, %v8673_v57 }
0x2646   :  { %v5795_v26 = vsel %vm486_vm3, %v5683_v40, 0.0 }
0x2647   :  { %5796 = vadd.xlane.f32.xlu1 %v5795_v26  ;;  %v5792_v3 = vsel %vm486_vm3, %v5682_v20, 0.0  ;;  %v5770_v39 = vrot.slane %v5760_v48, %v7910_v27 }
0x2648   :  { %5793 = vadd.xlane.f32.xlu0 %v5792_v3 }
0x2649   :  { %v5778_v46 = vrot.slane %v5770_v39, %v7910_v27  ;;  %v5771_v30 = vcombine.high %v5770_v39, %v5770_v39 }
0x264b   :  { %v5841_v49 = vrot.slane %v5778_v46, %v7915_v34  ;;  %v5785_v53 = vrot.slane %v5771_v30, %v7910_v27 }
0x264d   :  { %v5845_v35 = vrot.slane %v5785_v53, %v7915_v34 }
0x26c8   :  { %v5791_v37 = vpop.xlane.xlu0 %5790 }
0x26c9   :  { %v5799_v38 = vmul.f32 0.03125, %v5791_v37  ;;  %v5788_v9 = vpop.xlane.xlu1 %5787 }
0x26ca   :  { %v5798_v18 = vmul.f32 0.03125, %v5788_v9 }
0x26cb   :  { %v5803_v1 = vsub.f32 %v5681_v61, %v5799_v38 }
0x26cc   :  { %v5802_v0 = vsub.f32 %v5680_v47, %v5798_v18 }
0x26cd   :  { %v5807_v12 = vmul.f32 %v5803_v1, %v5803_v1 }
0x26ce   :  { %v5806_v8 = vmul.f32 %v5802_v0, %v5802_v0 }
0x26cf   :  { %v5813_v21 = vsel %vm486_vm3, %v5807_v12, 0.0 }
0x26d0   :  { %5814 = vadd.xlane.f32.xlu1 %v5813_v21  ;;  %v5810_v22 = vsel %vm486_vm3, %v5806_v8, 0.0 }
0x26d1   :  { %5811 = vadd.xlane.f32.xlu0 %v5810_v22 }
0x26d4   :  { %v5797_v15 = vpop.xlane.xlu1 %5796 }
0x26d5   :  { %v5794_v7 = vpop.xlane.xlu0 %5793  ;;  %v5801_v5 = vmul.f32 0.03125, %v5797_v15 }
0x26d6   :  { %v5800_v17 = vmul.f32 0.03125, %v5794_v7 }
0x26d7   :  { %v5805_v29 = vsub.f32 %v5683_v40, %v5801_v5 }
0x26d8   :  { %v5804_v62 = vsub.f32 %v5682_v20, %v5800_v17 }
0x26d9   :  { %v5809_v14 = vmul.f32 %v5805_v29, %v5805_v29 }
0x26da   :  { %v5808_v33 = vmul.f32 %v5804_v62, %v5804_v62 }
0x26db   :  { %v5819_v11 = vsel %vm486_vm3, %v5809_v14, 0.0 }
0x26dc   :  { %v5816_v2 = vsel %vm486_vm3, %v5808_v33, 0.0 }
0x26e1   :  { %7473 = vrot.lane.b32.xlu1 %v7472_v10, %s7704_s1 }
0x26e7   :  { %7468 = vrot.lane.b32.xlu0 %v7467_v19, %s7704_s1 }
0x2705   :  { %5820 = vadd.xlane.f32.xlu1 %v5819_v11 }
0x2706   :  { %5817 = vadd.xlane.f32.xlu0 %v5816_v2 }
0x2716   :  { %5846 = vrot.lane.b32.xlu1 %v5841_v49, %s7702_s29 }
0x271c   :  { %5848 = vrot.lane.b32.xlu0 %v5845_v35, %s7702_s29 }
0x275d   :  { %v5815_v31 = vpop.xlane.xlu1 %5814 }
0x275e   :  { %v5812_v58 = vpop.xlane.xlu0 %5811  ;;  %v5823_v27 = vmul.f32 0.03125, %v5815_v31 }
0x275f   :  { %v5822_v41 = vmul.f32 0.03125, %v5812_v58 }
0x2760   :  { %v5827_v36 = vadd.f32 1e-06, %v5823_v27 }
0x2761   :  { %v7474_v43 = vpop.permute.xlu1 %7473  ;;  %v5826_v34 = vadd.f32 1e-06, %v5822_v41 }
0x2762   :  { %v7469_v32 = vpop.permute.xlu0 %7468  ;;  %v7476_v57 = vunpack.i.h.bf16 %v7474_v43  ;;  %v7475_v44 = vunpack.i.l.bf16 %v7474_v43  ;;  %7662 = vrsqrt.f32 %v5827_v36 }
0x2763   :  { %v7471_v45 = vunpack.i.h.bf16 %v7469_v32  ;;  %v7470_v63 = vunpack.i.l.bf16 %v7469_v32  ;;  %7664 = vrsqrt.f32 %v5826_v34 }
0x2764   :  { %v7204_v13 = vpack.c.bf16 %v7476_v57, %v7475_v44 }
0x2765   :  { %v7200_v4 = vpack.c.bf16 %v7471_v45, %v7470_v63 }
0x2767   :  { %7201 = vmatprep.subr.bf16.mxu1 %v7200_v4 }
0x2768   :  { %7203 = vmatpush3.bf16.msra.mxu1 %v7200_v4 }
0x2769   :  { %7205 = vmatprep.subr.bf16.mxu1 %v7204_v13 }
0x276c   :  { %7207 = vmatpush3.bf16.msra.mxu1 %v7204_v13  ;;  %v7663_v6 = vpop.eup %7662 }
0x276d   :  { %v7665_v24 = vpop.eup %7664  ;;  %v5835_v25 = vmul.f32 %v7663_v6, %v5803_v1  ;;  %v6151_v1 = vld [vmem:[#allocation2 + $0x1e] ss:$0 sm:$0xff] }
0x276e   :  { %v5834_v50 = vmul.f32 %v7665_v24, %v5802_v0 }
0x2792   :  { %v5821_v59 = vpop.xlane.xlu1 %5820 }
0x2793   :  { %v5825_v42 = vmul.f32 0.03125, %v5821_v59  ;;  %v5818_v55 = vpop.xlane.xlu0 %5817 }
0x2794   :  { %v5824_v23 = vmul.f32 0.03125, %v5818_v55 }
0x2795   :  { %v5829_v60 = vadd.f32 1e-06, %v5825_v42 }
0x2796   :  { %v5828_v61 = vadd.f32 1e-06, %v5824_v23  ;;  %v5847_v16 = vpop.permute.xlu1 %5846 }
0x2797   :  { %7666 = vrsqrt.f32 %v5829_v60  ;;  %v5852_v47 = vmul.f32 %v5847_v16, %v5834_v50  ;;  %v5853_v54 = vmul.f32 %v5847_v16, %v5835_v25  ;;  %v5849_v3 = vpop.permute.xlu0 %5848 }
0x2798   :  { %7668 = vrsqrt.f32 %v5828_v61 }
0x2799   :  { %v5858_v56 = vadd.f32 %v5852_v47, %v5841_v49  ;;  %v5859_v28 = vadd.f32 %v5853_v54, %v5841_v49 }
0x279b   :  { %6888 = vmatprep.mubr.msk.f32.mxu1 %vm486_vm3, %v5858_v56 }
0x279c   :  { %6889 = vmatmul.mubr.msk.f32.vlgmr.msra.gmra.mrb[64].mxu1 %vm486_vm3, %v5859_v28 }
0x27a1   :  { %v7667_v40 = vpop.eup %7666 }
0x27a2   :  { %v7669_v51 = vpop.eup %7668  ;;  %v5837_v20 = vmul.f32 %v7667_v40, %v5805_v29 }
0x27a3   :  { %v5836_v26 = vmul.f32 %v7669_v51, %v5804_v62 }
0x27a4   :  { %v5855_v37 = vmul.f32 %v5849_v3, %v5837_v20 }
0x27a5   :  { %v5854_v38 = vmul.f32 %v5849_v3, %v5836_v26 }
0x27a6   :  { %v5861_v18 = vadd.f32 %v5855_v37, %v5845_v35 }
0x27a7   :  { %v5860_v9 = vadd.f32 %v5854_v38, %v5845_v35 }
0x27a9   :  { %6891 = vmatprep.mubr.msk.f32.mxu1 %vm486_vm3, %v5860_v9 }
0x27aa   :  { %6892 = vmatmul.mubr.msk.f32.gmra.mrb[66].mxu1 %vm486_vm3, %v5861_v18 }
0x286f   :  { %v6890_v0 = vpop.f32.mrb[64].mxu1 }
0x2870   :  { %v5971_v12 = vadd.f32 %v6890_v0, %v6151_v1  ;;  %v5965_v8 = vpop.f32.mrb[65].mxu1 }
0x2871   :  { %v5966_v21 = vadd.f32 %v6151_v1, %v5965_v8 }
0x2872   :  { %5985 = vst.msk [vmem:[%s8737_s4 + $0x8] sm:$0xff] %vm41_vm0, %v5971_v12 }
0x2873   :  { %5984 = vst.msk [vmem:[%s8737_s4] sm:$0xff] %vm41_vm0, %v5966_v21 }
0x287d   :  { %v6893_v22 = vpop.f32.mrb[66].mxu1 }
0x287e   :  { %v5981_v10 = vadd.f32 %v6893_v22, %v6151_v1  ;;  %v5975_v19 = vpop.f32.mrb[67].mxu1 }
0x287f   :  { %v5976_v15 = vadd.f32 %v6151_v1, %v5975_v19 }
0x2880   :  { %5987 = vst.msk [vmem:[%s8737_s4 + $0x18] sm:$0xff] %vm41_vm0, %v5981_v10 }
0x2881   :  { %5986 = vst.msk [vmem:[%s8737_s4 + $0x10] sm:$0xff] %vm41_vm0, %v5976_v15 }
0x2882   :  { %5992 = vsyncpa [#allocation3], 1 }

</bundles_post_ra>
